<compile_context>
chip_gen: v7x
topology: tpu7x:2x2x1
jax: 0.10.0
libtpu: 0.0.40
codegen_flags: <defaults>
</compile_context>

<pallas_src>
import jax
import jax.numpy as jnp
from jax import lax
from jax.experimental import pallas as pl
from jax.experimental.pallas import tpu as pltpu


def sentiment_gru_kernel(x_ref, wih_ref, whh_ref, bx_ref, bhn_ref,
                         wfc_ref, bfc_ref, out_ref, gx_ref):
    """GRU recurrence + final Linear for one batch block.

    x_ref:   (T, BB, E)   bf16 time-major embedded tokens
    wih_ref: (E, 3H)      bf16   whh_ref: (H, 3H) bf16
    bx_ref:  (1, 3H)      f32  (= b_ih + [b_hr, b_hz, 0])
    bhn_ref: (1, H)       f32  (= b_hn, kept inside r*(...))
    wfc_ref: (H, 128)     f32 (columns padded to 128)
    bfc_ref: (1, 128)     f32
    out_ref: (BB, 128)    f32 padded logits
    gx_ref:  (T*BB, 3H)   f32 VMEM scratch for the precomputed input gates
    """
    T, BB, E = x_ref.shape
    H = whh_ref.shape[0]

    # ---- Stage 1: all timesteps' input projections as ONE MXU matmul,
    # written time-major into the gates scratch (biases folded in).
    x2d = x_ref[...].reshape(T * BB, E)                              # bf16
    gx_ref[...] = (
        jnp.dot(x2d, wih_ref[...], preferred_element_type=jnp.float32)
        + bx_ref[...])

    # ---- Stage 2: unrolled GRU recurrence (PyTorch gate order [r, z, n]).
    whh = whh_ref[...]                                               # (H, 3H) bf16
    b_hn = jnp.broadcast_to(bhn_ref[...], (BB, H))                   # hoisted
    h0 = jnp.zeros((BB, H), jnp.float32)

    def step(t, h):
        row = pl.multiple_of(t * BB, BB)
        gx = gx_ref[pl.ds(row, BB), :]                               # (BB, 3H) f32
        gh = jnp.dot(h.astype(jnp.bfloat16), whh,
                     preferred_element_type=jnp.float32)             # (BB, 3H) f32
        r = jax.nn.sigmoid(gx[:, 0:H] + gh[:, 0:H])
        z = jax.nn.sigmoid(gx[:, H:2 * H] + gh[:, H:2 * H])
        n = jnp.tanh(gx[:, 2 * H:] + r * (gh[:, 2 * H:] + b_hn))
        return (1.0 - z) * n + z * h

    h_final = lax.fori_loop(0, T, step, h0, unroll=True)             # == h_n[-1]

    # ---- Stage 3: lane-dense (padded) final Linear.
    logits = jnp.dot(h_final, wfc_ref[...],
                     preferred_element_type=jnp.float32) + bfc_ref[...]
    out_ref[...] = logits.astype(out_ref.dtype)


def init_params(key, vocab, embed_dim, gru_out, num_classes):
    """Deterministic parameter init mirroring the PyTorch module's shapes."""
    ks = jax.random.split(key, 8)
    s = 1.0 / jnp.sqrt(jnp.float32(gru_out))
    emb = jax.random.normal(ks[0], (vocab, embed_dim), jnp.float32)
    w_ih = jax.random.uniform(ks[1], (3 * gru_out, embed_dim), jnp.float32, -s, s)
    w_hh = jax.random.uniform(ks[2], (3 * gru_out, gru_out), jnp.float32, -s, s)
    b_ih = jax.random.uniform(ks[3], (3 * gru_out,), jnp.float32, -s, s)
    b_hh = jax.random.uniform(ks[4], (3 * gru_out,), jnp.float32, -s, s)
    w_fc = jax.random.uniform(ks[5], (num_classes, gru_out), jnp.float32, -s, s)
    b_fc = jax.random.uniform(ks[6], (num_classes,), jnp.float32, -s, s)
    return {
        "embedding": emb,
        "w_ih_t": w_ih.T,                       # (E, 3H)
        "w_hh_t": w_hh.T,                       # (H, 3H)
        "b_ih": b_ih.reshape(1, -1),            # (1, 3H)
        "b_hh": b_hh.reshape(1, -1),            # (1, 3H)
        "w_fc_t": w_fc.T,                       # (H, C)
        "b_fc": b_fc.reshape(1, -1),            # (1, C)
    }


def sentiment_gru_forward(token_ids, params, *, batch_block=8):
    # Embedding lookup stays in plain JAX (gather) for now.
    # TODO(synk): fuse the embedding gather into the kernel via scalar-prefetch
    # token ids + in-kernel gather to skip the HBM round trip of (B, T, E).
    # TODO(synk): dropout (p=0.4 / GRU p=0.2) is identity at inference; training
    # Bernoulli masking is not implemented here.
    emb = jnp.take(params["embedding"], token_ids, axis=0)          # (B, T, E) f32
    B, T, E = emb.shape
    H = params["w_hh_t"].shape[0]
    C = params["w_fc_t"].shape[1]
    C_PAD = 128

    BB = min(batch_block, B)
    assert B % BB == 0, "batch must be a multiple of the batch block"

    # Time-major bf16 activations: (T, B, E).
    x_tm = jnp.transpose(emb, (1, 0, 2)).astype(jnp.bfloat16)

    # bf16 weights for the MXU (f32 accumulation inside the kernel).
    w_ih = params["w_ih_t"].astype(jnp.bfloat16)                    # (E, 3H)
    w_hh = params["w_hh_t"].astype(jnp.bfloat16)                    # (H, 3H)

    # Fold b_ih + the r/z thirds of b_hh into the one-shot input projection;
    # keep the n-gate third separate (must stay inside r * (W_hn h + b_hn)).
    b_ih = params["b_ih"]                                           # (1, 3H)
    b_hh = params["b_hh"]                                           # (1, 3H)
    b_x = b_ih + jnp.concatenate(
        [b_hh[:, :2 * H], jnp.zeros((1, H), jnp.float32)], axis=1)  # (1, 3H)
    b_hn = b_hh[:, 2 * H:]                                          # (1, H)

    # Lane-dense final Linear: pad columns to 128, slice back after the call.
    w_fc = jnp.zeros((H, C_PAD), jnp.float32).at[:, :C].set(params["w_fc_t"])
    b_fc = jnp.zeros((1, C_PAD), jnp.float32).at[:, :C].set(params["b_fc"])

    flops = (2 * B * T * E * 3 * H          # input projection
             + 2 * B * T * H * 3 * H        # recurrent matmuls
             + 2 * B * H * C_PAD)           # final linear
    transcendentals = B * T * 3 * H
    bytes_accessed = (x_tm.size * 2 + (w_ih.size + w_hh.size) * 2
                      + (w_fc.size + b_fc.size + b_x.size + b_hn.size) * 4
                      + B * C_PAD * 4)

    out = pl.pallas_call(
        sentiment_gru_kernel,
        out_shape=jax.ShapeDtypeStruct((B, C_PAD), jnp.float32),
        grid=(B // BB,),
        in_specs=[
            pl.BlockSpec((T, BB, E), lambda b: (0, b, 0)),      # x (time-major)
            pl.BlockSpec((E, 3 * H), lambda b: (0, 0)),         # W_ih^T
            pl.BlockSpec((H, 3 * H), lambda b: (0, 0)),         # W_hh^T
            pl.BlockSpec((1, 3 * H), lambda b: (0, 0)),         # folded bias
            pl.BlockSpec((1, H), lambda b: (0, 0)),             # b_hn
            pl.BlockSpec((H, C_PAD), lambda b: (0, 0)),         # W_fc^T (padded)
            pl.BlockSpec((1, C_PAD), lambda b: (0, 0)),         # b_fc (padded)
        ],
        out_specs=pl.BlockSpec((BB, C_PAD), lambda b: (b, 0)),
        scratch_shapes=[pltpu.VMEM((T * BB, 3 * H), jnp.float32)],
        compiler_params=pltpu.CompilerParams(
            dimension_semantics=("parallel",),
            vmem_limit_bytes=32 * 1024 * 1024),
        cost_estimate=pl.CostEstimate(
            flops=flops,
            transcendentals=transcendentals,
            bytes_accessed=bytes_accessed),
    )(x_tm, w_ih, w_hh, b_x, b_hn, w_fc, b_fc)
    return out[:, :C]


if __name__ == "__main__":
    # Small shapes consistent with the module (vocab=1000 like max_features, E=128).
    VOCAB = 1000
    EMBED_DIM = 128
    GRU_OUT = 128
    NUM_CLASSES = 2
    B, T = 16, 16          # B=16 / batch_block=8 -> 2 parallel grid blocks

    key = jax.random.PRNGKey(0)
    k_tok, k_par = jax.random.split(key)
    params = init_params(k_par, VOCAB, EMBED_DIM, GRU_OUT, NUM_CLASSES)
    token_ids = jax.random.randint(k_tok, (B, T), 0, VOCAB, dtype=jnp.int32)

    fwd = jax.jit(sentiment_gru_forward)
    logits = fwd(token_ids, params)
    jax.block_until_ready(logits)
    assert logits.shape == (B, NUM_CLASSES)
    print("KERNEL_OK")
</pallas_src>

<mosaic_0001>
module attributes {stable_mosaic.version = 11 : i64} {
  func.func @sentiment_gru_kernel(%arg0: i32, %arg1: memref<16x8x128xbf16, #tpu.memory_space<vmem>>, %arg2: memref<128x384xbf16, #tpu.memory_space<vmem>>, %arg3: memref<128x384xbf16, #tpu.memory_space<vmem>>, %arg4: memref<1x384xf32, #tpu.memory_space<vmem>>, %arg5: memref<1x128xf32, #tpu.memory_space<vmem>>, %arg6: memref<128x128xf32, #tpu.memory_space<vmem>>, %arg7: memref<1x128xf32, #tpu.memory_space<vmem>>, %arg8: memref<8x128xf32, #tpu.memory_space<vmem>>, %arg9: memref<128x384xf32, #tpu.memory_space<vmem>>) attributes {dimension_semantics = [#tpu.dimension_semantics<parallel>], iteration_bounds = array<i64: 2>, scalar_prefetch = 0 : i64, scratch_operands = 1 : i64, tpu.core_type = #tpu.core_type<tc>, window_params = [{transform_indices = @transform_0, window_bounds = array<i64: 16, 8, 128>}, {pipeline_mode = #tpu.pipeline_mode<synchronous>, transform_indices = @transform_1, window_bounds = array<i64: 128, 384>}, {pipeline_mode = #tpu.pipeline_mode<synchronous>, transform_indices = @transform_2, window_bounds = array<i64: 128, 384>}, {pipeline_mode = #tpu.pipeline_mode<synchronous>, transform_indices = @transform_3, window_bounds = array<i64: 1, 384>}, {pipeline_mode = #tpu.pipeline_mode<synchronous>, transform_indices = @transform_4, window_bounds = array<i64: 1, 128>}, {pipeline_mode = #tpu.pipeline_mode<synchronous>, transform_indices = @transform_5, window_bounds = array<i64: 128, 128>}, {pipeline_mode = #tpu.pipeline_mode<synchronous>, transform_indices = @transform_6, window_bounds = array<i64: 1, 128>}, {transform_indices = @transform_7, window_bounds = array<i64: 8, 128>}]} {
    %c0 = arith.constant 0 : index
    %c0_0 = arith.constant 0 : index
    %c0_1 = arith.constant 0 : index
    %0 = vector.load %arg1[%c0, %c0_0, %c0_1] : memref<16x8x128xbf16, #tpu.memory_space<vmem>>, vector<16x8x128xbf16>
    %1 = vector.shape_cast %0 : vector<16x8x128xbf16> to vector<128x128xbf16>
    %c0_2 = arith.constant 0 : index
    %c0_3 = arith.constant 0 : index
    %2 = vector.load %arg2[%c0_2, %c0_3] : memref<128x384xbf16, #tpu.memory_space<vmem>>, vector<128x384xbf16>
    %cst = arith.constant dense<0.000000e+00> : vector<128x384xf32>
    %3 = tpu.matmul %1, %2, %cst {dimension_numbers = #tpu.dot_dimension_numbers<[1], [0], [0], [1], [0, 0, 1, 1], [], []>} : vector<128x128xbf16>, vector<128x384xbf16>, vector<128x384xf32> -> vector<128x384xf32>
    %c0_4 = arith.constant 0 : index
    %c0_5 = arith.constant 0 : index
    %4 = vector.load %arg4[%c0_4, %c0_5] : memref<1x384xf32, #tpu.memory_space<vmem>>, vector<1x384xf32>
    %5 = vector.broadcast %4 : vector<1x384xf32> to vector<128x384xf32>
    %6 = arith.addf %3, %5 : vector<128x384xf32>
    %c0_6 = arith.constant 0 : index
    %c0_7 = arith.constant 0 : index
    %7 = vector.load %arg9[%c0_6, %c0_7] : memref<128x384xf32, #tpu.memory_space<vmem>>, vector<128x384xf32>
    tpu.vector_store %arg9[%c0_6, %c0_7], %6 {strides = array<i32>} : memref<128x384xf32, #tpu.memory_space<vmem>>, vector<128x384xf32>,
    %c0_8 = arith.constant 0 : index
    %c0_9 = arith.constant 0 : index
    %8 = vector.load %arg3[%c0_8, %c0_9] : memref<128x384xbf16, #tpu.memory_space<vmem>>, vector<128x384xbf16>
    %c0_10 = arith.constant 0 : index
    %c0_11 = arith.constant 0 : index
    %9 = vector.load %arg5[%c0_10, %c0_11] : memref<1x128xf32, #tpu.memory_space<vmem>>, vector<1x128xf32>
    %10 = vector.shape_cast %9 : vector<1x128xf32> to vector<1x128xf32>
    %11 = vector.broadcast %10 : vector<1x128xf32> to vector<8x128xf32>
    %cst_12 = arith.constant 0.000000e+00 : f32
    %12 = vector.broadcast %cst_12 : f32 to vector<8x128xf32>
    %c0_i32 = arith.constant 0 : i32
    %c8_i32 = arith.constant 8 : i32
    %13 = arith.muli %c0_i32, %c8_i32 : i32
    %14 = tpu.assume_multiple %13, 8 : i32
    %15 = arith.index_cast %14 : i32 to index
    %c0_13 = arith.constant 0 : index
    %16 = vector.load %arg9[%15, %c0_13] : memref<128x384xf32, #tpu.memory_space<vmem>>, vector<8x384xf32>
    %17 = arith.truncf %12 : vector<8x128xf32> to vector<8x128xbf16>
    %cst_14 = arith.constant dense<0.000000e+00> : vector<8x384xf32>
    %18 = tpu.matmul %17, %8, %cst_14 {dimension_numbers = #tpu.dot_dimension_numbers<[1], [0], [0], [1], [0, 0, 1, 1], [], []>} : vector<8x128xbf16>, vector<128x384xbf16>, vector<8x384xf32> -> vector<8x384xf32>
    %19 = vector.extract_strided_slice %16 {offsets = [0, 0], sizes = [8, 128], strides = [1, 1]} : vector<8x384xf32> to vector<8x128xf32>
    %20 = vector.extract_strided_slice %18 {offsets = [0, 0], sizes = [8, 128], strides = [1, 1]} : vector<8x384xf32> to vector<8x128xf32>
    %21 = arith.addf %19, %20 : vector<8x128xf32>
    %22 = arith.negf %21 : vector<8x128xf32>
    %23 = math.exp %22 : vector<8x128xf32>
    %cst_15 = arith.constant 1.000000e+00 : f32
    %24 = vector.broadcast %cst_15 : f32 to vector<8x128xf32>
    %25 = arith.addf %24, %23 : vector<8x128xf32>
    %26 = arith.divf %24, %25 : vector<8x128xf32>
    %27 = vector.extract_strided_slice %16 {offsets = [0, 128], sizes = [8, 128], strides = [1, 1]} : vector<8x384xf32> to vector<8x128xf32>
    %28 = vector.extract_strided_slice %18 {offsets = [0, 128], sizes = [8, 128], strides = [1, 1]} : vector<8x384xf32> to vector<8x128xf32>
    %29 = arith.addf %27, %28 : vector<8x128xf32>
    %30 = arith.negf %29 : vector<8x128xf32>
    %31 = math.exp %30 : vector<8x128xf32>
    %cst_16 = arith.constant 1.000000e+00 : f32
    %32 = vector.broadcast %cst_16 : f32 to vector<8x128xf32>
    %33 = arith.addf %32, %31 : vector<8x128xf32>
    %34 = arith.divf %32, %33 : vector<8x128xf32>
    %35 = vector.extract_strided_slice %16 {offsets = [0, 256], sizes = [8, 128], strides = [1, 1]} : vector<8x384xf32> to vector<8x128xf32>
    %36 = vector.extract_strided_slice %18 {offsets = [0, 256], sizes = [8, 128], strides = [1, 1]} : vector<8x384xf32> to vector<8x128xf32>
    %37 = arith.addf %36, %11 : vector<8x128xf32>
    %38 = arith.mulf %26, %37 : vector<8x128xf32>
    %39 = arith.addf %35, %38 : vector<8x128xf32>
    %40 = math.tanh %39 : vector<8x128xf32>
    %cst_17 = arith.constant 1.000000e+00 : f32
    %41 = vector.broadcast %cst_17 : f32 to vector<8x128xf32>
    %42 = arith.subf %41, %34 : vector<8x128xf32>
    %43 = arith.mulf %42, %40 : vector<8x128xf32>
    %44 = arith.mulf %34, %12 : vector<8x128xf32>
    %45 = arith.addf %43, %44 : vector<8x128xf32>
    %c1_i32 = arith.constant 1 : i32
    %c8_i32_18 = arith.constant 8 : i32
    %46 = arith.muli %c1_i32, %c8_i32_18 : i32
    %47 = tpu.assume_multiple %46, 8 : i32
    %48 = arith.index_cast %47 : i32 to index
    %c0_19 = arith.constant 0 : index
    %49 = vector.load %arg9[%48, %c0_19] : memref<128x384xf32, #tpu.memory_space<vmem>>, vector<8x384xf32>
    %50 = arith.truncf %45 : vector<8x128xf32> to vector<8x128xbf16>
    %cst_20 = arith.constant dense<0.000000e+00> : vector<8x384xf32>
    %51 = tpu.matmul %50, %8, %cst_20 {dimension_numbers = #tpu.dot_dimension_numbers<[1], [0], [0], [1], [0, 0, 1, 1], [], []>} : vector<8x128xbf16>, vector<128x384xbf16>, vector<8x384xf32> -> vector<8x384xf32>
    %52 = vector.extract_strided_slice %49 {offsets = [0, 0], sizes = [8, 128], strides = [1, 1]} : vector<8x384xf32> to vector<8x128xf32>
    %53 = vector.extract_strided_slice %51 {offsets = [0, 0], sizes = [8, 128], strides = [1, 1]} : vector<8x384xf32> to vector<8x128xf32>
    %54 = arith.addf %52, %53 : vector<8x128xf32>
    %55 = arith.negf %54 : vector<8x128xf32>
    %56 = math.exp %55 : vector<8x128xf32>
    %cst_21 = arith.constant 1.000000e+00 : f32
    %57 = vector.broadcast %cst_21 : f32 to vector<8x128xf32>
    %58 = arith.addf %57, %56 : vector<8x128xf32>
    %59 = arith.divf %57, %58 : vector<8x128xf32>
    %60 = vector.extract_strided_slice %49 {offsets = [0, 128], sizes = [8, 128], strides = [1, 1]} : vector<8x384xf32> to vector<8x128xf32>
    %61 = vector.extract_strided_slice %51 {offsets = [0, 128], sizes = [8, 128], strides = [1, 1]} : vector<8x384xf32> to vector<8x128xf32>
    %62 = arith.addf %60, %61 : vector<8x128xf32>
    %63 = arith.negf %62 : vector<8x128xf32>
    %64 = math.exp %63 : vector<8x128xf32>
    %cst_22 = arith.constant 1.000000e+00 : f32
    %65 = vector.broadcast %cst_22 : f32 to vector<8x128xf32>
    %66 = arith.addf %65, %64 : vector<8x128xf32>
    %67 = arith.divf %65, %66 : vector<8x128xf32>
    %68 = vector.extract_strided_slice %49 {offsets = [0, 256], sizes = [8, 128], strides = [1, 1]} : vector<8x384xf32> to vector<8x128xf32>
    %69 = vector.extract_strided_slice %51 {offsets = [0, 256], sizes = [8, 128], strides = [1, 1]} : vector<8x384xf32> to vector<8x128xf32>
    %70 = arith.addf %69, %11 : vector<8x128xf32>
    %71 = arith.mulf %59, %70 : vector<8x128xf32>
    %72 = arith.addf %68, %71 : vector<8x128xf32>
    %73 = math.tanh %72 : vector<8x128xf32>
    %cst_23 = arith.constant 1.000000e+00 : f32
    %74 = vector.broadcast %cst_23 : f32 to vector<8x128xf32>
    %75 = arith.subf %74, %67 : vector<8x128xf32>
    %76 = arith.mulf %75, %73 : vector<8x128xf32>
    %77 = arith.mulf %67, %45 : vector<8x128xf32>
    %78 = arith.addf %76, %77 : vector<8x128xf32>
    %c2_i32 = arith.constant 2 : i32
    %c8_i32_24 = arith.constant 8 : i32
    %79 = arith.muli %c2_i32, %c8_i32_24 : i32
    %80 = tpu.assume_multiple %79, 8 : i32
    %81 = arith.index_cast %80 : i32 to index
    %c0_25 = arith.constant 0 : index
    %82 = vector.load %arg9[%81, %c0_25] : memref<128x384xf32, #tpu.memory_space<vmem>>, vector<8x384xf32>
    %83 = arith.truncf %78 : vector<8x128xf32> to vector<8x128xbf16>
    %cst_26 = arith.constant dense<0.000000e+00> : vector<8x384xf32>
    %84 = tpu.matmul %83, %8, %cst_26 {dimension_numbers = #tpu.dot_dimension_numbers<[1], [0], [0], [1], [0, 0, 1, 1], [], []>} : vector<8x128xbf16>, vector<128x384xbf16>, vector<8x384xf32> -> vector<8x384xf32>
    %85 = vector.extract_strided_slice %82 {offsets = [0, 0], sizes = [8, 128], strides = [1, 1]} : vector<8x384xf32> to vector<8x128xf32>
    %86 = vector.extract_strided_slice %84 {offsets = [0, 0], sizes = [8, 128], strides = [1, 1]} : vector<8x384xf32> to vector<8x128xf32>
    %87 = arith.addf %85, %86 : vector<8x128xf32>
    %88 = arith.negf %87 : vector<8x128xf32>
    %89 = math.exp %88 : vector<8x128xf32>
    %cst_27 = arith.constant 1.000000e+00 : f32
    %90 = vector.broadcast %cst_27 : f32 to vector<8x128xf32>
    %91 = arith.addf %90, %89 : vector<8x128xf32>
    %92 = arith.divf %90, %91 : vector<8x128xf32>
    %93 = vector.extract_strided_slice %82 {offsets = [0, 128], sizes = [8, 128], strides = [1, 1]} : vector<8x384xf32> to vector<8x128xf32>
    %94 = vector.extract_strided_slice %84 {offsets = [0, 128], sizes = [8, 128], strides = [1, 1]} : vector<8x384xf32> to vector<8x128xf32>
    %95 = arith.addf %93, %94 : vector<8x128xf32>
    %96 = arith.negf %95 : vector<8x128xf32>
    %97 = math.exp %96 : vector<8x128xf32>
    %cst_28 = arith.constant 1.000000e+00 : f32
    %98 = vector.broadcast %cst_28 : f32 to vector<8x128xf32>
    %99 = arith.addf %98, %97 : vector<8x128xf32>
    %100 = arith.divf %98, %99 : vector<8x128xf32>
    %101 = vector.extract_strided_slice %82 {offsets = [0, 256], sizes = [8, 128], strides = [1, 1]} : vector<8x384xf32> to vector<8x128xf32>
    %102 = vector.extract_strided_slice %84 {offsets = [0, 256], sizes = [8, 128], strides = [1, 1]} : vector<8x384xf32> to vector<8x128xf32>
    %103 = arith.addf %102, %11 : vector<8x128xf32>
    %104 = arith.mulf %92, %103 : vector<8x128xf32>
    %105 = arith.addf %101, %104 : vector<8x128xf32>
    %106 = math.tanh %105 : vector<8x128xf32>
    %cst_29 = arith.constant 1.000000e+00 : f32
    %107 = vector.broadcast %cst_29 : f32 to vector<8x128xf32>
    %108 = arith.subf %107, %100 : vector<8x128xf32>
    %109 = arith.mulf %108, %106 : vector<8x128xf32>
    %110 = arith.mulf %100, %78 : vector<8x128xf32>
    %111 = arith.addf %109, %110 : vector<8x128xf32>
    %c3_i32 = arith.constant 3 : i32
    %c8_i32_30 = arith.constant 8 : i32
    %112 = arith.muli %c3_i32, %c8_i32_30 : i32
    %113 = tpu.assume_multiple %112, 8 : i32
    %114 = arith.index_cast %113 : i32 to index
    %c0_31 = arith.constant 0 : index
    %115 = vector.load %arg9[%114, %c0_31] : memref<128x384xf32, #tpu.memory_space<vmem>>, vector<8x384xf32>
    %116 = arith.truncf %111 : vector<8x128xf32> to vector<8x128xbf16>
    %cst_32 = arith.constant dense<0.000000e+00> : vector<8x384xf32>
    %117 = tpu.matmul %116, %8, %cst_32 {dimension_numbers = #tpu.dot_dimension_numbers<[1], [0], [0], [1], [0, 0, 1, 1], [], []>} : vector<8x128xbf16>, vector<128x384xbf16>, vector<8x384xf32> -> vector<8x384xf32>
    %118 = vector.extract_strided_slice %115 {offsets = [0, 0], sizes = [8, 128], strides = [1, 1]} : vector<8x384xf32> to vector<8x128xf32>
    %119 = vector.extract_strided_slice %117 {offsets = [0, 0], sizes = [8, 128], strides = [1, 1]} : vector<8x384xf32> to vector<8x128xf32>
    %120 = arith.addf %118, %119 : vector<8x128xf32>
    %121 = arith.negf %120 : vector<8x128xf32>
    %122 = math.exp %121 : vector<8x128xf32>
    %cst_33 = arith.constant 1.000000e+00 : f32
    %123 = vector.broadcast %cst_33 : f32 to vector<8x128xf32>
    %124 = arith.addf %123, %122 : vector<8x128xf32>
    %125 = arith.divf %123, %124 : vector<8x128xf32>
    %126 = vector.extract_strided_slice %115 {offsets = [0, 128], sizes = [8, 128], strides = [1, 1]} : vector<8x384xf32> to vector<8x128xf32>
    %127 = vector.extract_strided_slice %117 {offsets = [0, 128], sizes = [8, 128], strides = [1, 1]} : vector<8x384xf32> to vector<8x128xf32>
    %128 = arith.addf %126, %127 : vector<8x128xf32>
    %129 = arith.negf %128 : vector<8x128xf32>
    %130 = math.exp %129 : vector<8x128xf32>
    %cst_34 = arith.constant 1.000000e+00 : f32
    %131 = vector.broadcast %cst_34 : f32 to vector<8x128xf32>
    %132 = arith.addf %131, %130 : vector<8x128xf32>
    %133 = arith.divf %131, %132 : vector<8x128xf32>
    %134 = vector.extract_strided_slice %115 {offsets = [0, 256], sizes = [8, 128], strides = [1, 1]} : vector<8x384xf32> to vector<8x128xf32>
    %135 = vector.extract_strided_slice %117 {offsets = [0, 256], sizes = [8, 128], strides = [1, 1]} : vector<8x384xf32> to vector<8x128xf32>
    %136 = arith.addf %135, %11 : vector<8x128xf32>
    %137 = arith.mulf %125, %136 : vector<8x128xf32>
    %138 = arith.addf %134, %137 : vector<8x128xf32>
    %139 = math.tanh %138 : vector<8x128xf32>
    %cst_35 = arith.constant 1.000000e+00 : f32
    %140 = vector.broadcast %cst_35 : f32 to vector<8x128xf32>
    %141 = arith.subf %140, %133 : vector<8x128xf32>
    %142 = arith.mulf %141, %139 : vector<8x128xf32>
    %143 = arith.mulf %133, %111 : vector<8x128xf32>
    %144 = arith.addf %142, %143 : vector<8x128xf32>
    %c4_i32 = arith.constant 4 : i32
    %c8_i32_36 = arith.constant 8 : i32
    %145 = arith.muli %c4_i32, %c8_i32_36 : i32
    %146 = tpu.assume_multiple %145, 8 : i32
    %147 = arith.index_cast %146 : i32 to index
    %c0_37 = arith.constant 0 : index
    %148 = vector.load %arg9[%147, %c0_37] : memref<128x384xf32, #tpu.memory_space<vmem>>, vector<8x384xf32>
    %149 = arith.truncf %144 : vector<8x128xf32> to vector<8x128xbf16>
    %cst_38 = arith.constant dense<0.000000e+00> : vector<8x384xf32>
    %150 = tpu.matmul %149, %8, %cst_38 {dimension_numbers = #tpu.dot_dimension_numbers<[1], [0], [0], [1], [0, 0, 1, 1], [], []>} : vector<8x128xbf16>, vector<128x384xbf16>, vector<8x384xf32> -> vector<8x384xf32>
    %151 = vector.extract_strided_slice %148 {offsets = [0, 0], sizes = [8, 128], strides = [1, 1]} : vector<8x384xf32> to vector<8x128xf32>
    %152 = vector.extract_strided_slice %150 {offsets = [0, 0], sizes = [8, 128], strides = [1, 1]} : vector<8x384xf32> to vector<8x128xf32>
    %153 = arith.addf %151, %152 : vector<8x128xf32>
    %154 = arith.negf %153 : vector<8x128xf32>
    %155 = math.exp %154 : vector<8x128xf32>
    %cst_39 = arith.constant 1.000000e+00 : f32
    %156 = vector.broadcast %cst_39 : f32 to vector<8x128xf32>
    %157 = arith.addf %156, %155 : vector<8x128xf32>
    %158 = arith.divf %156, %157 : vector<8x128xf32>
    %159 = vector.extract_strided_slice %148 {offsets = [0, 128], sizes = [8, 128], strides = [1, 1]} : vector<8x384xf32> to vector<8x128xf32>
    %160 = vector.extract_strided_slice %150 {offsets = [0, 128], sizes = [8, 128], strides = [1, 1]} : vector<8x384xf32> to vector<8x128xf32>
    %161 = arith.addf %159, %160 : vector<8x128xf32>
    %162 = arith.negf %161 : vector<8x128xf32>
    %163 = math.exp %162 : vector<8x128xf32>
    %cst_40 = arith.constant 1.000000e+00 : f32
    %164 = vector.broadcast %cst_40 : f32 to vector<8x128xf32>
    %165 = arith.addf %164, %163 : vector<8x128xf32>
    %166 = arith.divf %164, %165 : vector<8x128xf32>
    %167 = vector.extract_strided_slice %148 {offsets = [0, 256], sizes = [8, 128], strides = [1, 1]} : vector<8x384xf32> to vector<8x128xf32>
    %168 = vector.extract_strided_slice %150 {offsets = [0, 256], sizes = [8, 128], strides = [1, 1]} : vector<8x384xf32> to vector<8x128xf32>
    %169 = arith.addf %168, %11 : vector<8x128xf32>
    %170 = arith.mulf %158, %169 : vector<8x128xf32>
    %171 = arith.addf %167, %170 : vector<8x128xf32>
    %172 = math.tanh %171 : vector<8x128xf32>
    %cst_41 = arith.constant 1.000000e+00 : f32
    %173 = vector.broadcast %cst_41 : f32 to vector<8x128xf32>
    %174 = arith.subf %173, %166 : vector<8x128xf32>
    %175 = arith.mulf %174, %172 : vector<8x128xf32>
    %176 = arith.mulf %166, %144 : vector<8x128xf32>
    %177 = arith.addf %175, %176 : vector<8x128xf32>
    %c5_i32 = arith.constant 5 : i32
    %c8_i32_42 = arith.constant 8 : i32
    %178 = arith.muli %c5_i32, %c8_i32_42 : i32
    %179 = tpu.assume_multiple %178, 8 : i32
    %180 = arith.index_cast %179 : i32 to index
    %c0_43 = arith.constant 0 : index
    %181 = vector.load %arg9[%180, %c0_43] : memref<128x384xf32, #tpu.memory_space<vmem>>, vector<8x384xf32>
    %182 = arith.truncf %177 : vector<8x128xf32> to vector<8x128xbf16>
    %cst_44 = arith.constant dense<0.000000e+00> : vector<8x384xf32>
    %183 = tpu.matmul %182, %8, %cst_44 {dimension_numbers = #tpu.dot_dimension_numbers<[1], [0], [0], [1], [0, 0, 1, 1], [], []>} : vector<8x128xbf16>, vector<128x384xbf16>, vector<8x384xf32> -> vector<8x384xf32>
    %184 = vector.extract_strided_slice %181 {offsets = [0, 0], sizes = [8, 128], strides = [1, 1]} : vector<8x384xf32> to vector<8x128xf32>
    %185 = vector.extract_strided_slice %183 {offsets = [0, 0], sizes = [8, 128], strides = [1, 1]} : vector<8x384xf32> to vector<8x128xf32>
    %186 = arith.addf %184, %185 : vector<8x128xf32>
    %187 = arith.negf %186 : vector<8x128xf32>
    %188 = math.exp %187 : vector<8x128xf32>
    %cst_45 = arith.constant 1.000000e+00 : f32
    %189 = vector.broadcast %cst_45 : f32 to vector<8x128xf32>
    %190 = arith.addf %189, %188 : vector<8x128xf32>
    %191 = arith.divf %189, %190 : vector<8x128xf32>
    %192 = vector.extract_strided_slice %181 {offsets = [0, 128], sizes = [8, 128], strides = [1, 1]} : vector<8x384xf32> to vector<8x128xf32>
    %193 = vector.extract_strided_slice %183 {offsets = [0, 128], sizes = [8, 128], strides = [1, 1]} : vector<8x384xf32> to vector<8x128xf32>
    %194 = arith.addf %192, %193 : vector<8x128xf32>
    %195 = arith.negf %194 : vector<8x128xf32>
    %196 = math.exp %195 : vector<8x128xf32>
    %cst_46 = arith.constant 1.000000e+00 : f32
    %197 = vector.broadcast %cst_46 : f32 to vector<8x128xf32>
    %198 = arith.addf %197, %196 : vector<8x128xf32>
    %199 = arith.divf %197, %198 : vector<8x128xf32>
    %200 = vector.extract_strided_slice %181 {offsets = [0, 256], sizes = [8, 128], strides = [1, 1]} : vector<8x384xf32> to vector<8x128xf32>
    %201 = vector.extract_strided_slice %183 {offsets = [0, 256], sizes = [8, 128], strides = [1, 1]} : vector<8x384xf32> to vector<8x128xf32>
    %202 = arith.addf %201, %11 : vector<8x128xf32>
    %203 = arith.mulf %191, %202 : vector<8x128xf32>
    %204 = arith.addf %200, %203 : vector<8x128xf32>
    %205 = math.tanh %204 : vector<8x128xf32>
    %cst_47 = arith.constant 1.000000e+00 : f32
    %206 = vector.broadcast %cst_47 : f32 to vector<8x128xf32>
    %207 = arith.subf %206, %199 : vector<8x128xf32>
    %208 = arith.mulf %207, %205 : vector<8x128xf32>
    %209 = arith.mulf %199, %177 : vector<8x128xf32>
    %210 = arith.addf %208, %209 : vector<8x128xf32>
    %c6_i32 = arith.constant 6 : i32
    %c8_i32_48 = arith.constant 8 : i32
    %211 = arith.muli %c6_i32, %c8_i32_48 : i32
    %212 = tpu.assume_multiple %211, 8 : i32
    %213 = arith.index_cast %212 : i32 to index
    %c0_49 = arith.constant 0 : index
    %214 = vector.load %arg9[%213, %c0_49] : memref<128x384xf32, #tpu.memory_space<vmem>>, vector<8x384xf32>
    %215 = arith.truncf %210 : vector<8x128xf32> to vector<8x128xbf16>
    %cst_50 = arith.constant dense<0.000000e+00> : vector<8x384xf32>
    %216 = tpu.matmul %215, %8, %cst_50 {dimension_numbers = #tpu.dot_dimension_numbers<[1], [0], [0], [1], [0, 0, 1, 1], [], []>} : vector<8x128xbf16>, vector<128x384xbf16>, vector<8x384xf32> -> vector<8x384xf32>
    %217 = vector.extract_strided_slice %214 {offsets = [0, 0], sizes = [8, 128], strides = [1, 1]} : vector<8x384xf32> to vector<8x128xf32>
    %218 = vector.extract_strided_slice %216 {offsets = [0, 0], sizes = [8, 128], strides = [1, 1]} : vector<8x384xf32> to vector<8x128xf32>
    %219 = arith.addf %217, %218 : vector<8x128xf32>
    %220 = arith.negf %219 : vector<8x128xf32>
    %221 = math.exp %220 : vector<8x128xf32>
    %cst_51 = arith.constant 1.000000e+00 : f32
    %222 = vector.broadcast %cst_51 : f32 to vector<8x128xf32>
    %223 = arith.addf %222, %221 : vector<8x128xf32>
    %224 = arith.divf %222, %223 : vector<8x128xf32>
    %225 = vector.extract_strided_slice %214 {offsets = [0, 128], sizes = [8, 128], strides = [1, 1]} : vector<8x384xf32> to vector<8x128xf32>
    %226 = vector.extract_strided_slice %216 {offsets = [0, 128], sizes = [8, 128], strides = [1, 1]} : vector<8x384xf32> to vector<8x128xf32>
    %227 = arith.addf %225, %226 : vector<8x128xf32>
    %228 = arith.negf %227 : vector<8x128xf32>
    %229 = math.exp %228 : vector<8x128xf32>
    %cst_52 = arith.constant 1.000000e+00 : f32
    %230 = vector.broadcast %cst_52 : f32 to vector<8x128xf32>
    %231 = arith.addf %230, %229 : vector<8x128xf32>
    %232 = arith.divf %230, %231 : vector<8x128xf32>
    %233 = vector.extract_strided_slice %214 {offsets = [0, 256], sizes = [8, 128], strides = [1, 1]} : vector<8x384xf32> to vector<8x128xf32>
    %234 = vector.extract_strided_slice %216 {offsets = [0, 256], sizes = [8, 128], strides = [1, 1]} : vector<8x384xf32> to vector<8x128xf32>
    %235 = arith.addf %234, %11 : vector<8x128xf32>
    %236 = arith.mulf %224, %235 : vector<8x128xf32>
    %237 = arith.addf %233, %236 : vector<8x128xf32>
    %238 = math.tanh %237 : vector<8x128xf32>
    %cst_53 = arith.constant 1.000000e+00 : f32
    %239 = vector.broadcast %cst_53 : f32 to vector<8x128xf32>
    %240 = arith.subf %239, %232 : vector<8x128xf32>
    %241 = arith.mulf %240, %238 : vector<8x128xf32>
    %242 = arith.mulf %232, %210 : vector<8x128xf32>
    %243 = arith.addf %241, %242 : vector<8x128xf32>
    %c7_i32 = arith.constant 7 : i32
    %c8_i32_54 = arith.constant 8 : i32
    %244 = arith.muli %c7_i32, %c8_i32_54 : i32
    %245 = tpu.assume_multiple %244, 8 : i32
    %246 = arith.index_cast %245 : i32 to index
    %c0_55 = arith.constant 0 : index
    %247 = vector.load %arg9[%246, %c0_55] : memref<128x384xf32, #tpu.memory_space<vmem>>, vector<8x384xf32>
    %248 = arith.truncf %243 : vector<8x128xf32> to vector<8x128xbf16>
    %cst_56 = arith.constant dense<0.000000e+00> : vector<8x384xf32>
    %249 = tpu.matmul %248, %8, %cst_56 {dimension_numbers = #tpu.dot_dimension_numbers<[1], [0], [0], [1], [0, 0, 1, 1], [], []>} : vector<8x128xbf16>, vector<128x384xbf16>, vector<8x384xf32> -> vector<8x384xf32>
    %250 = vector.extract_strided_slice %247 {offsets = [0, 0], sizes = [8, 128], strides = [1, 1]} : vector<8x384xf32> to vector<8x128xf32>
    %251 = vector.extract_strided_slice %249 {offsets = [0, 0], sizes = [8, 128], strides = [1, 1]} : vector<8x384xf32> to vector<8x128xf32>
    %252 = arith.addf %250, %251 : vector<8x128xf32>
    %253 = arith.negf %252 : vector<8x128xf32>
    %254 = math.exp %253 : vector<8x128xf32>
    %cst_57 = arith.constant 1.000000e+00 : f32
    %255 = vector.broadcast %cst_57 : f32 to vector<8x128xf32>
    %256 = arith.addf %255, %254 : vector<8x128xf32>
    %257 = arith.divf %255, %256 : vector<8x128xf32>
    %258 = vector.extract_strided_slice %247 {offsets = [0, 128], sizes = [8, 128], strides = [1, 1]} : vector<8x384xf32> to vector<8x128xf32>
    %259 = vector.extract_strided_slice %249 {offsets = [0, 128], sizes = [8, 128], strides = [1, 1]} : vector<8x384xf32> to vector<8x128xf32>
    %260 = arith.addf %258, %259 : vector<8x128xf32>
    %261 = arith.negf %260 : vector<8x128xf32>
    %262 = math.exp %261 : vector<8x128xf32>
    %cst_58 = arith.constant 1.000000e+00 : f32
    %263 = vector.broadcast %cst_58 : f32 to vector<8x128xf32>
    %264 = arith.addf %263, %262 : vector<8x128xf32>
    %265 = arith.divf %263, %264 : vector<8x128xf32>
    %266 = vector.extract_strided_slice %247 {offsets = [0, 256], sizes = [8, 128], strides = [1, 1]} : vector<8x384xf32> to vector<8x128xf32>
    %267 = vector.extract_strided_slice %249 {offsets = [0, 256], sizes = [8, 128], strides = [1, 1]} : vector<8x384xf32> to vector<8x128xf32>
    %268 = arith.addf %267, %11 : vector<8x128xf32>
    %269 = arith.mulf %257, %268 : vector<8x128xf32>
    %270 = arith.addf %266, %269 : vector<8x128xf32>
    %271 = math.tanh %270 : vector<8x128xf32>
    %cst_59 = arith.constant 1.000000e+00 : f32
    %272 = vector.broadcast %cst_59 : f32 to vector<8x128xf32>
    %273 = arith.subf %272, %265 : vector<8x128xf32>
    %274 = arith.mulf %273, %271 : vector<8x128xf32>
    %275 = arith.mulf %265, %243 : vector<8x128xf32>
    %276 = arith.addf %274, %275 : vector<8x128xf32>
    %c8_i32_60 = arith.constant 8 : i32
    %c8_i32_61 = arith.constant 8 : i32
    %277 = arith.muli %c8_i32_60, %c8_i32_61 : i32
    %278 = tpu.assume_multiple %277, 8 : i32
    %279 = arith.index_cast %278 : i32 to index
    %c0_62 = arith.constant 0 : index
    %280 = vector.load %arg9[%279, %c0_62] : memref<128x384xf32, #tpu.memory_space<vmem>>, vector<8x384xf32>
    %281 = arith.truncf %276 : vector<8x128xf32> to vector<8x128xbf16>
    %cst_63 = arith.constant dense<0.000000e+00> : vector<8x384xf32>
    %282 = tpu.matmul %281, %8, %cst_63 {dimension_numbers = #tpu.dot_dimension_numbers<[1], [0], [0], [1], [0, 0, 1, 1], [], []>} : vector<8x128xbf16>, vector<128x384xbf16>, vector<8x384xf32> -> vector<8x384xf32>
    %283 = vector.extract_strided_slice %280 {offsets = [0, 0], sizes = [8, 128], strides = [1, 1]} : vector<8x384xf32> to vector<8x128xf32>
    %284 = vector.extract_strided_slice %282 {offsets = [0, 0], sizes = [8, 128], strides = [1, 1]} : vector<8x384xf32> to vector<8x128xf32>
    %285 = arith.addf %283, %284 : vector<8x128xf32>
    %286 = arith.negf %285 : vector<8x128xf32>
    %287 = math.exp %286 : vector<8x128xf32>
    %cst_64 = arith.constant 1.000000e+00 : f32
    %288 = vector.broadcast %cst_64 : f32 to vector<8x128xf32>
    %289 = arith.addf %288, %287 : vector<8x128xf32>
    %290 = arith.divf %288, %289 : vector<8x128xf32>
    %291 = vector.extract_strided_slice %280 {offsets = [0, 128], sizes = [8, 128], strides = [1, 1]} : vector<8x384xf32> to vector<8x128xf32>
    %292 = vector.extract_strided_slice %282 {offsets = [0, 128], sizes = [8, 128], strides = [1, 1]} : vector<8x384xf32> to vector<8x128xf32>
    %293 = arith.addf %291, %292 : vector<8x128xf32>
    %294 = arith.negf %293 : vector<8x128xf32>
    %295 = math.exp %294 : vector<8x128xf32>
    %cst_65 = arith.constant 1.000000e+00 : f32
    %296 = vector.broadcast %cst_65 : f32 to vector<8x128xf32>
    %297 = arith.addf %296, %295 : vector<8x128xf32>
    %298 = arith.divf %296, %297 : vector<8x128xf32>
    %299 = vector.extract_strided_slice %280 {offsets = [0, 256], sizes = [8, 128], strides = [1, 1]} : vector<8x384xf32> to vector<8x128xf32>
    %300 = vector.extract_strided_slice %282 {offsets = [0, 256], sizes = [8, 128], strides = [1, 1]} : vector<8x384xf32> to vector<8x128xf32>
    %301 = arith.addf %300, %11 : vector<8x128xf32>
    %302 = arith.mulf %290, %301 : vector<8x128xf32>
    %303 = arith.addf %299, %302 : vector<8x128xf32>
    %304 = math.tanh %303 : vector<8x128xf32>
    %cst_66 = arith.constant 1.000000e+00 : f32
    %305 = vector.broadcast %cst_66 : f32 to vector<8x128xf32>
    %306 = arith.subf %305, %298 : vector<8x128xf32>
    %307 = arith.mulf %306, %304 : vector<8x128xf32>
    %308 = arith.mulf %298, %276 : vector<8x128xf32>
    %309 = arith.addf %307, %308 : vector<8x128xf32>
    %c9_i32 = arith.constant 9 : i32
    %c8_i32_67 = arith.constant 8 : i32
    %310 = arith.muli %c9_i32, %c8_i32_67 : i32
    %311 = tpu.assume_multiple %310, 8 : i32
    %312 = arith.index_cast %311 : i32 to index
    %c0_68 = arith.constant 0 : index
    %313 = vector.load %arg9[%312, %c0_68] : memref<128x384xf32, #tpu.memory_space<vmem>>, vector<8x384xf32>
    %314 = arith.truncf %309 : vector<8x128xf32> to vector<8x128xbf16>
    %cst_69 = arith.constant dense<0.000000e+00> : vector<8x384xf32>
    %315 = tpu.matmul %314, %8, %cst_69 {dimension_numbers = #tpu.dot_dimension_numbers<[1], [0], [0], [1], [0, 0, 1, 1], [], []>} : vector<8x128xbf16>, vector<128x384xbf16>, vector<8x384xf32> -> vector<8x384xf32>
    %316 = vector.extract_strided_slice %313 {offsets = [0, 0], sizes = [8, 128], strides = [1, 1]} : vector<8x384xf32> to vector<8x128xf32>
    %317 = vector.extract_strided_slice %315 {offsets = [0, 0], sizes = [8, 128], strides = [1, 1]} : vector<8x384xf32> to vector<8x128xf32>
    %318 = arith.addf %316, %317 : vector<8x128xf32>
    %319 = arith.negf %318 : vector<8x128xf32>
    %320 = math.exp %319 : vector<8x128xf32>
    %cst_70 = arith.constant 1.000000e+00 : f32
    %321 = vector.broadcast %cst_70 : f32 to vector<8x128xf32>
    %322 = arith.addf %321, %320 : vector<8x128xf32>
    %323 = arith.divf %321, %322 : vector<8x128xf32>
    %324 = vector.extract_strided_slice %313 {offsets = [0, 128], sizes = [8, 128], strides = [1, 1]} : vector<8x384xf32> to vector<8x128xf32>
    %325 = vector.extract_strided_slice %315 {offsets = [0, 128], sizes = [8, 128], strides = [1, 1]} : vector<8x384xf32> to vector<8x128xf32>
    %326 = arith.addf %324, %325 : vector<8x128xf32>
    %327 = arith.negf %326 : vector<8x128xf32>
    %328 = math.exp %327 : vector<8x128xf32>
    %cst_71 = arith.constant 1.000000e+00 : f32
    %329 = vector.broadcast %cst_71 : f32 to vector<8x128xf32>
    %330 = arith.addf %329, %328 : vector<8x128xf32>
    %331 = arith.divf %329, %330 : vector<8x128xf32>
    %332 = vector.extract_strided_slice %313 {offsets = [0, 256], sizes = [8, 128], strides = [1, 1]} : vector<8x384xf32> to vector<8x128xf32>
    %333 = vector.extract_strided_slice %315 {offsets = [0, 256], sizes = [8, 128], strides = [1, 1]} : vector<8x384xf32> to vector<8x128xf32>
    %334 = arith.addf %333, %11 : vector<8x128xf32>
    %335 = arith.mulf %323, %334 : vector<8x128xf32>
    %336 = arith.addf %332, %335 : vector<8x128xf32>
    %337 = math.tanh %336 : vector<8x128xf32>
    %cst_72 = arith.constant 1.000000e+00 : f32
    %338 = vector.broadcast %cst_72 : f32 to vector<8x128xf32>
    %339 = arith.subf %338, %331 : vector<8x128xf32>
    %340 = arith.mulf %339, %337 : vector<8x128xf32>
    %341 = arith.mulf %331, %309 : vector<8x128xf32>
    %342 = arith.addf %340, %341 : vector<8x128xf32>
    %c10_i32 = arith.constant 10 : i32
    %c8_i32_73 = arith.constant 8 : i32
    %343 = arith.muli %c10_i32, %c8_i32_73 : i32
    %344 = tpu.assume_multiple %343, 8 : i32
    %345 = arith.index_cast %344 : i32 to index
    %c0_74 = arith.constant 0 : index
    %346 = vector.load %arg9[%345, %c0_74] : memref<128x384xf32, #tpu.memory_space<vmem>>, vector<8x384xf32>
    %347 = arith.truncf %342 : vector<8x128xf32> to vector<8x128xbf16>
    %cst_75 = arith.constant dense<0.000000e+00> : vector<8x384xf32>
    %348 = tpu.matmul %347, %8, %cst_75 {dimension_numbers = #tpu.dot_dimension_numbers<[1], [0], [0], [1], [0, 0, 1, 1], [], []>} : vector<8x128xbf16>, vector<128x384xbf16>, vector<8x384xf32> -> vector<8x384xf32>
    %349 = vector.extract_strided_slice %346 {offsets = [0, 0], sizes = [8, 128], strides = [1, 1]} : vector<8x384xf32> to vector<8x128xf32>
    %350 = vector.extract_strided_slice %348 {offsets = [0, 0], sizes = [8, 128], strides = [1, 1]} : vector<8x384xf32> to vector<8x128xf32>
    %351 = arith.addf %349, %350 : vector<8x128xf32>
    %352 = arith.negf %351 : vector<8x128xf32>
    %353 = math.exp %352 : vector<8x128xf32>
    %cst_76 = arith.constant 1.000000e+00 : f32
    %354 = vector.broadcast %cst_76 : f32 to vector<8x128xf32>
    %355 = arith.addf %354, %353 : vector<8x128xf32>
    %356 = arith.divf %354, %355 : vector<8x128xf32>
    %357 = vector.extract_strided_slice %346 {offsets = [0, 128], sizes = [8, 128], strides = [1, 1]} : vector<8x384xf32> to vector<8x128xf32>
    %358 = vector.extract_strided_slice %348 {offsets = [0, 128], sizes = [8, 128], strides = [1, 1]} : vector<8x384xf32> to vector<8x128xf32>
    %359 = arith.addf %357, %358 : vector<8x128xf32>
    %360 = arith.negf %359 : vector<8x128xf32>
    %361 = math.exp %360 : vector<8x128xf32>
    %cst_77 = arith.constant 1.000000e+00 : f32
    %362 = vector.broadcast %cst_77 : f32 to vector<8x128xf32>
    %363 = arith.addf %362, %361 : vector<8x128xf32>
    %364 = arith.divf %362, %363 : vector<8x128xf32>
    %365 = vector.extract_strided_slice %346 {offsets = [0, 256], sizes = [8, 128], strides = [1, 1]} : vector<8x384xf32> to vector<8x128xf32>
    %366 = vector.extract_strided_slice %348 {offsets = [0, 256], sizes = [8, 128], strides = [1, 1]} : vector<8x384xf32> to vector<8x128xf32>
    %367 = arith.addf %366, %11 : vector<8x128xf32>
    %368 = arith.mulf %356, %367 : vector<8x128xf32>
    %369 = arith.addf %365, %368 : vector<8x128xf32>
    %370 = math.tanh %369 : vector<8x128xf32>
    %cst_78 = arith.constant 1.000000e+00 : f32
    %371 = vector.broadcast %cst_78 : f32 to vector<8x128xf32>
    %372 = arith.subf %371, %364 : vector<8x128xf32>
    %373 = arith.mulf %372, %370 : vector<8x128xf32>
    %374 = arith.mulf %364, %342 : vector<8x128xf32>
    %375 = arith.addf %373, %374 : vector<8x128xf32>
    %c11_i32 = arith.constant 11 : i32
    %c8_i32_79 = arith.constant 8 : i32
    %376 = arith.muli %c11_i32, %c8_i32_79 : i32
    %377 = tpu.assume_multiple %376, 8 : i32
    %378 = arith.index_cast %377 : i32 to index
    %c0_80 = arith.constant 0 : index
    %379 = vector.load %arg9[%378, %c0_80] : memref<128x384xf32, #tpu.memory_space<vmem>>, vector<8x384xf32>
    %380 = arith.truncf %375 : vector<8x128xf32> to vector<8x128xbf16>
    %cst_81 = arith.constant dense<0.000000e+00> : vector<8x384xf32>
    %381 = tpu.matmul %380, %8, %cst_81 {dimension_numbers = #tpu.dot_dimension_numbers<[1], [0], [0], [1], [0, 0, 1, 1], [], []>} : vector<8x128xbf16>, vector<128x384xbf16>, vector<8x384xf32> -> vector<8x384xf32>
    %382 = vector.extract_strided_slice %379 {offsets = [0, 0], sizes = [8, 128], strides = [1, 1]} : vector<8x384xf32> to vector<8x128xf32>
    %383 = vector.extract_strided_slice %381 {offsets = [0, 0], sizes = [8, 128], strides = [1, 1]} : vector<8x384xf32> to vector<8x128xf32>
    %384 = arith.addf %382, %383 : vector<8x128xf32>
    %385 = arith.negf %384 : vector<8x128xf32>
    %386 = math.exp %385 : vector<8x128xf32>
    %cst_82 = arith.constant 1.000000e+00 : f32
    %387 = vector.broadcast %cst_82 : f32 to vector<8x128xf32>
    %388 = arith.addf %387, %386 : vector<8x128xf32>
    %389 = arith.divf %387, %388 : vector<8x128xf32>
    %390 = vector.extract_strided_slice %379 {offsets = [0, 128], sizes = [8, 128], strides = [1, 1]} : vector<8x384xf32> to vector<8x128xf32>
    %391 = vector.extract_strided_slice %381 {offsets = [0, 128], sizes = [8, 128], strides = [1, 1]} : vector<8x384xf32> to vector<8x128xf32>
    %392 = arith.addf %390, %391 : vector<8x128xf32>
    %393 = arith.negf %392 : vector<8x128xf32>
    %394 = math.exp %393 : vector<8x128xf32>
    %cst_83 = arith.constant 1.000000e+00 : f32
    %395 = vector.broadcast %cst_83 : f32 to vector<8x128xf32>
    %396 = arith.addf %395, %394 : vector<8x128xf32>
    %397 = arith.divf %395, %396 : vector<8x128xf32>
    %398 = vector.extract_strided_slice %379 {offsets = [0, 256], sizes = [8, 128], strides = [1, 1]} : vector<8x384xf32> to vector<8x128xf32>
    %399 = vector.extract_strided_slice %381 {offsets = [0, 256], sizes = [8, 128], strides = [1, 1]} : vector<8x384xf32> to vector<8x128xf32>
    %400 = arith.addf %399, %11 : vector<8x128xf32>
    %401 = arith.mulf %389, %400 : vector<8x128xf32>
    %402 = arith.addf %398, %401 : vector<8x128xf32>
    %403 = math.tanh %402 : vector<8x128xf32>
    %cst_84 = arith.constant 1.000000e+00 : f32
    %404 = vector.broadcast %cst_84 : f32 to vector<8x128xf32>
    %405 = arith.subf %404, %397 : vector<8x128xf32>
    %406 = arith.mulf %405, %403 : vector<8x128xf32>
    %407 = arith.mulf %397, %375 : vector<8x128xf32>
    %408 = arith.addf %406, %407 : vector<8x128xf32>
    %c12_i32 = arith.constant 12 : i32
    %c8_i32_85 = arith.constant 8 : i32
    %409 = arith.muli %c12_i32, %c8_i32_85 : i32
    %410 = tpu.assume_multiple %409, 8 : i32
    %411 = arith.index_cast %410 : i32 to index
    %c0_86 = arith.constant 0 : index
    %412 = vector.load %arg9[%411, %c0_86] : memref<128x384xf32, #tpu.memory_space<vmem>>, vector<8x384xf32>
    %413 = arith.truncf %408 : vector<8x128xf32> to vector<8x128xbf16>
    %cst_87 = arith.constant dense<0.000000e+00> : vector<8x384xf32>
    %414 = tpu.matmul %413, %8, %cst_87 {dimension_numbers = #tpu.dot_dimension_numbers<[1], [0], [0], [1], [0, 0, 1, 1], [], []>} : vector<8x128xbf16>, vector<128x384xbf16>, vector<8x384xf32> -> vector<8x384xf32>
    %415 = vector.extract_strided_slice %412 {offsets = [0, 0], sizes = [8, 128], strides = [1, 1]} : vector<8x384xf32> to vector<8x128xf32>
    %416 = vector.extract_strided_slice %414 {offsets = [0, 0], sizes = [8, 128], strides = [1, 1]} : vector<8x384xf32> to vector<8x128xf32>
    %417 = arith.addf %415, %416 : vector<8x128xf32>
    %418 = arith.negf %417 : vector<8x128xf32>
    %419 = math.exp %418 : vector<8x128xf32>
    %cst_88 = arith.constant 1.000000e+00 : f32
    %420 = vector.broadcast %cst_88 : f32 to vector<8x128xf32>
    %421 = arith.addf %420, %419 : vector<8x128xf32>
    %422 = arith.divf %420, %421 : vector<8x128xf32>
    %423 = vector.extract_strided_slice %412 {offsets = [0, 128], sizes = [8, 128], strides = [1, 1]} : vector<8x384xf32> to vector<8x128xf32>
    %424 = vector.extract_strided_slice %414 {offsets = [0, 128], sizes = [8, 128], strides = [1, 1]} : vector<8x384xf32> to vector<8x128xf32>
    %425 = arith.addf %423, %424 : vector<8x128xf32>
    %426 = arith.negf %425 : vector<8x128xf32>
    %427 = math.exp %426 : vector<8x128xf32>
    %cst_89 = arith.constant 1.000000e+00 : f32
    %428 = vector.broadcast %cst_89 : f32 to vector<8x128xf32>
    %429 = arith.addf %428, %427 : vector<8x128xf32>
    %430 = arith.divf %428, %429 : vector<8x128xf32>
    %431 = vector.extract_strided_slice %412 {offsets = [0, 256], sizes = [8, 128], strides = [1, 1]} : vector<8x384xf32> to vector<8x128xf32>
    %432 = vector.extract_strided_slice %414 {offsets = [0, 256], sizes = [8, 128], strides = [1, 1]} : vector<8x384xf32> to vector<8x128xf32>
    %433 = arith.addf %432, %11 : vector<8x128xf32>
    %434 = arith.mulf %422, %433 : vector<8x128xf32>
    %435 = arith.addf %431, %434 : vector<8x128xf32>
    %436 = math.tanh %435 : vector<8x128xf32>
    %cst_90 = arith.constant 1.000000e+00 : f32
    %437 = vector.broadcast %cst_90 : f32 to vector<8x128xf32>
    %438 = arith.subf %437, %430 : vector<8x128xf32>
    %439 = arith.mulf %438, %436 : vector<8x128xf32>
    %440 = arith.mulf %430, %408 : vector<8x128xf32>
    %441 = arith.addf %439, %440 : vector<8x128xf32>
    %c13_i32 = arith.constant 13 : i32
    %c8_i32_91 = arith.constant 8 : i32
    %442 = arith.muli %c13_i32, %c8_i32_91 : i32
    %443 = tpu.assume_multiple %442, 8 : i32
    %444 = arith.index_cast %443 : i32 to index
    %c0_92 = arith.constant 0 : index
    %445 = vector.load %arg9[%444, %c0_92] : memref<128x384xf32, #tpu.memory_space<vmem>>, vector<8x384xf32>
    %446 = arith.truncf %441 : vector<8x128xf32> to vector<8x128xbf16>
    %cst_93 = arith.constant dense<0.000000e+00> : vector<8x384xf32>
    %447 = tpu.matmul %446, %8, %cst_93 {dimension_numbers = #tpu.dot_dimension_numbers<[1], [0], [0], [1], [0, 0, 1, 1], [], []>} : vector<8x128xbf16>, vector<128x384xbf16>, vector<8x384xf32> -> vector<8x384xf32>
    %448 = vector.extract_strided_slice %445 {offsets = [0, 0], sizes = [8, 128], strides = [1, 1]} : vector<8x384xf32> to vector<8x128xf32>
    %449 = vector.extract_strided_slice %447 {offsets = [0, 0], sizes = [8, 128], strides = [1, 1]} : vector<8x384xf32> to vector<8x128xf32>
    %450 = arith.addf %448, %449 : vector<8x128xf32>
    %451 = arith.negf %450 : vector<8x128xf32>
    %452 = math.exp %451 : vector<8x128xf32>
    %cst_94 = arith.constant 1.000000e+00 : f32
    %453 = vector.broadcast %cst_94 : f32 to vector<8x128xf32>
    %454 = arith.addf %453, %452 : vector<8x128xf32>
    %455 = arith.divf %453, %454 : vector<8x128xf32>
    %456 = vector.extract_strided_slice %445 {offsets = [0, 128], sizes = [8, 128], strides = [1, 1]} : vector<8x384xf32> to vector<8x128xf32>
    %457 = vector.extract_strided_slice %447 {offsets = [0, 128], sizes = [8, 128], strides = [1, 1]} : vector<8x384xf32> to vector<8x128xf32>
    %458 = arith.addf %456, %457 : vector<8x128xf32>
    %459 = arith.negf %458 : vector<8x128xf32>
    %460 = math.exp %459 : vector<8x128xf32>
    %cst_95 = arith.constant 1.000000e+00 : f32
    %461 = vector.broadcast %cst_95 : f32 to vector<8x128xf32>
    %462 = arith.addf %461, %460 : vector<8x128xf32>
    %463 = arith.divf %461, %462 : vector<8x128xf32>
    %464 = vector.extract_strided_slice %445 {offsets = [0, 256], sizes = [8, 128], strides = [1, 1]} : vector<8x384xf32> to vector<8x128xf32>
    %465 = vector.extract_strided_slice %447 {offsets = [0, 256], sizes = [8, 128], strides = [1, 1]} : vector<8x384xf32> to vector<8x128xf32>
    %466 = arith.addf %465, %11 : vector<8x128xf32>
    %467 = arith.mulf %455, %466 : vector<8x128xf32>
    %468 = arith.addf %464, %467 : vector<8x128xf32>
    %469 = math.tanh %468 : vector<8x128xf32>
    %cst_96 = arith.constant 1.000000e+00 : f32
    %470 = vector.broadcast %cst_96 : f32 to vector<8x128xf32>
    %471 = arith.subf %470, %463 : vector<8x128xf32>
    %472 = arith.mulf %471, %469 : vector<8x128xf32>
    %473 = arith.mulf %463, %441 : vector<8x128xf32>
    %474 = arith.addf %472, %473 : vector<8x128xf32>
    %c14_i32 = arith.constant 14 : i32
    %c8_i32_97 = arith.constant 8 : i32
    %475 = arith.muli %c14_i32, %c8_i32_97 : i32
    %476 = tpu.assume_multiple %475, 8 : i32
    %477 = arith.index_cast %476 : i32 to index
    %c0_98 = arith.constant 0 : index
    %478 = vector.load %arg9[%477, %c0_98] : memref<128x384xf32, #tpu.memory_space<vmem>>, vector<8x384xf32>
    %479 = arith.truncf %474 : vector<8x128xf32> to vector<8x128xbf16>
    %cst_99 = arith.constant dense<0.000000e+00> : vector<8x384xf32>
    %480 = tpu.matmul %479, %8, %cst_99 {dimension_numbers = #tpu.dot_dimension_numbers<[1], [0], [0], [1], [0, 0, 1, 1], [], []>} : vector<8x128xbf16>, vector<128x384xbf16>, vector<8x384xf32> -> vector<8x384xf32>
    %481 = vector.extract_strided_slice %478 {offsets = [0, 0], sizes = [8, 128], strides = [1, 1]} : vector<8x384xf32> to vector<8x128xf32>
    %482 = vector.extract_strided_slice %480 {offsets = [0, 0], sizes = [8, 128], strides = [1, 1]} : vector<8x384xf32> to vector<8x128xf32>
    %483 = arith.addf %481, %482 : vector<8x128xf32>
    %484 = arith.negf %483 : vector<8x128xf32>
    %485 = math.exp %484 : vector<8x128xf32>
    %cst_100 = arith.constant 1.000000e+00 : f32
    %486 = vector.broadcast %cst_100 : f32 to vector<8x128xf32>
    %487 = arith.addf %486, %485 : vector<8x128xf32>
    %488 = arith.divf %486, %487 : vector<8x128xf32>
    %489 = vector.extract_strided_slice %478 {offsets = [0, 128], sizes = [8, 128], strides = [1, 1]} : vector<8x384xf32> to vector<8x128xf32>
    %490 = vector.extract_strided_slice %480 {offsets = [0, 128], sizes = [8, 128], strides = [1, 1]} : vector<8x384xf32> to vector<8x128xf32>
    %491 = arith.addf %489, %490 : vector<8x128xf32>
    %492 = arith.negf %491 : vector<8x128xf32>
    %493 = math.exp %492 : vector<8x128xf32>
    %cst_101 = arith.constant 1.000000e+00 : f32
    %494 = vector.broadcast %cst_101 : f32 to vector<8x128xf32>
    %495 = arith.addf %494, %493 : vector<8x128xf32>
    %496 = arith.divf %494, %495 : vector<8x128xf32>
    %497 = vector.extract_strided_slice %478 {offsets = [0, 256], sizes = [8, 128], strides = [1, 1]} : vector<8x384xf32> to vector<8x128xf32>
    %498 = vector.extract_strided_slice %480 {offsets = [0, 256], sizes = [8, 128], strides = [1, 1]} : vector<8x384xf32> to vector<8x128xf32>
    %499 = arith.addf %498, %11 : vector<8x128xf32>
    %500 = arith.mulf %488, %499 : vector<8x128xf32>
    %501 = arith.addf %497, %500 : vector<8x128xf32>
    %502 = math.tanh %501 : vector<8x128xf32>
    %cst_102 = arith.constant 1.000000e+00 : f32
    %503 = vector.broadcast %cst_102 : f32 to vector<8x128xf32>
    %504 = arith.subf %503, %496 : vector<8x128xf32>
    %505 = arith.mulf %504, %502 : vector<8x128xf32>
    %506 = arith.mulf %496, %474 : vector<8x128xf32>
    %507 = arith.addf %505, %506 : vector<8x128xf32>
    %c15_i32 = arith.constant 15 : i32
    %c8_i32_103 = arith.constant 8 : i32
    %508 = arith.muli %c15_i32, %c8_i32_103 : i32
    %509 = tpu.assume_multiple %508, 8 : i32
    %510 = arith.index_cast %509 : i32 to index
    %c0_104 = arith.constant 0 : index
    %511 = vector.load %arg9[%510, %c0_104] : memref<128x384xf32, #tpu.memory_space<vmem>>, vector<8x384xf32>
    %512 = arith.truncf %507 : vector<8x128xf32> to vector<8x128xbf16>
    %cst_105 = arith.constant dense<0.000000e+00> : vector<8x384xf32>
    %513 = tpu.matmul %512, %8, %cst_105 {dimension_numbers = #tpu.dot_dimension_numbers<[1], [0], [0], [1], [0, 0, 1, 1], [], []>} : vector<8x128xbf16>, vector<128x384xbf16>, vector<8x384xf32> -> vector<8x384xf32>
    %514 = vector.extract_strided_slice %511 {offsets = [0, 0], sizes = [8, 128], strides = [1, 1]} : vector<8x384xf32> to vector<8x128xf32>
    %515 = vector.extract_strided_slice %513 {offsets = [0, 0], sizes = [8, 128], strides = [1, 1]} : vector<8x384xf32> to vector<8x128xf32>
    %516 = arith.addf %514, %515 : vector<8x128xf32>
    %517 = arith.negf %516 : vector<8x128xf32>
    %518 = math.exp %517 : vector<8x128xf32>
    %cst_106 = arith.constant 1.000000e+00 : f32
    %519 = vector.broadcast %cst_106 : f32 to vector<8x128xf32>
    %520 = arith.addf %519, %518 : vector<8x128xf32>
    %521 = arith.divf %519, %520 : vector<8x128xf32>
    %522 = vector.extract_strided_slice %511 {offsets = [0, 128], sizes = [8, 128], strides = [1, 1]} : vector<8x384xf32> to vector<8x128xf32>
    %523 = vector.extract_strided_slice %513 {offsets = [0, 128], sizes = [8, 128], strides = [1, 1]} : vector<8x384xf32> to vector<8x128xf32>
    %524 = arith.addf %522, %523 : vector<8x128xf32>
    %525 = arith.negf %524 : vector<8x128xf32>
    %526 = math.exp %525 : vector<8x128xf32>
    %cst_107 = arith.constant 1.000000e+00 : f32
    %527 = vector.broadcast %cst_107 : f32 to vector<8x128xf32>
    %528 = arith.addf %527, %526 : vector<8x128xf32>
    %529 = arith.divf %527, %528 : vector<8x128xf32>
    %530 = vector.extract_strided_slice %511 {offsets = [0, 256], sizes = [8, 128], strides = [1, 1]} : vector<8x384xf32> to vector<8x128xf32>
    %531 = vector.extract_strided_slice %513 {offsets = [0, 256], sizes = [8, 128], strides = [1, 1]} : vector<8x384xf32> to vector<8x128xf32>
    %532 = arith.addf %531, %11 : vector<8x128xf32>
    %533 = arith.mulf %521, %532 : vector<8x128xf32>
    %534 = arith.addf %530, %533 : vector<8x128xf32>
    %535 = math.tanh %534 : vector<8x128xf32>
    %cst_108 = arith.constant 1.000000e+00 : f32
    %536 = vector.broadcast %cst_108 : f32 to vector<8x128xf32>
    %537 = arith.subf %536, %529 : vector<8x128xf32>
    %538 = arith.mulf %537, %535 : vector<8x128xf32>
    %539 = arith.mulf %529, %507 : vector<8x128xf32>
    %540 = arith.addf %538, %539 : vector<8x128xf32>
    %c16_i32 = arith.constant 16 : i32
    %c0_109 = arith.constant 0 : index
    %c0_110 = arith.constant 0 : index
    %541 = vector.load %arg6[%c0_109, %c0_110] : memref<128x128xf32, #tpu.memory_space<vmem>>, vector<128x128xf32>
    %cst_111 = arith.constant dense<0.000000e+00> : vector<8x128xf32>
    %542 = tpu.matmul %540, %541, %cst_111 {dimension_numbers = #tpu.dot_dimension_numbers<[1], [0], [0], [1], [0, 0, 1, 1], [], []>} : vector<8x128xf32>, vector<128x128xf32>, vector<8x128xf32> -> vector<8x128xf32>
    %c0_112 = arith.constant 0 : index
    %c0_113 = arith.constant 0 : index
    %543 = vector.load %arg7[%c0_112, %c0_113] : memref<1x128xf32, #tpu.memory_space<vmem>>, vector<1x128xf32>
    %544 = vector.broadcast %543 : vector<1x128xf32> to vector<8x128xf32>
    %545 = arith.addf %542, %544 : vector<8x128xf32>
    %c0_114 = arith.constant 0 : index
    %c0_115 = arith.constant 0 : index
    %546 = vector.load %arg8[%c0_114, %c0_115] : memref<8x128xf32, #tpu.memory_space<vmem>>, vector<8x128xf32>
    tpu.vector_store %arg8[%c0_114, %c0_115], %545 {strides = array<i32>} : memref<8x128xf32, #tpu.memory_space<vmem>>, vector<8x128xf32>,
    return
  }
  func.func @transform_0(%arg0: i32) -> (i32, i32, i32) {
    %c0_i32 = arith.constant 0 : i32
    %c0_i32_0 = arith.constant 0 : i32
    %c0_i32_1 = arith.constant 0 : i32
    return %c0_i32, %arg0, %c0_i32_0 : i32, i32, i32
  }
  func.func @transform_1(%arg0: i32) -> (i32, i32) {
    %c0_i32 = arith.constant 0 : i32
    %c0_i32_0 = arith.constant 0 : i32
    %c0_i32_1 = arith.constant 0 : i32
    return %c0_i32, %c0_i32_0 : i32, i32
  }
  func.func @transform_2(%arg0: i32) -> (i32, i32) {
    %c0_i32 = arith.constant 0 : i32
    %c0_i32_0 = arith.constant 0 : i32
    %c0_i32_1 = arith.constant 0 : i32
    return %c0_i32, %c0_i32_0 : i32, i32
  }
  func.func @transform_3(%arg0: i32) -> (i32, i32) {
    %c0_i32 = arith.constant 0 : i32
    %c0_i32_0 = arith.constant 0 : i32
    %c0_i32_1 = arith.constant 0 : i32
    return %c0_i32, %c0_i32_0 : i32, i32
  }
  func.func @transform_4(%arg0: i32) -> (i32, i32) {
    %c0_i32 = arith.constant 0 : i32
    %c0_i32_0 = arith.constant 0 : i32
    %c0_i32_1 = arith.constant 0 : i32
    return %c0_i32, %c0_i32_0 : i32, i32
  }
  func.func @transform_5(%arg0: i32) -> (i32, i32) {
    %c0_i32 = arith.constant 0 : i32
    %c0_i32_0 = arith.constant 0 : i32
    %c0_i32_1 = arith.constant 0 : i32
    return %c0_i32, %c0_i32_0 : i32, i32
  }
  func.func @transform_6(%arg0: i32) -> (i32, i32) {
    %c0_i32 = arith.constant 0 : i32
    %c0_i32_0 = arith.constant 0 : i32
    %c0_i32_1 = arith.constant 0 : i32
    return %c0_i32, %c0_i32_0 : i32, i32
  }
  func.func @transform_7(%arg0: i32) -> (i32, i32) {
    %c0_i32 = arith.constant 0 : i32
    %c0_i32_0 = arith.constant 0 : i32
    return %arg0, %c0_i32 : i32, i32
  }
}

</mosaic_0001>

<bundles_post_ra>
// kernel: sentiment_gru_forward.1
= control target key start
LH: loop header
LB: loop body
LE: loop exit
PB: predicated region body
PF: predicated region fallthrough
CT: control target
= control target key end

     0   :  { %s4038_s24 = smov 0   ;;  %s4040_s25 = smov 0   ;;  %s5447_s0 = inlined_call_operand.vmem [shape: bf16[16,16,128], index: 0, kind: input, shape index: {}]   ;;  %s5448_s1 = inlined_call_operand.vmem [shape: bf16[128,384], index: 1, kind: input, shape index: {}]   ;;  %s5449_s2 = inlined_call_operand.vmem [shape: bf16[128,384], index: 2, kind: input, shape index: {}]   ;;  %s5450_s3 = inlined_call_operand.vmem [shape: f32[1,384], index: 3, kind: input, shape index: {}]   ;;  %s5451_s4 = inlined_call_operand.vmem [shape: f32[1,128], index: 4, kind: input, shape index: {}]   ;;  %s5452_s5 = inlined_call_operand.vmem [shape: f32[128,128], index: 5, kind: input, shape index: {}]   ;;  %s5453_s6 = inlined_call_operand.vmem [shape: f32[1,128], index: 6, kind: input, shape index: {}]   ;;  %s5454_s7 = inlined_call_operand.vmem [shape: f32[16,128], index: 7, kind: output, shape index: {}]  }
   0x1   :  { %s4042_s26 = smov 0  }
   0x2 LB: > { %s2972_s27 = sadd.s32 4294967295, %s3992_s26   ;;  %s4055_s28 = sadd.s32 1, %s3992_s26   ;;  %s3992_s26 = sphi %s4042_s26, %s5515_s26   ;;  %s3988_s25 = sphi %s4040_s25, %s5514_s25   ;;  %s3984_s24 = sphi %s4038_s24, %s5513_s24  }
   0x3   : > { %s21_s29 = ssub.s32 %s3992_s26, %s4055_s28  ;;  %s24_s30 = sadd.s32 1, %s3988_s25 }
   0x4   : > { %p22_p0 = scmp.eq.s32.totalorder %s21_s29, 0  ;;  %p31_p1 = scmp.ne.s32.totalorder %s3988_s25, %s3984_s24 }
   0x5   : > { %p32_p2 = scmp.eq.s32.totalorder %s3992_s26, 0  ;;  %p2975_p4 = scmp.ge.s32.totalorder %s3992_s26, 2 }
   0x6   : > { %s4064_s8 = scalar_select %p22_p0, %s3988_s25, %s24_s30  }
   0x7   : > { %p33_p3 = por %p32_p2, %p31_p1  ;;  %227 = sbr.rel (%p2975_p4) target bundleno = 28 (0x1c), region = 40 }
   0xe   : > { %230 = sbr.rel (!%p33_p3) target bundleno = 28 (0x1c), region = 44  ;;  %s232_s9 = sand.u32 (%p33_p3), 1, %s3988_s25  }
   0xf   : > { %s2977_s10 = sshll.u32 (%p33_p3), %s3992_s26, 2  ;;  %s2976_s11 = sshll.u32 (%p33_p3), %s232_s9, 6 }
  0x10   : > { %s4072_s14 = scalar_lea.vmem (%p33_p3), %s5447_s0, %s2977_s10  ;;  %s234_s15 = scalar_lea.vmem (%p33_p3), [#allocation3], %s2976_s11 }
  0x11   : > { %v252_v0 = vld [vmem:[%s4072_s14] sm:$0xf] (%p33_p3)  ;;  %v254_v1 = vld [vmem:[%s4072_s14 + $0x8] sm:$0xf] (%p33_p3)  ;;  %v256_v2 = vld [vmem:[%s4072_s14 + $0x10] sm:$0xf] (%p33_p3) }
  0x12   : > { %253 = vst [vmem:[%s234_s15] sm:$0xf] (%p33_p3), %v252_v0  ;;  %255 = vst [vmem:[%s234_s15 + $0x4] sm:$0xf] (%p33_p3), %v254_v1  ;;  %v258_v3 = vld [vmem:[%s4072_s14 + $0x18] sm:$0xf] (%p33_p3) }
  0x13   : > { %v260_v4 = vld [vmem:[%s4072_s14 + $0x20] sm:$0xf] (%p33_p3)  ;;  %257 = vst [vmem:[%s234_s15 + $0x8] sm:$0xf] (%p33_p3), %v256_v2  ;;  %259 = vst [vmem:[%s234_s15 + $0xc] sm:$0xf] (%p33_p3), %v258_v3 }
  0x14   : > { %261 = vst [vmem:[%s234_s15 + $0x10] sm:$0xf] (%p33_p3), %v260_v4  ;;  %v262_v5 = vld [vmem:[%s4072_s14 + $0x28] sm:$0xf] (%p33_p3)  ;;  %v264_v6 = vld [vmem:[%s4072_s14 + $0x30] sm:$0xf] (%p33_p3) }
  0x15   : > { %v266_v7 = vld [vmem:[%s4072_s14 + $0x38] sm:$0xf]  ;;  %263 = vst [vmem:[%s234_s15 + $0x14] sm:$0xf] %v262_v5  ;;  %265 = vst [vmem:[%s234_s15 + $0x18] sm:$0xf] %v264_v6 }
  0x16   : > { %267 = vst [vmem:[%s234_s15 + $0x1c] sm:$0xf] %v266_v7  ;;  %v268_v8 = vld [vmem:[%s4072_s14 + $0x40] sm:$0xf]  ;;  %v270_v9 = vld [vmem:[%s4072_s14 + $0x48] sm:$0xf] }
  0x17   : > { %v272_v10 = vld [vmem:[%s4072_s14 + $0x50] sm:$0xf]  ;;  %269 = vst [vmem:[%s234_s15 + $0x20] sm:$0xf] %v268_v8  ;;  %271 = vst [vmem:[%s234_s15 + $0x24] sm:$0xf] %v270_v9 }
  0x18   : > { %273 = vst [vmem:[%s234_s15 + $0x28] sm:$0xf] %v272_v10  ;;  %v274_v11 = vld [vmem:[%s4072_s14 + $0x58] sm:$0xf]  ;;  %v276_v12 = vld [vmem:[%s4072_s14 + $0x60] sm:$0xf] }
  0x19   : > { %v278_v13 = vld [vmem:[%s4072_s14 + $0x68] sm:$0xf]  ;;  %275 = vst [vmem:[%s234_s15 + $0x2c] sm:$0xf] %v274_v11  ;;  %277 = vst [vmem:[%s234_s15 + $0x30] sm:$0xf] %v276_v12 }
  0x1a   : > { %279 = vst [vmem:[%s234_s15 + $0x34] sm:$0xf] %v278_v13  ;;  %v280_v14 = vld [vmem:[%s4072_s14 + $0x70] sm:$0xf]  ;;  %v282_v15 = vld [vmem:[%s4072_s14 + $0x78] sm:$0xf] }
  0x1b   : > { %281 = vst [vmem:[%s234_s15 + $0x38] sm:$0xf] %v280_v14  ;;  %283 = vst [vmem:[%s234_s15 + $0x3c] sm:$0xf] %v282_v15 }
  0x1c PF: > { %p2978_p5 = scmp.ge.s32.totalorder %s3992_s26, 1  ;;  %p337_p6 = scmp.lt.s32.totalorder %s3992_s26, 3 }
  0x1e   : > { %p338_p7 = pnand %p2978_p5, %p337_p6 }
  0x20   : > { %341 = sbr.rel (%p338_p7) target bundleno = 4499 (0x1193), region = 85 }
  0x27   : > { %v3689_v16 = vld [vmem:[%s5448_s1 + $0x4] ss:$12 sps:$4 sm:$0xff]   ;;  %v3691_v17 = vld [vmem:[%s5448_s1 + $0x8] ss:$12 sps:$4 sm:$0xff]   ;;  %v5455_v18 = vmov 0   ;;  %s344_s21 = sand.u32 1, %s3984_s24   ;;  %v429_v10 = vlaneseq }
  0x28   : > { %652 = vmatprep.mubr.bf16.mxu0 %v5455_v18  ;;  %620 = vmatprep.subr.bf16.mxu0 %v3689_v16  ;;  %v3692_v19 = vld [vmem:[%s5448_s1] ss:$12 sps:$4 sm:$0xff]   ;;  %v3693_v20 = vld [vmem:[%s5448_s1 + $0x1c] ss:$12 sps:$4 sm:$0xff]   ;;  %v3696_v22 = vld [vmem:[%s5448_s1 + $0x18] ss:$12 sps:$4 sm:$0xff]  }
  0x29   : > { %3250 = vmatprep.subr.bf16.mxu1 %v3691_v17  ;;  %621 = vmatpush1.bf16.msra.mxu0 %v3692_v19  ;;  %v3695_v21 = vld [vmem:[%s5448_s1 + $0x20] ss:$12 sps:$4 sm:$0xff]   ;;  %v3699_v24 = vld [vmem:[%s5448_s1 + $0x38] ss:$12 sps:$4 sm:$0xff]   ;;  %v3700_v25 = vld [vmem:[%s5448_s1 + $0x30] ss:$12 sps:$4 sm:$0xff]  }
  0x2a   : > { %3251 = vmatpush3.bf16.msra.mxu1 %v3691_v17  ;;  %622 = vmatprep.subr.bf16.mxu0 %v3693_v20  ;;  %v3697_v23 = vld [vmem:[%s5448_s1 + $0x34] ss:$12 sps:$4 sm:$0xff]   ;;  %v3701_v26 = vld [vmem:[%s5448_s1 + $0x4c] ss:$12 sps:$4 sm:$0xff]   ;;  %v3703_v27 = vld [vmem:[%s5448_s1 + $0x50] ss:$12 sps:$4 sm:$0xff]  }
  0x2b   : > { %3252 = vmatprep.subr.bf16.mxu1 %v3695_v21  ;;  %v3704_v28 = vld [vmem:[%s5448_s1 + $0x48] ss:$12 sps:$4 sm:$0xff]   ;;  %s2979_s29 = sshll.u32 %s344_s21, 6  ;;  %v3705_v29 = vld [vmem:[%s5448_s1 + $0x64] ss:$12 sps:$4 sm:$0xff]   ;;  %v5457_v46 = vmov 0.0  }
  0x2c   : > { %v3707_v30 = vld [vmem:[%s5448_s1 + $0x68] ss:$12 sps:$4 sm:$0xff]   ;;  %v3708_v31 = vld [vmem:[%s5448_s1 + $0x60] ss:$12 sps:$4 sm:$0xff]   ;;  %s4145_s17 = scalar_lea.vmem [#allocation3], %s2979_s29  ;;  %vm3996_vm0 = vmmov 0  }
  0x2d   : > { %623 = vmatpush1.bf16.msra.mxu0 %v3696_v22  ;;  %v3709_v32 = vld [vmem:[%s5448_s1 + $0x7c] ss:$12 sps:$4 sm:$0xff]   ;;  %v3711_v33 = vld [vmem:[%s5448_s1 + $0x80] ss:$12 sps:$4 sm:$0xff]   ;;  %v3712_v35 = vld [vmem:[%s5448_s1 + $0x78] ss:$12 sps:$4 sm:$0xff]  }
  0x2e   : > { %3253 = vmatpush3.bf16.msra.mxu1 %v3695_v21  ;;  %624 = vmatprep.subr.bf16.mxu0 %v3697_v23  ;;  %v3721_v34 = vld [vmem:[%s4145_s17] sm:$0xff]   ;;  %v3716_v38 = vld [vmem:[%s5448_s1 + $0x90] ss:$12 sps:$4 sm:$0xff]   ;;  %v3717_v39 = vld [vmem:[%s5448_s1 + $0xac] ss:$12 sps:$4 sm:$0xff]   ;;  %v430_v11 = vshrl.u32 %v429_v10, 7 }
  0x2f   : > { %3254 = vmatprep.subr.bf16.mxu1 %v3699_v24  ;;  %v3713_v36 = vld [vmem:[%s5448_s1 + $0x94] ss:$12 sps:$4 sm:$0xff]   ;;  %v3715_v37 = vld [vmem:[%s5448_s1 + $0x98] ss:$12 sps:$4 sm:$0xff]   ;;  %3266 = vmatprep.mubr.bf16.mxu1 %v3721_v34  ;;  %v3719_v40 = vld [vmem:[%s5448_s1 + $0xb0] ss:$12 sps:$4 sm:$0xff]  }
  0x30   : > { %v3720_v41 = vld [vmem:[%s5448_s1 + $0xa8] ss:$12 sps:$4 sm:$0xff]   ;;  %v4172_v42 = vld [vmem:[%s5449_s2 + $0x4] ss:$12 sps:$4 sm:$0xff]   ;;  %v4178_v44 = vld [vmem:[%s5449_s2] ss:$12 sps:$4 sm:$0xff]  }
  0x31   : > { %625 = vmatpush1.bf16.msra.mxu0 %v3700_v25  ;;  %v3722_v43 = vld [vmem:[%s4145_s17 + $0x8] sm:$0xff]   ;;  %v3730_v48 = vld [vmem:[%s4145_s17 + $0x10] sm:$0xff]   ;;  %v4196_v49 = vld [vmem:[%s5449_s2 + $0x18] ss:$12 sps:$4 sm:$0xff]   ;;  %v439_v12 = vsub.s32 2, %v430_v11  ;;  %v431_v14 = vsub.s32 0, %v430_v11 }
  0x32   : > { %3255 = vmatpush3.bf16.msra.mxu1 %v3699_v24  ;;  %626 = vmatprep.subr.bf16.mxu0 %v3701_v26  ;;  %v4183_v45 = vld [vmem:[%s5449_s2 + $0x8] ss:$12 sps:$4 sm:$0xff]   ;;  %v4203_v50 = vld [vmem:[%s5449_s2 + $0x20] ss:$12 sps:$4 sm:$0xff]   ;;  %v3731_v52 = vld [vmem:[%s4145_s17 + $0x18] sm:$0xff]   ;;  %v435_v16 = vsub.s32 1, %v430_v11 }
  0x33   : > { %3256 = vmatprep.subr.bf16.mxu1 %v3703_v27  ;;  %v4190_v47 = vld [vmem:[%s5449_s2 + $0x1c] ss:$12 sps:$4 sm:$0xff]   ;;  %v4210_v51 = vld [vmem:[%s5449_s2 + $0x34] ss:$12 sps:$4 sm:$0xff]   ;;  %v4224_v54 = vld [vmem:[%s5449_s2 + $0x4c] ss:$12 sps:$4 sm:$0xff]  }
  0x34   : > { %v4217_v53 = vld [vmem:[%s5449_s2 + $0x30] ss:$12 sps:$4 sm:$0xff]   ;;  %v3739_v55 = vld [vmem:[%s4145_s17 + $0x20] sm:$0xff]   ;;  %v4238_v57 = vld [vmem:[%s5449_s2 + $0x48] ss:$12 sps:$4 sm:$0xff]   ;;  %p374_p8 = scmp.lt.s32.totalorder %s2972_s27, 1 }
  0x35   : > { %627 = vmatpush1.bf16.msra.mxu0 %v3704_v28  ;;  %v4232_v56 = vld [vmem:[%s5449_s2 + $0x38] ss:$12 sps:$4 sm:$0xff]   ;;  %v4251_v59 = vld [vmem:[%s5449_s2 + $0x50] ss:$12 sps:$4 sm:$0xff]   ;;  %v3740_v60 = vld [vmem:[%s4145_s17 + $0x28] sm:$0xff]  }
  0x36   : > { %3257 = vmatpush3.bf16.msra.mxu1 %v3703_v27  ;;  %628 = vmatprep.subr.bf16.mxu0 %v3705_v29  ;;  %v4245_v58 = vld [vmem:[%s5449_s2 + $0x64] ss:$12 sps:$4 sm:$0xff]   ;;  %v4259_v61 = vld [vmem:[%s5449_s2 + $0x60] ss:$12 sps:$4 sm:$0xff]   ;;  %v4265_v62 = vld [vmem:[%s5449_s2 + $0x7c] ss:$12 sps:$4 sm:$0xff]  }
  0x37   : > { %3258 = vmatprep.subr.bf16.mxu1 %v3707_v30  ;;  %v3748_v63 = vld [vmem:[%s4145_s17 + $0x30] sm:$0xff]   ;;  %v4278_v1 = vld [vmem:[%s5449_s2 + $0x78] ss:$12 sps:$4 sm:$0xff]   ;;  %v4306_v6 = vld [vmem:[%s5449_s2 + $0x80] ss:$12 sps:$4 sm:$0xff]   ;;  %s5517_s27 = smov (!%p374_p8, %s2972_s27), 1 }
  0x38   : > { %v4272_v0 = vld [vmem:[%s5449_s2 + $0x68] ss:$12 sps:$4 sm:$0xff]   ;;  %v3749_v3 = vld [vmem:[%s4145_s17 + $0x38] sm:$0xff]   ;;  %v427_v13 = vld [vmem:[%s5450_s3] sm:$0x7]  ;;  %s2980_s19 = sshll.u32 %s5517_s27, 3 }
  0x39   : > { %629 = vmatpush1.bf16.msra.mxu0 %v3708_v31  ;;  %v4285_v2 = vld [vmem:[%s5449_s2 + $0x94] ss:$12 sps:$4 sm:$0xff]   ;;  %v4294_v4 = vld [vmem:[%s5449_s2 + $0x90] ss:$12 sps:$4 sm:$0xff]   ;;  %v4301_v5 = vld [vmem:[%s5449_s2 + $0xac] ss:$12 sps:$4 sm:$0xff]   ;;  %v4380_v15 = vrot.slane %v427_v13, %v439_v12  ;;  %v4384_v20 = vrot.slane %v427_v13, %v431_v14  ;;  %v4391_v24 = vrot.slane %v427_v13, %v435_v16  ;;  %s377_s23 = scalar_lea.vmem %s5454_s7, %s2980_s19 }
  0x3a   : > { %3259 = vmatpush3.bf16.msra.mxu1 %v3707_v30  ;;  %630 = vmatprep.subr.bf16.mxu0 %v3709_v32  ;;  %v4312_v7 = vld [vmem:[%s5449_s2 + $0xa8] ss:$12 sps:$4 sm:$0xff]   ;;  %v4321_v8 = vld [vmem:[%s5449_s2 + $0x98] ss:$12 sps:$4 sm:$0xff]   ;;  %v4330_v9 = vld [vmem:[%s5449_s2 + $0xb0] ss:$12 sps:$4 sm:$0xff]  }
  0x3b   : > { %3260 = vmatprep.subr.bf16.mxu1 %v3711_v33 }
  0x3d   : > { %631 = vmatpush1.bf16.msra.mxu0 %v3712_v35 }
  0x3e   : > { %3261 = vmatpush3.bf16.msra.mxu1 %v3711_v33  ;;  %632 = vmatprep.subr.bf16.mxu0 %v3713_v36 }
  0x3f   : > { %3262 = vmatprep.subr.bf16.mxu1 %v3715_v37 }
  0x41   : > { %633 = vmatpush1.bf16.msra.mxu0 %v3716_v38 }
  0x42   : > { %3263 = vmatpush3.bf16.msra.mxu1 %v3715_v37  ;;  %634 = vmatprep.subr.bf16.mxu0 %v3717_v39 }
  0x43   : > { %3264 = vmatprep.subr.bf16.mxu1 %v3719_v40 }
  0x45   : > { %635 = vmatpush1.bf16.msra.mxu0 %v3720_v41 }
  0x46   : > { %3265 = vmatpush3.bf16.msra.mxu1 %v3719_v40  ;;  %3282 = vmatprep.subr.bf16.mxu0 %v5457_v46 }
  0x47   : > { %1051 = vmatprep.subr.bf16.mxu1 %v4172_v42 }
  0x48   : > { %653 = vmatmul.mubr.bf16.vlgmr.msra.gmra.mrb[0].mxu0 %v3721_v34 }
  0x49   : > { %3267 = vmatmul.mubr.bf16.vlgmr.msra.gmra.mrb[0].mxu1 %v3722_v43  ;;  %3283 = vmatpush3.bf16.msra.mxu0 %v4183_v45 }
  0x4a   : > { %1052 = vmatpush1.bf16.msra.mxu1 %v4178_v44  ;;  %662 = vmatprep.mubr.bf16.mxu0 %v5455_v18 }
  0x4b   : > { %1053 = vmatprep.subr.bf16.mxu1 %v4190_v47  ;;  %3270 = vmatprep.mubr.bf16.mxu1 %v3730_v48 }
  0x4c   : > { %3284 = vmatprep.subr.bf16.mxu0 %v5457_v46 }
  0x4d   : > { %3285 = vmatpush3.bf16.msra.mxu0 %v4203_v50 }
  0x4e   : > { %1054 = vmatpush1.bf16.msra.mxu1 %v4196_v49  ;;  %3286 = vmatprep.subr.bf16.mxu0 %v5457_v46 }
  0x4f   : > { %1055 = vmatprep.subr.bf16.mxu1 %v4210_v51 }
  0x50   : > { %663 = vmatmul.mubr.bf16.gmra.mrb[4].mxu0 %v3722_v43 }
  0x51   : > { %3271 = vmatmul.mubr.bf16.gmra.mrb[4].mxu1 %v3731_v52  ;;  %672 = vmatprep.mubr.bf16.mxu0 %v5455_v18 }
  0x52   : > { %1056 = vmatpush1.bf16.msra.mxu1 %v4217_v53  ;;  %3274 = vmatprep.mubr.bf16.mxu1 %v3739_v55 }
  0x53   : > { %1057 = vmatprep.subr.bf16.mxu1 %v4224_v54  ;;  %3287 = vmatpush3.bf16.msra.mxu0 %v4232_v56 }
  0x54   : > { %3288 = vmatprep.subr.bf16.mxu0 %v5457_v46 }
  0x56   : > { %1058 = vmatpush1.bf16.msra.mxu1 %v4238_v57 }
  0x57   : > { %1059 = vmatprep.subr.bf16.mxu1 %v4245_v58  ;;  %3289 = vmatpush3.bf16.msra.mxu0 %v4251_v59 }
  0x58   : > { %673 = vmatmul.mubr.bf16.gmra.mrb[8].mxu0 %v3730_v48  ;;  %3290 = vmatprep.subr.bf16.mxu0 %v5457_v46 }
  0x59   : > { %3275 = vmatmul.mubr.bf16.gmra.mrb[8].mxu1 %v3740_v60  ;;  %682 = vmatprep.mubr.bf16.mxu0 %v5455_v18 }
  0x5a   : > { %1060 = vmatpush1.bf16.msra.mxu1 %v4259_v61  ;;  %3278 = vmatprep.mubr.bf16.mxu1 %v3748_v63 }
  0x5b   : > { %1061 = vmatprep.subr.bf16.mxu1 %v4265_v62  ;;  %3291 = vmatpush3.bf16.msra.mxu0 %v4272_v0 }
  0x5c   : > { %3292 = vmatprep.subr.bf16.mxu0 %v5457_v46 }
  0x5e   : > { %1062 = vmatpush1.bf16.msra.mxu1 %v4278_v1 }
  0x5f   : > { %1063 = vmatprep.subr.bf16.mxu1 %v4285_v2  ;;  %3293 = vmatpush3.bf16.msra.mxu0 %v4306_v6 }
  0x60   : > { %683 = vmatmul.mubr.bf16.gmra.mrb[12].mxu0 %v3731_v52  ;;  %3294 = vmatprep.subr.bf16.mxu0 %v5457_v46 }
  0x61   : > { %3279 = vmatmul.mubr.bf16.gmra.mrb[12].mxu1 %v3749_v3  ;;  %692 = vmatprep.mubr.bf16.mxu0 %v5455_v18 }
  0x62   : > { %1064 = vmatpush1.bf16.msra.mxu1 %v4294_v4  ;;  %1083 = vmatprep.mubr.bf16.mxu1 %v5455_v18 }
  0x63   : > { %1065 = vmatprep.subr.bf16.mxu1 %v4301_v5  ;;  %3295 = vmatpush3.bf16.msra.mxu0 %v4321_v8 }
  0x64   : > { %3296 = vmatprep.subr.bf16.mxu0 %v5457_v46 }
  0x66   : > { %1066 = vmatpush1.bf16.msra.mxu1 %v4312_v7 }
  0x67   : > { %1161 = vmatprep.subr.bf16.mxu1 %v4172_v42  ;;  %3297 = vmatpush3.bf16.msra.mxu0 %v4330_v9 }
  0x68   : > { %693 = vmatmul.mubr.bf16.gmra.mrb[16].mxu0 %v3739_v55  ;;  %3302 = vmatprep.subr.bf16.mxu0 %v5457_v46 }
  0x69   : > { %1084 = vmatmul.mubr.bf16.vlgmr.msra.gmra.mrb[16].mxu1 %v5455_v18  ;;  %702 = vmatprep.mubr.bf16.mxu0 %v5455_v18 }
  0x6a   : > { %1162 = vmatpush1.bf16.msra.mxu1 %v4178_v44  ;;  %1193 = vmatprep.mubr.bf16.mxu1 %v5455_v18 }
  0x6b   : > { %1163 = vmatprep.subr.bf16.mxu1 %v4190_v47 }
  0x6e   : > { %1164 = vmatpush1.bf16.msra.mxu1 %v4196_v49 }
  0x6f   : > { %1165 = vmatprep.subr.bf16.mxu1 %v4210_v51 }
  0x70   : > { %703 = vmatmul.mubr.bf16.gmra.mrb[20].mxu0 %v3740_v60 }
  0x71   : > { %712 = vmatprep.mubr.bf16.mxu0 %v5455_v18 }
  0x72   : > { %1166 = vmatpush1.bf16.msra.mxu1 %v4217_v53 }
  0x73   : > { %1167 = vmatprep.subr.bf16.mxu1 %v4224_v54 }
  0x76   : > { %1168 = vmatpush1.bf16.msra.mxu1 %v4238_v57 }
  0x77   : > { %1169 = vmatprep.subr.bf16.mxu1 %v4245_v58 }
  0x78   : > { %713 = vmatmul.mubr.bf16.gmra.mrb[24].mxu0 %v3748_v63 }
  0x79   : > { %722 = vmatprep.mubr.bf16.mxu0 %v5455_v18 }
  0x7a   : > { %1170 = vmatpush1.bf16.msra.mxu1 %v4259_v61 }
  0x7b   : > { %1171 = vmatprep.subr.bf16.mxu1 %v4265_v62 }
  0x7e   : > { %1172 = vmatpush1.bf16.msra.mxu1 %v4278_v1 }
  0x7f   : > { %1173 = vmatprep.subr.bf16.mxu1 %v4285_v2 }
  0x80   : > { %723 = vmatmul.mubr.bf16.gmra.mrb[28].mxu0 %v3749_v3 }
  0x81   : > { %3298 = vmatprep.mubr.msk.bf16.mxu0 %vm3996_vm0, %v5457_v46 }
  0x82   : > { %1174 = vmatpush1.bf16.msra.mxu1 %v4294_v4 }
  0x83   : > { %1175 = vmatprep.subr.bf16.mxu1 %v4301_v5 }
  0x86   : > { %1176 = vmatpush1.bf16.msra.mxu1 %v4312_v7 }
  0x87   : > { %1271 = vmatprep.subr.bf16.mxu1 %v4172_v42 }
  0x88   : > { %3299 = vmatmul.mubr.bf16.vlgmr.msra.gmra.mrb[32].mxu0 %v5455_v18 }
  0x89   : > { %3303 = vmatpush3.bf16.msra.mxu0 %v4183_v45  ;;  %3318 = vmatprep.mubr.msk.bf16.mxu0 %vm3996_vm0, %v5457_v46 }
  0x8a   : > { %3304 = vmatprep.subr.bf16.mxu0 %v5457_v46 }
  0x8d   : > { %3305 = vmatpush3.bf16.msra.mxu0 %v4203_v50 }
  0x8e   : > { %3306 = vmatprep.subr.bf16.mxu0 %v5457_v46 }
  0x91   : > { %3307 = vmatpush3.bf16.msra.mxu0 %v4232_v56 }
  0x92   : > { %3308 = vmatprep.subr.bf16.mxu0 %v5457_v46 }
  0x95   : > { %3309 = vmatpush3.bf16.msra.mxu0 %v4251_v59 }
  0x96   : > { %3310 = vmatprep.subr.bf16.mxu0 %v5457_v46 }
  0x99   : > { %3311 = vmatpush3.bf16.msra.mxu0 %v4272_v0 }
  0x9a   : > { %3312 = vmatprep.subr.bf16.mxu0 %v5457_v46 }
  0x9d   : > { %3313 = vmatpush3.bf16.msra.mxu0 %v4306_v6 }
  0x9e   : > { %3314 = vmatprep.subr.bf16.mxu0 %v5457_v46 }
  0xa1   : > { %3315 = vmatpush3.bf16.msra.mxu0 %v4321_v8 }
  0xa2   : > { %3316 = vmatprep.subr.bf16.mxu0 %v5457_v46 }
  0xa5   : > { %3317 = vmatpush3.bf16.msra.mxu0 %v4330_v9 }
  0xa6   : > { %3322 = vmatprep.subr.bf16.mxu0 %v5457_v46 }
 0x11b   : > { %v4382_v17 = vpop.f32.mrb[0].mxu0 }
 0x11c   : > { %v3268_v19 = vpop.f32.mrb[0].mxu1  ;;  %v656_v21 = vpop.f32.mrb[1].mxu0 }
 0x11d   : > { %v4387_v22 = vadd.f32 %v3268_v19, %v4380_v15  ;;  %v4389_v23 = vpop.f32.mrb[1].mxu1  ;;  %v658_v25 = vpop.f32.mrb[2].mxu0 }
 0x11e   : > { %v3269_v26 = vpop.f32.mrb[2].mxu1  ;;  %v4394_v27 = vadd.f32 %v658_v25, %v4384_v20  ;;  %v660_v28 = vpop.f32.mrb[3].mxu0 }
 0x11f   : > { %v4397_v29 = vadd.f32 %v3269_v26, %v4380_v15  ;;  %v770_v30 = vpop.f32.mrb[3].mxu1  ;;  %v4400_v31 = vadd.f32 %v660_v28, %v4391_v24 }
 0x120   : > { %v4403_v32 = vadd.f32 %v770_v30, %v4380_v15 }
 0x123   : > { %v664_v33 = vpop.f32.mrb[4].mxu0 }
 0x124   : > { %v3272_v34 = vpop.f32.mrb[4].mxu1  ;;  %v4406_v35 = vadd.f32 %v664_v33, %v4384_v20  ;;  %v666_v36 = vpop.f32.mrb[5].mxu0 }
 0x125   : > { %v4409_v37 = vadd.f32 %v3272_v34, %v4380_v15  ;;  %v783_v38 = vpop.f32.mrb[5].mxu1  ;;  %v4412_v39 = vadd.f32 %v666_v36, %v4391_v24  ;;  %v668_v40 = vpop.f32.mrb[6].mxu0 }
 0x126   : > { %v4415_v41 = vadd.f32 %v783_v38, %v4380_v15  ;;  %v3273_v43 = vpop.f32.mrb[6].mxu1  ;;  %v4418_v48 = vadd.f32 %v668_v40, %v4384_v20  ;;  %v670_v52 = vpop.f32.mrb[7].mxu0 }
 0x127   : > { %v4421_v55 = vadd.f32 %v3273_v43, %v4380_v15  ;;  %v786_v60 = vpop.f32.mrb[7].mxu1  ;;  %v4424_v63 = vadd.f32 %v670_v52, %v4391_v24 }
 0x128   : > { %v4427_v3 = vadd.f32 %v786_v60, %v4380_v15 }
 0x129   : > { %5459 = vst [vmem:[#allocation4_spill] sm:$0xff] %v4421_v55 }
 0x12b   : > { %v674_v10 = vpop.f32.mrb[8].mxu0 }
 0x12c   : > { %v3276_v11 = vpop.f32.mrb[8].mxu1  ;;  %v4430_v12 = vadd.f32 %v674_v10, %v4384_v20  ;;  %v676_v13 = vpop.f32.mrb[9].mxu0 }
 0x12d   : > { %v4433_v14 = vadd.f32 %v3276_v11, %v4380_v15  ;;  %v799_v16 = vpop.f32.mrb[9].mxu1  ;;  %v4436_v19 = vadd.f32 %v676_v13, %v4391_v24  ;;  %v678_v25 = vpop.f32.mrb[10].mxu0 }
 0x12e   : > { %v4439_v26 = vadd.f32 %v799_v16, %v4380_v15  ;;  %v3277_v28 = vpop.f32.mrb[10].mxu1  ;;  %v4442_v30 = vadd.f32 %v678_v25, %v4384_v20  ;;  %v680_v33 = vpop.f32.mrb[11].mxu0 }
 0x12f   : > { %5460 = vst [vmem:[#allocation5_spill] sm:$0xff] %v4433_v14  ;;  %v4445_v34 = vadd.f32 %v3277_v28, %v4380_v15  ;;  %v802_v36 = vpop.f32.mrb[11].mxu1  ;;  %v4448_v38 = vadd.f32 %v680_v33, %v4391_v24 }
 0x130   : > { %5461 = vst [vmem:[#allocation6_spill] sm:$0xff] %v4439_v26  ;;  %v4451_v40 = vadd.f32 %v802_v36, %v4380_v15 }
 0x131   : > { %5462 = vst [vmem:[#allocation7_spill] sm:$0xff] %v4445_v34 }
 0x132   : > { %5463 = vst [vmem:[#allocation8_spill] sm:$0xff] %v4451_v40 }
 0x133   : > { %v684_v43 = vpop.f32.mrb[12].mxu0 }
 0x134   : > { %v3280_v52 = vpop.f32.mrb[12].mxu1  ;;  %v4454_v60 = vadd.f32 %v684_v43, %v4384_v20  ;;  %v686_v10 = vpop.f32.mrb[13].mxu0 }
 0x135   : > { %v4457_v11 = vadd.f32 %v3280_v52, %v4380_v15  ;;  %v815_v13 = vpop.f32.mrb[13].mxu1  ;;  %v4460_v16 = vadd.f32 %v686_v10, %v4391_v24  ;;  %v688_v25 = vpop.f32.mrb[14].mxu0  ;;  %v655_v10 = vadd.f32 %v4382_v17, %v4384_v20 }
 0x136   : > { %v4463_v28 = vadd.f32 %v815_v13, %v4380_v15  ;;  %v3281_v33 = vpop.f32.mrb[14].mxu1  ;;  %v4466_v36 = vadd.f32 %v688_v25, %v4384_v20  ;;  %v690_v18 = vpop.f32.mrb[15].mxu0  ;;  %v657_v13 = vadd.f32 %v656_v21, %v4391_v24 }
 0x137   : > { %5464 = vst [vmem:[#allocation9_spill] sm:$0xff] %v4457_v11  ;;  %v4469_v43 = vadd.f32 %v3281_v33, %v4380_v15  ;;  %v818_v46 = vpop.f32.mrb[15].mxu1  ;;  %v4472_v52 = vadd.f32 %v690_v18, %v4391_v24 }
 0x138   : > { %5465 = vst [vmem:[#allocation10_spill] sm:$0xff] %v4463_v28  ;;  %v4475_v11 = vadd.f32 %v818_v46, %v4380_v15 }
 0x139   : > { %5466 = vst [vmem:[#allocation11_spill] sm:$0xff] %v4469_v43  ;;  %5467 = vst [vmem:[#allocation12_spill] sm:$0xff] %v4472_v52 }
 0x13a   : > { %5468 = vst [vmem:[#allocation13_spill] sm:$0xff] %v4475_v11 }
 0x13b   : > { %v694_v28 = vpop.f32.mrb[16].mxu0 }
 0x13c   : > { %v1085_v34 = vpop.f32.mrb[16].mxu1  ;;  %v4481_v25 = vadd.f32 %v694_v28, %v4384_v20  ;;  %v696_v33 = vpop.f32.mrb[17].mxu0 }
 0x13d   : > { %v1132_v14 = vadd.f32 %v1085_v34, %v655_v10  ;;  %v1087_v43 = vpop.f32.mrb[17].mxu1  ;;  %v4484_v40 = vadd.f32 %v696_v33, %v4391_v24  ;;  %v698_v26 = vpop.f32.mrb[18].mxu0 }
 0x13e   : > { %5469 = vst [vmem:[#allocation14_spill] sm:$0xff] %v4481_v25  ;;  %v1139_v18 = vadd.f32 %v1087_v43, %v657_v13  ;;  %v1089_v46 = vpop.f32.mrb[18].mxu1  ;;  %v4487_v55 = vadd.f32 %v698_v26, %v4384_v20  ;;  %v700_v17 = vpop.f32.mrb[19].mxu0 }
 0x13f   : > { %5470 = vst [vmem:[#allocation15_spill] sm:$0xff] %v4484_v40  ;;  %v3038_v11 = vmul.f32 -1.442695, %v1132_v14  ;;  %v1090_v21 = vpop.f32.mrb[19].mxu1  ;;  %v4490_v52 = vadd.f32 %v700_v17, %v4391_v24 }
 0x140   : > { %5471 = vst [vmem:[#allocation16_spill] sm:$0xff] %v4487_v55  ;;  %v3039_v46 = vmul.f32 -1.442695, %v1139_v18 }
 0x141   : > { %5472 = vst [vmem:[#allocation17_spill] sm:$0xff] %v4490_v52  ;;  %3761 = vpow2.f32 %v3038_v11 }
 0x142   : > { %3763 = vpow2.f32 %v3039_v46 }
 0x143   : > { %v704_v28 = vpop.f32.mrb[20].mxu0 }
 0x144   : > { %v4493_v34 = vadd.f32 %v704_v28, %v4384_v20  ;;  %v706_v10 = vpop.f32.mrb[21].mxu0 }
 0x145   : > { %v4496_v33 = vadd.f32 %v706_v10, %v4391_v24  ;;  %v708_v43 = vpop.f32.mrb[22].mxu0 }
 0x146   : > { %5473 = vst [vmem:[#allocation18_spill] sm:$0xff] %v4493_v34  ;;  %v4499_v14 = vadd.f32 %v708_v43, %v4384_v20  ;;  %v710_v26 = vpop.f32.mrb[23].mxu0 }
 0x147   : > { %5474 = vst [vmem:[#allocation19_spill] sm:$0xff] %v4496_v33  ;;  %v4502_v13 = vadd.f32 %v710_v26, %v4391_v24 }
 0x148   : > { %5475 = vst [vmem:[#allocation20_spill] sm:$0xff] %v4499_v14 }
 0x149   : > { %5476 = vst [vmem:[#allocation21_spill] sm:$0xff] %v4502_v13 }
 0x14b   : > { %v714_v17 = vpop.f32.mrb[24].mxu0  ;;  %v3762_v21 = vpop.eup %3761 }
 0x14c   : > { %v4505_v11 = vadd.f32 %v714_v17, %v4384_v20  ;;  %v716_v28 = vpop.f32.mrb[25].mxu0  ;;  %v1136_v14 = vadd.f32 1.0, %v3762_v21 }
 0x14d   : > { %v4508_v34 = vadd.f32 %v716_v28, %v4391_v24  ;;  %v718_v10 = vpop.f32.mrb[26].mxu0 }
 0x14e   : > { %5477 = vst [vmem:[#allocation22_spill] sm:$0xff] %v4505_v11  ;;  %v4511_v33 = vadd.f32 %v718_v10, %v4384_v20  ;;  %v720_v43 = vpop.f32.mrb[27].mxu0  ;;  %3765 = vrcp.f32 %v1136_v14  ;;  %v4531_v14 = vld [vmem:[%s5451_s4] ss:$0 sm:$0xff] }
 0x14f   : > { %5478 = vst [vmem:[#allocation23_spill] sm:$0xff] %v4508_v34  ;;  %v4514_v26 = vadd.f32 %v720_v43, %v4391_v24 }
 0x150   : > { %5479 = vst [vmem:[#allocation24_spill] sm:$0xff] %v4511_v33  ;;  %v3764_v33 = vpop.eup %3763 }
 0x151   : > { %5480 = vst [vmem:[#allocation25_spill] sm:$0xff] %v4514_v26  ;;  %v1143_v43 = vadd.f32 1.0, %v3764_v33 }
 0x153   : > { %v724_v18 = vpop.f32.mrb[28].mxu0  ;;  %3767 = vrcp.f32 %v1143_v43 }
 0x154   : > { %v4517_v13 = vadd.f32 %v724_v18, %v4384_v20  ;;  %v726_v17 = vpop.f32.mrb[29].mxu0 }
 0x155   : > { %v4520_v46 = vadd.f32 %v726_v17, %v4391_v24  ;;  %v728_v28 = vpop.f32.mrb[30].mxu0 }
 0x156   : > { %5481 = vst [vmem:[#allocation26_spill] sm:$0xff] %v4517_v13  ;;  %v4523_v34 = vadd.f32 %v728_v28, %v4384_v20  ;;  %v730_v10 = vpop.f32.mrb[31].mxu0  ;;  %v768_v20 = vadd.f32 %v4389_v23, %v4380_v15  ;;  %v5485_v15 = vmov 0.0   ;;  %v5486_v23 = vmov 0  }
 0x157   : > { %5482 = vst [vmem:[#allocation27_spill] sm:$0xff] %v4520_v46  ;;  %v4526_v21 = vadd.f32 %v730_v10, %v4391_v24 }
 0x158   : > { %5483 = vst [vmem:[#allocation28_spill] sm:$0xff] %v4523_v34  ;;  %v3766_v46 = vpop.eup %3765 }
 0x159   : > { %5484 = vst [vmem:[#allocation29_spill] sm:$0xff] %v4526_v21 }
 0x15b   : > { %v1126_v18 = vpop.f32.mrb[32].mxu0 }
 0x15c   : > { %v1146_v13 = vadd.f32 %v4531_v14, %v1126_v18  ;;  %v3300_v17 = vpop.f32.mrb[33].mxu0 }
 0x15d   : > { %v1129_v26 = vpop.f32.mrb[34].mxu0  ;;  %v3768_v10 = vpop.eup %3767 }
 0x15e   : > { %v1147_v28 = vmul.f32 %v3766_v46, %v1146_v13  ;;  %v3301_v34 = vpop.f32.mrb[35].mxu0  ;;  %v1150_v21 = vsub.f32 1.0, %v3768_v10  ;;  %v1152_v55 = vmul.f32 0.0, %v3768_v10 }
 0x160   : > { %v1148_v24 = vadd.f32 %v1147_v28, %v768_v20 }
 0x162   : > { %3769 = vtanh.f32 %v1148_v24 }
 0x16c   : > { %v3770_v11 = vpop.eup %3769 }
 0x16d   : > { %v1151_v52 = vmul.f32 %v3770_v11, %v1150_v21 }
 0x16f   : > { %v4536_v33 = vadd.f32 %v1152_v55, %v1151_v52 }
 0x171   : > { %v1160_v18 = vpack.c.bf16 %v4536_v33, %v4536_v33 }
 0x173   : > { %1194 = vmatmul.mubr.bf16.vlgmr.msra.gmra.mrb[20].mxu1 %v1160_v18  ;;  %3319 = vmatmul.mubr.bf16.vlgmr.msra.gmra.mrb[36].mxu0 %v1160_v18 }
 0x174   : > { %1272 = vmatpush1.bf16.msra.mxu1 %v4178_v44  ;;  %3323 = vmatpush3.bf16.msra.mxu0 %v4183_v45 }
 0x175   : > { %1273 = vmatprep.subr.bf16.mxu1 %v4190_v47  ;;  %3324 = vmatprep.subr.bf16.mxu0 %v5485_v15 }
 0x176   : > { %1303 = vmatprep.mubr.bf16.mxu1 %v5486_v23  ;;  %3338 = vmatprep.mubr.msk.bf16.mxu0 %vm3996_vm0, %v5485_v15 }
 0x178   : > { %1274 = vmatpush1.bf16.msra.mxu1 %v4196_v49  ;;  %3325 = vmatpush3.bf16.msra.mxu0 %v4203_v50 }
 0x179   : > { %1275 = vmatprep.subr.bf16.mxu1 %v4210_v51  ;;  %3326 = vmatprep.subr.bf16.mxu0 %v5485_v15 }
 0x17c   : > { %1276 = vmatpush1.bf16.msra.mxu1 %v4217_v53  ;;  %3327 = vmatpush3.bf16.msra.mxu0 %v4232_v56 }
 0x17d   : > { %1277 = vmatprep.subr.bf16.mxu1 %v4224_v54  ;;  %3328 = vmatprep.subr.bf16.mxu0 %v5485_v15 }
 0x180   : > { %1278 = vmatpush1.bf16.msra.mxu1 %v4238_v57  ;;  %3329 = vmatpush3.bf16.msra.mxu0 %v4251_v59 }
 0x181   : > { %1279 = vmatprep.subr.bf16.mxu1 %v4245_v58  ;;  %3330 = vmatprep.subr.bf16.mxu0 %v5485_v15 }
 0x184   : > { %1280 = vmatpush1.bf16.msra.mxu1 %v4259_v61  ;;  %3331 = vmatpush3.bf16.msra.mxu0 %v4272_v0 }
 0x185   : > { %1281 = vmatprep.subr.bf16.mxu1 %v4265_v62  ;;  %3332 = vmatprep.subr.bf16.mxu0 %v5485_v15 }
 0x188   : > { %1282 = vmatpush1.bf16.msra.mxu1 %v4278_v1  ;;  %3333 = vmatpush3.bf16.msra.mxu0 %v4306_v6 }
 0x189   : > { %1283 = vmatprep.subr.bf16.mxu1 %v4285_v2  ;;  %3334 = vmatprep.subr.bf16.mxu0 %v5485_v15 }
 0x18c   : > { %1284 = vmatpush1.bf16.msra.mxu1 %v4294_v4  ;;  %3335 = vmatpush3.bf16.msra.mxu0 %v4321_v8 }
 0x18d   : > { %1285 = vmatprep.subr.bf16.mxu1 %v4301_v5  ;;  %3336 = vmatprep.subr.bf16.mxu0 %v5485_v15 }
 0x190   : > { %1286 = vmatpush1.bf16.msra.mxu1 %v4312_v7  ;;  %3337 = vmatpush3.bf16.msra.mxu0 %v4330_v9 }
 0x191   : > { %1381 = vmatprep.subr.bf16.mxu1 %v4172_v42  ;;  %3342 = vmatprep.subr.bf16.mxu0 %v5485_v15 }
 0x246   : > { %v1195_v55 = vpop.f32.mrb[20].mxu1  ;;  %v1236_v52 = vpop.f32.mrb[36].mxu0 }
 0x247   : > { %v1242_v34 = vadd.f32 %v1195_v55, %v4394_v27  ;;  %v1197_v13 = vpop.f32.mrb[21].mxu1  ;;  %v3320_v11 = vpop.f32.mrb[37].mxu0  ;;  %v1256_v25 = vadd.f32 %v4531_v14, %v1236_v52 }
 0x248   : > { %v1249_v26 = vadd.f32 %v1197_v13, %v4400_v31  ;;  %v1199_v46 = vpop.f32.mrb[22].mxu1  ;;  %v1239_v21 = vpop.f32.mrb[38].mxu0 }
 0x249   : > { %v3040_v43 = vmul.f32 -1.442695, %v1242_v34  ;;  %v1200_v17 = vpop.f32.mrb[23].mxu1  ;;  %v3321_v20 = vpop.f32.mrb[39].mxu0 }
 0x24a   : > { %v3041_v28 = vmul.f32 -1.442695, %v1249_v26 }
 0x24b   : > { %3771 = vpow2.f32 %v3040_v43 }
 0x24c   : > { %3773 = vpow2.f32 %v3041_v28 }
 0x255   : > { %v3772_v24 = vpop.eup %3771 }
 0x256   : > { %v1246_v10 = vadd.f32 1.0, %v3772_v24  ;;  %v3774_v18 = vpop.eup %3773 }
 0x257   : > { %v1253_v40 = vadd.f32 1.0, %v3774_v18 }
 0x258   : > { %3775 = vrcp.f32 %v1246_v10 }
 0x259   : > { %3777 = vrcp.f32 %v1253_v40 }
 0x262   : > { %v3776_v27 = vpop.eup %3775 }
 0x263   : > { %v1257_v55 = vmul.f32 %v3776_v27, %v1256_v25  ;;  %v3778_v13 = vpop.eup %3777 }
 0x264   : > { %v1260_v34 = vsub.f32 1.0, %v3778_v13  ;;  %v1262_v26 = vmul.f32 %v3778_v13, %v4536_v33 }
 0x265   : > { %v1258_v31 = vadd.f32 %v1257_v55, %v4403_v32 }
 0x267   : > { %3779 = vtanh.f32 %v1258_v31 }
 0x271   : > { %v3780_v11 = vpop.eup %3779 }
 0x272   : > { %v1261_v46 = vmul.f32 %v3780_v11, %v1260_v34 }
 0x274   : > { %v4580_v21 = vadd.f32 %v1262_v26, %v1261_v46 }
 0x276   : > { %v1270_v43 = vpack.c.bf16 %v4580_v21, %v4580_v21 }
 0x278   : > { %1304 = vmatmul.mubr.bf16.vlgmr.msra.gmra.mrb[24].mxu1 %v1270_v43  ;;  %3339 = vmatmul.mubr.bf16.vlgmr.msra.gmra.mrb[40].mxu0 %v1270_v43 }
 0x279   : > { %1382 = vmatpush1.bf16.msra.mxu1 %v4178_v44  ;;  %3343 = vmatpush3.bf16.msra.mxu0 %v4183_v45 }
 0x27a   : > { %1383 = vmatprep.subr.bf16.mxu1 %v4190_v47  ;;  %3344 = vmatprep.subr.bf16.mxu0 %v5485_v15 }
 0x27b   : > { %1413 = vmatprep.mubr.bf16.mxu1 %v5486_v23  ;;  %3358 = vmatprep.mubr.msk.bf16.mxu0 %vm3996_vm0, %v5485_v15 }
 0x27d   : > { %1384 = vmatpush1.bf16.msra.mxu1 %v4196_v49  ;;  %3345 = vmatpush3.bf16.msra.mxu0 %v4203_v50 }
 0x27e   : > { %1385 = vmatprep.subr.bf16.mxu1 %v4210_v51  ;;  %3346 = vmatprep.subr.bf16.mxu0 %v5485_v15 }
 0x281   : > { %1386 = vmatpush1.bf16.msra.mxu1 %v4217_v53  ;;  %3347 = vmatpush3.bf16.msra.mxu0 %v4232_v56 }
 0x282   : > { %1387 = vmatprep.subr.bf16.mxu1 %v4224_v54  ;;  %3348 = vmatprep.subr.bf16.mxu0 %v5485_v15 }
 0x285   : > { %1388 = vmatpush1.bf16.msra.mxu1 %v4238_v57  ;;  %3349 = vmatpush3.bf16.msra.mxu0 %v4251_v59 }
 0x286   : > { %1389 = vmatprep.subr.bf16.mxu1 %v4245_v58  ;;  %3350 = vmatprep.subr.bf16.mxu0 %v5485_v15 }
 0x289   : > { %1390 = vmatpush1.bf16.msra.mxu1 %v4259_v61  ;;  %3351 = vmatpush3.bf16.msra.mxu0 %v4272_v0 }
 0x28a   : > { %1391 = vmatprep.subr.bf16.mxu1 %v4265_v62  ;;  %3352 = vmatprep.subr.bf16.mxu0 %v5485_v15 }
 0x28d   : > { %1392 = vmatpush1.bf16.msra.mxu1 %v4278_v1  ;;  %3353 = vmatpush3.bf16.msra.mxu0 %v4306_v6 }
 0x28e   : > { %1393 = vmatprep.subr.bf16.mxu1 %v4285_v2  ;;  %3354 = vmatprep.subr.bf16.mxu0 %v5485_v15 }
 0x291   : > { %1394 = vmatpush1.bf16.msra.mxu1 %v4294_v4  ;;  %3355 = vmatpush3.bf16.msra.mxu0 %v4321_v8 }
 0x292   : > { %1395 = vmatprep.subr.bf16.mxu1 %v4301_v5  ;;  %3356 = vmatprep.subr.bf16.mxu0 %v5485_v15 }
 0x295   : > { %1396 = vmatpush1.bf16.msra.mxu1 %v4312_v7  ;;  %3357 = vmatpush3.bf16.msra.mxu0 %v4330_v9 }
 0x296   : > { %1491 = vmatprep.subr.bf16.mxu1 %v4172_v42  ;;  %3362 = vmatprep.subr.bf16.mxu0 %v5485_v15 }
 0x34b   : > { %v1305_v32 = vpop.f32.mrb[24].mxu1  ;;  %v1346_v40 = vpop.f32.mrb[40].mxu0 }
 0x34c   : > { %v1352_v25 = vadd.f32 %v1305_v32, %v4406_v35  ;;  %v1307_v33 = vpop.f32.mrb[25].mxu1  ;;  %v3340_v52 = vpop.f32.mrb[41].mxu0  ;;  %v1366_v11 = vadd.f32 %v4531_v14, %v1346_v40 }
 0x34d   : > { %v1359_v17 = vadd.f32 %v1307_v33, %v4412_v39  ;;  %v1309_v20 = vpop.f32.mrb[26].mxu1  ;;  %v1349_v28 = vpop.f32.mrb[42].mxu0 }
 0x34e   : > { %v3042_v24 = vmul.f32 -1.442695, %v1352_v25  ;;  %v1310_v10 = vpop.f32.mrb[27].mxu1  ;;  %v3341_v18 = vpop.f32.mrb[43].mxu0 }
 0x34f   : > { %v3043_v27 = vmul.f32 -1.442695, %v1359_v17 }
 0x350   : > { %3781 = vpow2.f32 %v3042_v24 }
 0x351   : > { %3783 = vpow2.f32 %v3043_v27 }
 0x35a   : > { %v3782_v55 = vpop.eup %3781 }
 0x35b   : > { %v1356_v31 = vadd.f32 1.0, %v3782_v55  ;;  %v3784_v13 = vpop.eup %3783 }
 0x35c   : > { %v1363_v34 = vadd.f32 1.0, %v3784_v13 }
 0x35d   : > { %3785 = vrcp.f32 %v1356_v31 }
 0x35e   : > { %3787 = vrcp.f32 %v1363_v34 }
 0x367   : > { %v3786_v35 = vpop.eup %3785 }
 0x368   : > { %v1367_v46 = vmul.f32 %v3786_v35, %v1366_v11  ;;  %v3788_v26 = vpop.eup %3787 }
 0x369   : > { %v1370_v43 = vsub.f32 1.0, %v3788_v26  ;;  %v1372_v33 = vmul.f32 %v3788_v26, %v4580_v21 }
 0x36a   : > { %v1368_v39 = vadd.f32 %v1367_v46, %v4387_v22 }
 0x36c   : > { %3789 = vtanh.f32 %v1368_v39 }
 0x376   : > { %v3790_v32 = vpop.eup %3789 }
 0x377   : > { %v1371_v25 = vmul.f32 %v3790_v32, %v1370_v43 }
 0x379   : > { %v4624_v52 = vadd.f32 %v1372_v33, %v1371_v25 }
 0x37b   : > { %v1380_v17 = vpack.c.bf16 %v4624_v52, %v4624_v52 }
 0x37d   : > { %1414 = vmatmul.mubr.bf16.vlgmr.msra.gmra.mrb[28].mxu1 %v1380_v17  ;;  %3359 = vmatmul.mubr.bf16.vlgmr.msra.gmra.mrb[44].mxu0 %v1380_v17 }
 0x37e   : > { %1492 = vmatpush1.bf16.msra.mxu1 %v4178_v44  ;;  %3363 = vmatpush3.bf16.msra.mxu0 %v4183_v45 }
 0x37f   : > { %1493 = vmatprep.subr.bf16.mxu1 %v4190_v47  ;;  %3364 = vmatprep.subr.bf16.mxu0 %v5485_v15 }
 0x380   : > { %1523 = vmatprep.mubr.bf16.mxu1 %v5486_v23  ;;  %3378 = vmatprep.mubr.msk.bf16.mxu0 %vm3996_vm0, %v5485_v15 }
 0x382   : > { %1494 = vmatpush1.bf16.msra.mxu1 %v4196_v49  ;;  %3365 = vmatpush3.bf16.msra.mxu0 %v4203_v50 }
 0x383   : > { %1495 = vmatprep.subr.bf16.mxu1 %v4210_v51  ;;  %3366 = vmatprep.subr.bf16.mxu0 %v5485_v15 }
 0x386   : > { %1496 = vmatpush1.bf16.msra.mxu1 %v4217_v53  ;;  %3367 = vmatpush3.bf16.msra.mxu0 %v4232_v56 }
 0x387   : > { %1497 = vmatprep.subr.bf16.mxu1 %v4224_v54  ;;  %3368 = vmatprep.subr.bf16.mxu0 %v5485_v15 }
 0x38a   : > { %1498 = vmatpush1.bf16.msra.mxu1 %v4238_v57  ;;  %3369 = vmatpush3.bf16.msra.mxu0 %v4251_v59 }
 0x38b   : > { %1499 = vmatprep.subr.bf16.mxu1 %v4245_v58  ;;  %3370 = vmatprep.subr.bf16.mxu0 %v5485_v15 }
 0x38e   : > { %1500 = vmatpush1.bf16.msra.mxu1 %v4259_v61  ;;  %3371 = vmatpush3.bf16.msra.mxu0 %v4272_v0 }
 0x38f   : > { %1501 = vmatprep.subr.bf16.mxu1 %v4265_v62  ;;  %3372 = vmatprep.subr.bf16.mxu0 %v5485_v15 }
 0x392   : > { %1502 = vmatpush1.bf16.msra.mxu1 %v4278_v1  ;;  %3373 = vmatpush3.bf16.msra.mxu0 %v4306_v6 }
 0x393   : > { %1503 = vmatprep.subr.bf16.mxu1 %v4285_v2  ;;  %3374 = vmatprep.subr.bf16.mxu0 %v5485_v15 }
 0x396   : > { %1504 = vmatpush1.bf16.msra.mxu1 %v4294_v4  ;;  %3375 = vmatpush3.bf16.msra.mxu0 %v4321_v8 }
 0x397   : > { %1505 = vmatprep.subr.bf16.mxu1 %v4301_v5  ;;  %3376 = vmatprep.subr.bf16.mxu0 %v5485_v15 }
 0x39a   : > { %1506 = vmatpush1.bf16.msra.mxu1 %v4312_v7  ;;  %3377 = vmatpush3.bf16.msra.mxu0 %v4330_v9 }
 0x39b   : > { %1601 = vmatprep.subr.bf16.mxu1 %v4172_v42  ;;  %3382 = vmatprep.subr.bf16.mxu0 %v5485_v15 }
 0x450   : > { %v1415_v22 = vpop.f32.mrb[28].mxu1  ;;  %v1456_v21 = vpop.f32.mrb[44].mxu0 }
 0x451   : > { %v1462_v40 = vadd.f32 %v1415_v22, %v4418_v48  ;;  %v1417_v20 = vpop.f32.mrb[29].mxu1  ;;  %v3360_v28 = vpop.f32.mrb[45].mxu0  ;;  %v1476_v46 = vadd.f32 %v4531_v14, %v1456_v21 }
 0x452   : > { %v1469_v24 = vadd.f32 %v1417_v20, %v4424_v63  ;;  %v1419_v10 = vpop.f32.mrb[30].mxu1  ;;  %v1459_v18 = vpop.f32.mrb[46].mxu0 }
 0x453   : > { %v3044_v27 = vmul.f32 -1.442695, %v1462_v40  ;;  %v1420_v55 = vpop.f32.mrb[31].mxu1  ;;  %v3361_v31 = vpop.f32.mrb[47].mxu0 }
 0x454   : > { %v3045_v13 = vmul.f32 -1.442695, %v1469_v24 }
 0x455   : > { %3791 = vpow2.f32 %v3044_v27 }
 0x456   : > { %3793 = vpow2.f32 %v3045_v13  ;;  %v4724_v13 = vld [vmem:[%s5449_s2] ss:$12 sps:$4 sm:$0xff]  }
 0x45f   : > { %v3792_v34 = vpop.eup %3791 }
 0x460   : > { %v1466_v42 = vadd.f32 1.0, %v3792_v34  ;;  %v3794_v11 = vpop.eup %3793  ;;  %v4736_v34 = vld [vmem:[%s5449_s2 + $0x1c] ss:$12 sps:$4 sm:$0xff]  }
 0x461   : > { %v1473_v35 = vadd.f32 1.0, %v3794_v11  ;;  %v4752_v11 = vld [vmem:[%s5449_s2 + $0x20] ss:$12 sps:$4 sm:$0xff]  }
 0x462   : > { %3795 = vrcp.f32 %v1466_v42  ;;  %v4746_v42 = vld [vmem:[%s5449_s2 + $0x18] ss:$12 sps:$4 sm:$0xff]  }
 0x463   : > { %3797 = vrcp.f32 %v1473_v35  ;;  %v4758_v35 = vld [vmem:[%s5449_s2 + $0x34] ss:$12 sps:$4 sm:$0xff]  }
 0x46c   : > { %v3796_v48 = vpop.eup %3795 }
 0x46d   : > { %v1477_v39 = vmul.f32 %v3796_v48, %v1476_v46  ;;  %v3798_v26 = vpop.eup %3797  ;;  %v4765_v46 = vld [vmem:[%s5449_s2 + $0x30] ss:$12 sps:$4 sm:$0xff]   ;;  %v4771_v48 = vld [vmem:[%s5449_s2 + $0x38] ss:$12 sps:$4 sm:$0xff]  }
 0x46e   : > { %v1480_v43 = vsub.f32 1.0, %v3798_v26  ;;  %v1482_v33 = vmul.f32 %v3798_v26, %v4624_v52  ;;  %v4790_v26 = vld [vmem:[%s5449_s2 + $0x50] ss:$12 sps:$4 sm:$0xff]  }
 0x46f   : > { %v1478_v63 = vadd.f32 %v1477_v39, %v4397_v29  ;;  %v4777_v39 = vld [vmem:[%s5449_s2 + $0x4c] ss:$12 sps:$4 sm:$0xff]  }
 0x471   : > { %3799 = vtanh.f32 %v1478_v63  ;;  %v4784_v63 = vld [vmem:[%s5449_s2 + $0x48] ss:$12 sps:$4 sm:$0xff]  }
 0x47b   : > { %v3800_v32 = vpop.eup %3799 }
 0x47c   : > { %v1481_v25 = vmul.f32 %v3800_v32, %v1480_v43  ;;  %v4796_v43 = vld [vmem:[%s5449_s2 + $0x64] ss:$12 sps:$4 sm:$0xff]   ;;  %v4803_v32 = vld [vmem:[%s5449_s2 + $0x60] ss:$12 sps:$4 sm:$0xff]  }
 0x47e   : > { %v4668_v17 = vadd.f32 %v1482_v33, %v1481_v25  ;;  %v4810_v25 = vld [vmem:[%s5449_s2 + $0x7c] ss:$12 sps:$4 sm:$0xff]  }
 0x480   : > { %v1490_v22 = vpack.c.bf16 %v4668_v17, %v4668_v17 }
 0x482   : > { %1524 = vmatmul.mubr.bf16.vlgmr.msra.gmra.mrb[32].mxu1 %v1490_v22  ;;  %3379 = vmatmul.mubr.bf16.vlgmr.msra.gmra.mrb[48].mxu0 %v1490_v22 }
 0x483   : > { %1602 = vmatpush1.bf16.msra.mxu1 %v4178_v44  ;;  %3383 = vmatpush3.bf16.msra.mxu0 %v4183_v45  ;;  %v4708_v44 = vld [vmem:[%s5449_s2 + $0x4] ss:$12 sps:$4 sm:$0xff]  }
 0x484   : > { %1603 = vmatprep.subr.bf16.mxu1 %v4190_v47  ;;  %3384 = vmatprep.subr.bf16.mxu0 %v5485_v15 }
 0x485   : > { %1633 = vmatprep.mubr.bf16.mxu1 %v5486_v23  ;;  %3398 = vmatprep.mubr.msk.bf16.mxu0 %vm3996_vm0, %v5485_v15 }
 0x487   : > { %1604 = vmatpush1.bf16.msra.mxu1 %v4196_v49  ;;  %3385 = vmatpush3.bf16.msra.mxu0 %v4203_v50 }
 0x488   : > { %1605 = vmatprep.subr.bf16.mxu1 %v4210_v51  ;;  %3386 = vmatprep.subr.bf16.mxu0 %v5485_v15 }
 0x48b   : > { %1606 = vmatpush1.bf16.msra.mxu1 %v4217_v53  ;;  %3387 = vmatpush3.bf16.msra.mxu0 %v4232_v56 }
 0x48c   : > { %1607 = vmatprep.subr.bf16.mxu1 %v4224_v54  ;;  %3388 = vmatprep.subr.bf16.mxu0 %v5485_v15 }
 0x48f   : > { %1608 = vmatpush1.bf16.msra.mxu1 %v4238_v57  ;;  %3389 = vmatpush3.bf16.msra.mxu0 %v4251_v59 }
 0x490   : > { %1609 = vmatprep.subr.bf16.mxu1 %v4245_v58  ;;  %3390 = vmatprep.subr.bf16.mxu0 %v5485_v15 }
 0x493   : > { %1610 = vmatpush1.bf16.msra.mxu1 %v4259_v61  ;;  %3391 = vmatpush3.bf16.msra.mxu0 %v4272_v0 }
 0x494   : > { %1611 = vmatprep.subr.bf16.mxu1 %v4265_v62  ;;  %3392 = vmatprep.subr.bf16.mxu0 %v5485_v15 }
 0x497   : > { %1612 = vmatpush1.bf16.msra.mxu1 %v4278_v1  ;;  %3393 = vmatpush3.bf16.msra.mxu0 %v4306_v6 }
 0x498   : > { %1613 = vmatprep.subr.bf16.mxu1 %v4285_v2  ;;  %3394 = vmatprep.subr.bf16.mxu0 %v5485_v15 }
 0x49b   : > { %1614 = vmatpush1.bf16.msra.mxu1 %v4294_v4  ;;  %3395 = vmatpush3.bf16.msra.mxu0 %v4321_v8 }
 0x49c   : > { %1615 = vmatprep.subr.bf16.mxu1 %v4301_v5  ;;  %3396 = vmatprep.subr.bf16.mxu0 %v5485_v15 }
 0x49f   : > { %1616 = vmatpush1.bf16.msra.mxu1 %v4312_v7  ;;  %3397 = vmatpush3.bf16.msra.mxu0 %v4330_v9 }
 0x4a0   : > { %1711 = vmatprep.subr.bf16.mxu1 %v4708_v44  ;;  %3402 = vmatprep.subr.bf16.mxu0 %v5485_v15 }
 0x555   : > { %v1525_v45 = vpop.f32.mrb[32].mxu1  ;;  %v1566_v47 = vpop.f32.mrb[48].mxu0 }
 0x556   : > { %v1572_v49 = vadd.f32 %v1525_v45, %v4430_v12  ;;  %v1527_v50 = vpop.f32.mrb[33].mxu1  ;;  %v3380_v51 = vpop.f32.mrb[49].mxu0  ;;  %v1586_v40 = vadd.f32 %v4531_v14, %v1566_v47 }
 0x557   : > { %v1579_v53 = vadd.f32 %v1527_v50, %v4436_v19  ;;  %v1529_v54 = vpop.f32.mrb[34].mxu1  ;;  %v1569_v56 = vpop.f32.mrb[50].mxu0 }
 0x558   : > { %v3046_v57 = vmul.f32 -1.442695, %v1572_v49  ;;  %v1530_v58 = vpop.f32.mrb[35].mxu1  ;;  %v3381_v59 = vpop.f32.mrb[51].mxu0 }
 0x559   : > { %v3047_v61 = vmul.f32 -1.442695, %v1579_v53 }
 0x55a   : > { %3801 = vpow2.f32 %v3046_v57 }
 0x55b   : > { %3803 = vpow2.f32 %v3047_v61 }
 0x564   : > { %v3802_v62 = vpop.eup %3801 }
 0x565   : > { %v1576_v29 = vadd.f32 1.0, %v3802_v62  ;;  %v3804_v52 = vpop.eup %3803 }
 0x566   : > { %v1583_v21 = vadd.f32 1.0, %v3804_v52  ;;  %v4872_v52 = vld [vmem:[%s5449_s2 + $0x80] ss:$12 sps:$4 sm:$0xff]  }
 0x567   : > { %3805 = vrcp.f32 %v1576_v29  ;;  %v4866_v29 = vld [vmem:[%s5449_s2 + $0x78] ss:$12 sps:$4 sm:$0xff]  }
 0x568   : > { %3807 = vrcp.f32 %v1583_v21  ;;  %v4878_v21 = vld [vmem:[%s5449_s2 + $0x94] ss:$12 sps:$4 sm:$0xff]  }
 0x571   : > { %v3806_v12 = vpop.eup %3805 }
 0x572   : > { %v1587_v20 = vmul.f32 %v3806_v12, %v1586_v40  ;;  %v3808_v28 = vpop.eup %3807  ;;  %v4885_v40 = vld [vmem:[%s5449_s2 + $0x90] ss:$12 sps:$4 sm:$0xff]   ;;  %v4891_v12 = vld [vmem:[%s5449_s2 + $0x98] ss:$12 sps:$4 sm:$0xff]  }
 0x573   : > { %v1590_v24 = vsub.f32 1.0, %v3808_v28  ;;  %v1592_v27 = vmul.f32 %v3808_v28, %v4668_v17  ;;  %v4910_v28 = vld [vmem:[%s5449_s2 + $0xb0] ss:$12 sps:$4 sm:$0xff]  }
 0x574   : > { %v1588_v19 = vadd.f32 %v1587_v20, %v4415_v41  ;;  %v4730_v41 = vld [vmem:[%s5449_s2 + $0x8] ss:$12 sps:$4 sm:$0xff]   ;;  %v4897_v20 = vld [vmem:[%s5449_s2 + $0xac] ss:$12 sps:$4 sm:$0xff]  }
 0x576   : > { %3809 = vtanh.f32 %v1588_v19  ;;  %v4904_v19 = vld [vmem:[%s5449_s2 + $0xa8] ss:$12 sps:$4 sm:$0xff]  }
 0x580   : > { %v3810_v10 = vpop.eup %3809 }
 0x581   : > { %v1591_v18 = vmul.f32 %v3810_v10, %v1590_v24 }
 0x583   : > { %v4717_v55 = vadd.f32 %v1592_v27, %v1591_v18 }
 0x585   : > { %v1600_v31 = vpack.c.bf16 %v4717_v55, %v4717_v55 }
 0x587   : > { %1634 = vmatmul.mubr.bf16.vlgmr.msra.gmra.mrb[36].mxu1 %v1600_v31  ;;  %3399 = vmatmul.mubr.bf16.vlgmr.msra.gmra.mrb[52].mxu0 %v1600_v31 }
 0x588   : > { %1712 = vmatpush1.bf16.msra.mxu1 %v4724_v13  ;;  %3403 = vmatpush3.bf16.msra.mxu0 %v4730_v41 }
 0x589   : > { %1713 = vmatprep.subr.bf16.mxu1 %v4736_v34  ;;  %3404 = vmatprep.subr.bf16.mxu0 %v5485_v15 }
 0x58a   : > { %1743 = vmatprep.mubr.bf16.mxu1 %v5486_v23  ;;  %3418 = vmatprep.mubr.msk.bf16.mxu0 %vm3996_vm0, %v5485_v15 }
 0x58c   : > { %1714 = vmatpush1.bf16.msra.mxu1 %v4746_v42  ;;  %3405 = vmatpush3.bf16.msra.mxu0 %v4752_v11 }
 0x58d   : > { %1715 = vmatprep.subr.bf16.mxu1 %v4758_v35  ;;  %3406 = vmatprep.subr.bf16.mxu0 %v5485_v15 }
 0x590   : > { %1716 = vmatpush1.bf16.msra.mxu1 %v4765_v46  ;;  %3407 = vmatpush3.bf16.msra.mxu0 %v4771_v48 }
 0x591   : > { %1717 = vmatprep.subr.bf16.mxu1 %v4777_v39  ;;  %3408 = vmatprep.subr.bf16.mxu0 %v5485_v15 }
 0x594   : > { %1718 = vmatpush1.bf16.msra.mxu1 %v4784_v63  ;;  %3409 = vmatpush3.bf16.msra.mxu0 %v4790_v26 }
 0x595   : > { %1719 = vmatprep.subr.bf16.mxu1 %v4796_v43  ;;  %3410 = vmatprep.subr.bf16.mxu0 %v5485_v15 }
 0x598   : > { %1720 = vmatpush1.bf16.msra.mxu1 %v4803_v32  ;;  %3411 = vmatpush3.bf16.msra.mxu0 %v4272_v0 }
 0x599   : > { %1721 = vmatprep.subr.bf16.mxu1 %v4810_v25  ;;  %3412 = vmatprep.subr.bf16.mxu0 %v5485_v15 }
 0x59c   : > { %1722 = vmatpush1.bf16.msra.mxu1 %v4278_v1  ;;  %3413 = vmatpush3.bf16.msra.mxu0 %v4306_v6 }
 0x59d   : > { %1723 = vmatprep.subr.bf16.mxu1 %v4285_v2  ;;  %3414 = vmatprep.subr.bf16.mxu0 %v5485_v15 }
 0x5a0   : > { %1724 = vmatpush1.bf16.msra.mxu1 %v4294_v4  ;;  %3415 = vmatpush3.bf16.msra.mxu0 %v4321_v8 }
 0x5a1   : > { %1725 = vmatprep.subr.bf16.mxu1 %v4301_v5  ;;  %3416 = vmatprep.subr.bf16.mxu0 %v5485_v15 }
 0x5a4   : > { %1726 = vmatpush1.bf16.msra.mxu1 %v4312_v7  ;;  %3417 = vmatpush3.bf16.msra.mxu0 %v4330_v9 }
 0x5a5   : > { %1821 = vmatprep.subr.bf16.mxu1 %v4708_v44  ;;  %3422 = vmatprep.subr.bf16.mxu0 %v5485_v15 }
 0x65a   : > { %v1635_v0 = vpop.f32.mrb[36].mxu1  ;;  %v1676_v1 = vpop.f32.mrb[52].mxu0 }
 0x65b   : > { %v1682_v2 = vadd.f32 %v1635_v0, %v4442_v30  ;;  %v1637_v6 = vpop.f32.mrb[37].mxu1  ;;  %v3400_v4 = vpop.f32.mrb[53].mxu0  ;;  %v1696_v51 = vadd.f32 %v4531_v14, %v1676_v1 }
 0x65c   : > { %v1689_v8 = vadd.f32 %v1637_v6, %v4448_v38  ;;  %v1639_v33 = vpop.f32.mrb[38].mxu1  ;;  %v1679_v5 = vpop.f32.mrb[54].mxu0 }
 0x65d   : > { %v3048_v17 = vmul.f32 -1.442695, %v1682_v2  ;;  %v1640_v22 = vpop.f32.mrb[39].mxu1  ;;  %v3401_v45 = vpop.f32.mrb[55].mxu0 }
 0x65e   : > { %v3049_v7 = vmul.f32 -1.442695, %v1689_v8 }
 0x65f   : > { %3811 = vpow2.f32 %v3048_v17 }
 0x660   : > { %3813 = vpow2.f32 %v3049_v7 }
 0x669   : > { %v3812_v9 = vpop.eup %3811 }
 0x66a   : > { %v1686_v47 = vadd.f32 1.0, %v3812_v9  ;;  %v3814_v49 = vpop.eup %3813 }
 0x66b   : > { %v1693_v50 = vadd.f32 1.0, %v3814_v49 }
 0x66c   : > { %3815 = vrcp.f32 %v1686_v47 }
 0x66d   : > { %3817 = vrcp.f32 %v1693_v50 }
 0x676   : > { %v3816_v30 = vpop.eup %3815 }
 0x677   : > { %v1697_v53 = vmul.f32 %v3816_v30, %v1696_v51  ;;  %v3818_v54 = vpop.eup %3817 }
 0x678   : > { %v1700_v56 = vsub.f32 1.0, %v3818_v54  ;;  %v1702_v59 = vmul.f32 %v3818_v54, %v4717_v55 }
 0x679   : > { %v1698_v38 = vadd.f32 %v1697_v53, %v4427_v3  ;;  %v4858_v3 = vld [vmem:[%s5449_s2 + $0x68] ss:$12 sps:$4 sm:$0xff]  }
 0x67b   : > { %3819 = vtanh.f32 %v1698_v38 }
 0x685   : > { %v3820_v57 = vpop.eup %3819 }
 0x686   : > { %v1701_v58 = vmul.f32 %v3820_v57, %v1700_v56 }
 0x688   : > { %v4831_v61 = vadd.f32 %v1702_v59, %v1701_v58  ;;  %v5487_v58 = vld [vmem:[#allocation12_spill] sm:$0xff] }
 0x68a   : > { %v1710_v62 = vpack.c.bf16 %v4831_v61, %v4831_v61 }
 0x68c   : > { %1744 = vmatmul.mubr.bf16.vlgmr.msra.gmra.mrb[40].mxu1 %v1710_v62  ;;  %3419 = vmatmul.mubr.bf16.vlgmr.msra.gmra.mrb[56].mxu0 %v1710_v62 }
 0x68d   : > { %1822 = vmatpush1.bf16.msra.mxu1 %v4724_v13  ;;  %3423 = vmatpush3.bf16.msra.mxu0 %v4730_v41 }
 0x68e   : > { %1823 = vmatprep.subr.bf16.mxu1 %v4736_v34  ;;  %3424 = vmatprep.subr.bf16.mxu0 %v5485_v15 }
 0x68f   : > { %1853 = vmatprep.mubr.bf16.mxu1 %v5486_v23  ;;  %3438 = vmatprep.mubr.msk.bf16.mxu0 %vm3996_vm0, %v5485_v15 }
 0x691   : > { %1824 = vmatpush1.bf16.msra.mxu1 %v4746_v42  ;;  %3425 = vmatpush3.bf16.msra.mxu0 %v4752_v11 }
 0x692   : > { %1825 = vmatprep.subr.bf16.mxu1 %v4758_v35  ;;  %3426 = vmatprep.subr.bf16.mxu0 %v5485_v15 }
 0x695   : > { %1826 = vmatpush1.bf16.msra.mxu1 %v4765_v46  ;;  %3427 = vmatpush3.bf16.msra.mxu0 %v4771_v48 }
 0x696   : > { %1827 = vmatprep.subr.bf16.mxu1 %v4777_v39  ;;  %3428 = vmatprep.subr.bf16.mxu0 %v5485_v15 }
 0x699   : > { %1828 = vmatpush1.bf16.msra.mxu1 %v4784_v63  ;;  %3429 = vmatpush3.bf16.msra.mxu0 %v4790_v26 }
 0x69a   : > { %1829 = vmatprep.subr.bf16.mxu1 %v4796_v43  ;;  %3430 = vmatprep.subr.bf16.mxu0 %v5485_v15 }
 0x69d   : > { %1830 = vmatpush1.bf16.msra.mxu1 %v4803_v32  ;;  %3431 = vmatpush3.bf16.msra.mxu0 %v4858_v3 }
 0x69e   : > { %1831 = vmatprep.subr.bf16.mxu1 %v4810_v25  ;;  %3432 = vmatprep.subr.bf16.mxu0 %v5485_v15 }
 0x6a1   : > { %1832 = vmatpush1.bf16.msra.mxu1 %v4866_v29  ;;  %3433 = vmatpush3.bf16.msra.mxu0 %v4872_v52 }
 0x6a2   : > { %1833 = vmatprep.subr.bf16.mxu1 %v4878_v21  ;;  %3434 = vmatprep.subr.bf16.mxu0 %v5485_v15 }
 0x6a5   : > { %1834 = vmatpush1.bf16.msra.mxu1 %v4885_v40  ;;  %3435 = vmatpush3.bf16.msra.mxu0 %v4891_v12 }
 0x6a6   : > { %1835 = vmatprep.subr.bf16.mxu1 %v4897_v20  ;;  %3436 = vmatprep.subr.bf16.mxu0 %v5485_v15 }
 0x6a9   : > { %1836 = vmatpush1.bf16.msra.mxu1 %v4904_v19  ;;  %3437 = vmatpush3.bf16.msra.mxu0 %v4910_v28 }
 0x6aa   : > { %1931 = vmatprep.subr.bf16.mxu1 %v4708_v44  ;;  %3442 = vmatprep.subr.bf16.mxu0 %v5485_v15 }
 0x75f   : > { %v1745_v24 = vpop.f32.mrb[40].mxu1  ;;  %v1786_v10 = vpop.f32.mrb[56].mxu0 }
 0x760   : > { %v1792_v18 = vadd.f32 %v1745_v24, %v4454_v60  ;;  %v1747_v27 = vpop.f32.mrb[41].mxu1  ;;  %v3420_v55 = vpop.f32.mrb[57].mxu0  ;;  %v1806_v45 = vadd.f32 %v4531_v14, %v1786_v10 }
 0x761   : > { %v1799_v31 = vadd.f32 %v1747_v27, %v4460_v16  ;;  %v1749_v0 = vpop.f32.mrb[42].mxu1  ;;  %v1789_v1 = vpop.f32.mrb[58].mxu0 }
 0x762   : > { %v3050_v2 = vmul.f32 -1.442695, %v1792_v18  ;;  %v1750_v6 = vpop.f32.mrb[43].mxu1  ;;  %v3421_v4 = vpop.f32.mrb[59].mxu0 }
 0x763   : > { %v3051_v8 = vmul.f32 -1.442695, %v1799_v31  ;;  %v5488_v4 = vld [vmem:[#allocation4_spill] sm:$0xff] }
 0x764   : > { %3821 = vpow2.f32 %v3050_v2 }
 0x765   : > { %3823 = vpow2.f32 %v3051_v8 }
 0x76e   : > { %v3822_v33 = vpop.eup %3821 }
 0x76f   : > { %v1796_v5 = vadd.f32 1.0, %v3822_v33  ;;  %v3824_v17 = vpop.eup %3823 }
 0x770   : > { %v1803_v22 = vadd.f32 1.0, %v3824_v17 }
 0x771   : > { %3825 = vrcp.f32 %v1796_v5 }
 0x772   : > { %3827 = vrcp.f32 %v1803_v22 }
 0x77b   : > { %v3826_v60 = vpop.eup %3825 }
 0x77c   : > { %v1807_v7 = vmul.f32 %v3826_v60, %v1806_v45  ;;  %v3828_v9 = vpop.eup %3827 }
 0x77d   : > { %v1810_v47 = vsub.f32 1.0, %v3828_v9  ;;  %v1812_v51 = vmul.f32 %v3828_v9, %v4831_v61  ;;  %v5489_v9 = vld [vmem:[#allocation14_spill] sm:$0xff] }
 0x77e   : > { %v1808_v16 = vadd.f32 %v1807_v7, %v4409_v37 }
 0x780   : > { %3829 = vtanh.f32 %v1808_v16 }
 0x78a   : > { %v3830_v49 = vpop.eup %3829 }
 0x78b   : > { %v1811_v50 = vmul.f32 %v3830_v49, %v1810_v47 }
 0x78d   : > { %v4920_v30 = vadd.f32 %v1812_v51, %v1811_v50  ;;  %v5490_v51 = vld [vmem:[#allocation15_spill] sm:$0xff] }
 0x78f   : > { %v1820_v53 = vpack.c.bf16 %v4920_v30, %v4920_v30 }
 0x791   : > { %1854 = vmatmul.mubr.bf16.vlgmr.msra.gmra.mrb[44].mxu1 %v1820_v53  ;;  %3439 = vmatmul.mubr.bf16.vlgmr.msra.gmra.mrb[60].mxu0 %v1820_v53 }
 0x792   : > { %1932 = vmatpush1.bf16.msra.mxu1 %v4724_v13  ;;  %3443 = vmatpush3.bf16.msra.mxu0 %v4730_v41 }
 0x793   : > { %1933 = vmatprep.subr.bf16.mxu1 %v4736_v34  ;;  %3444 = vmatprep.subr.bf16.mxu0 %v5485_v15 }
 0x794   : > { %1963 = vmatprep.mubr.bf16.mxu1 %v5486_v23  ;;  %3458 = vmatprep.mubr.msk.bf16.mxu0 %vm3996_vm0, %v5485_v15 }
 0x796   : > { %1934 = vmatpush1.bf16.msra.mxu1 %v4746_v42  ;;  %3445 = vmatpush3.bf16.msra.mxu0 %v4752_v11 }
 0x797   : > { %1935 = vmatprep.subr.bf16.mxu1 %v4758_v35  ;;  %3446 = vmatprep.subr.bf16.mxu0 %v5485_v15 }
 0x79a   : > { %1936 = vmatpush1.bf16.msra.mxu1 %v4765_v46  ;;  %3447 = vmatpush3.bf16.msra.mxu0 %v4771_v48 }
 0x79b   : > { %1937 = vmatprep.subr.bf16.mxu1 %v4777_v39  ;;  %3448 = vmatprep.subr.bf16.mxu0 %v5485_v15 }
 0x79e   : > { %1938 = vmatpush1.bf16.msra.mxu1 %v4784_v63  ;;  %3449 = vmatpush3.bf16.msra.mxu0 %v4790_v26 }
 0x79f   : > { %1939 = vmatprep.subr.bf16.mxu1 %v4796_v43  ;;  %3450 = vmatprep.subr.bf16.mxu0 %v5485_v15 }
 0x7a2   : > { %1940 = vmatpush1.bf16.msra.mxu1 %v4803_v32  ;;  %3451 = vmatpush3.bf16.msra.mxu0 %v4858_v3 }
 0x7a3   : > { %1941 = vmatprep.subr.bf16.mxu1 %v4810_v25  ;;  %3452 = vmatprep.subr.bf16.mxu0 %v5485_v15 }
 0x7a6   : > { %1942 = vmatpush1.bf16.msra.mxu1 %v4866_v29  ;;  %3453 = vmatpush3.bf16.msra.mxu0 %v4872_v52 }
 0x7a7   : > { %1943 = vmatprep.subr.bf16.mxu1 %v4878_v21  ;;  %3454 = vmatprep.subr.bf16.mxu0 %v5485_v15 }
 0x7aa   : > { %1944 = vmatpush1.bf16.msra.mxu1 %v4885_v40  ;;  %3455 = vmatpush3.bf16.msra.mxu0 %v4891_v12 }
 0x7ab   : > { %1945 = vmatprep.subr.bf16.mxu1 %v4897_v20  ;;  %3456 = vmatprep.subr.bf16.mxu0 %v5485_v15 }
 0x7ae   : > { %1946 = vmatpush1.bf16.msra.mxu1 %v4904_v19  ;;  %3457 = vmatpush3.bf16.msra.mxu0 %v4910_v28 }
 0x7af   : > { %2041 = vmatprep.subr.bf16.mxu1 %v4708_v44  ;;  %3462 = vmatprep.subr.bf16.mxu0 %v5485_v15 }
 0x864   : > { %v1855_v37 = vpop.f32.mrb[44].mxu1  ;;  %v1896_v38 = vpop.f32.mrb[60].mxu0 }
 0x865   : > { %v1902_v54 = vadd.f32 %v1855_v37, %v4466_v36  ;;  %v1857_v56 = vpop.f32.mrb[45].mxu1  ;;  %v3440_v57 = vpop.f32.mrb[61].mxu0  ;;  %v1916_v2 = vadd.f32 %v4531_v14, %v1896_v38 }
 0x866   : > { %v1909_v59 = vadd.f32 %v1857_v56, %v5487_v58  ;;  %v1859_v61 = vpop.f32.mrb[46].mxu1  ;;  %v1899_v62 = vpop.f32.mrb[62].mxu0 }
 0x867   : > { %v3052_v24 = vmul.f32 -1.442695, %v1902_v54  ;;  %v1860_v10 = vpop.f32.mrb[47].mxu1  ;;  %v3441_v18 = vpop.f32.mrb[63].mxu0 }
 0x868   : > { %v3053_v27 = vmul.f32 -1.442695, %v1909_v59 }
 0x869   : > { %3831 = vpow2.f32 %v3052_v24  ;;  %v5008_v24 = vld [vmem:[%s5451_s4] ss:$0 sm:$0xff] }
 0x86a   : > { %3833 = vpow2.f32 %v3053_v27 }
 0x873   : > { %v3832_v55 = vpop.eup %3831 }
 0x874   : > { %v1906_v31 = vadd.f32 1.0, %v3832_v55  ;;  %v3834_v0 = vpop.eup %3833  ;;  %v5491_v55 = vld [vmem:[#allocation6_spill] sm:$0xff] }
 0x875   : > { %v1913_v1 = vadd.f32 1.0, %v3834_v0 }
 0x876   : > { %3835 = vrcp.f32 %v1906_v31 }
 0x877   : > { %3837 = vrcp.f32 %v1913_v1 }
 0x880   : > { %v3836_v36 = vpop.eup %3835 }
 0x881   : > { %v1917_v6 = vmul.f32 %v3836_v36, %v1916_v2  ;;  %v3838_v33 = vpop.eup %3837 }
 0x882   : > { %v1920_v5 = vsub.f32 1.0, %v3838_v33  ;;  %v1922_v45 = vmul.f32 %v3838_v33, %v4920_v30 }
 0x883   : > { %v1918_v8 = vadd.f32 %v1917_v6, %v5488_v4 }
 0x885   : > { %3839 = vtanh.f32 %v1918_v8 }
 0x88f   : > { %v3840_v17 = vpop.eup %3839 }
 0x890   : > { %v1921_v22 = vmul.f32 %v3840_v17, %v1920_v5  ;;  %v5492_v17 = vld [vmem:[#allocation16_spill] sm:$0xff] }
 0x892   : > { %v4964_v60 = vadd.f32 %v1922_v45, %v1921_v22 }
 0x894   : > { %v1930_v7 = vpack.c.bf16 %v4964_v60, %v4964_v60 }
 0x896   : > { %1964 = vmatmul.mubr.bf16.vlgmr.msra.gmra.mrb[48].mxu1 %v1930_v7  ;;  %3459 = vmatmul.mubr.bf16.vlgmr.msra.gmra.mrb[64].mxu0 %v1930_v7  ;;  %v5493_v7 = vld [vmem:[#allocation17_spill] sm:$0xff] }
 0x897   : > { %2042 = vmatpush1.bf16.msra.mxu1 %v4724_v13  ;;  %3463 = vmatpush3.bf16.msra.mxu0 %v4730_v41 }
 0x898   : > { %2043 = vmatprep.subr.bf16.mxu1 %v4736_v34  ;;  %3464 = vmatprep.subr.bf16.mxu0 %v5485_v15 }
 0x899   : > { %2073 = vmatprep.mubr.bf16.mxu1 %v5486_v23  ;;  %3478 = vmatprep.mubr.msk.bf16.mxu0 %vm3996_vm0, %v5485_v15 }
 0x89b   : > { %2044 = vmatpush1.bf16.msra.mxu1 %v4746_v42  ;;  %3465 = vmatpush3.bf16.msra.mxu0 %v4752_v11 }
 0x89c   : > { %2045 = vmatprep.subr.bf16.mxu1 %v4758_v35  ;;  %3466 = vmatprep.subr.bf16.mxu0 %v5485_v15 }
 0x89f   : > { %2046 = vmatpush1.bf16.msra.mxu1 %v4765_v46  ;;  %3467 = vmatpush3.bf16.msra.mxu0 %v4771_v48 }
 0x8a0   : > { %2047 = vmatprep.subr.bf16.mxu1 %v4777_v39  ;;  %3468 = vmatprep.subr.bf16.mxu0 %v5485_v15 }
 0x8a3   : > { %2048 = vmatpush1.bf16.msra.mxu1 %v4784_v63  ;;  %3469 = vmatpush3.bf16.msra.mxu0 %v4790_v26 }
 0x8a4   : > { %2049 = vmatprep.subr.bf16.mxu1 %v4796_v43  ;;  %3470 = vmatprep.subr.bf16.mxu0 %v5485_v15 }
 0x8a7   : > { %2050 = vmatpush1.bf16.msra.mxu1 %v4803_v32  ;;  %3471 = vmatpush3.bf16.msra.mxu0 %v4858_v3 }
 0x8a8   : > { %2051 = vmatprep.subr.bf16.mxu1 %v4810_v25  ;;  %3472 = vmatprep.subr.bf16.mxu0 %v5485_v15 }
 0x8ab   : > { %2052 = vmatpush1.bf16.msra.mxu1 %v4866_v29  ;;  %3473 = vmatpush3.bf16.msra.mxu0 %v4872_v52 }
 0x8ac   : > { %2053 = vmatprep.subr.bf16.mxu1 %v4878_v21  ;;  %3474 = vmatprep.subr.bf16.mxu0 %v5485_v15 }
 0x8af   : > { %2054 = vmatpush1.bf16.msra.mxu1 %v4885_v40  ;;  %3475 = vmatpush3.bf16.msra.mxu0 %v4891_v12 }
 0x8b0   : > { %2055 = vmatprep.subr.bf16.mxu1 %v4897_v20  ;;  %3476 = vmatprep.subr.bf16.mxu0 %v5485_v15 }
 0x8b3   : > { %2056 = vmatpush1.bf16.msra.mxu1 %v4904_v19  ;;  %3477 = vmatpush3.bf16.msra.mxu0 %v4910_v28 }
 0x8b4   : > { %2151 = vmatprep.subr.bf16.mxu1 %v4708_v44  ;;  %3482 = vmatprep.subr.bf16.mxu0 %v5485_v15 }
 0x969   : > { %v1965_v14 = vpop.f32.mrb[48].mxu1  ;;  %v2006_v16 = vpop.f32.mrb[64].mxu0 }
 0x96a   : > { %v2012_v47 = vadd.f32 %v1965_v14, %v5489_v9  ;;  %v1967_v49 = vpop.f32.mrb[49].mxu1  ;;  %v3460_v50 = vpop.f32.mrb[65].mxu0  ;;  %v2026_v10 = vadd.f32 %v5008_v24, %v2006_v16 }
 0x96b   : > { %v2019_v30 = vadd.f32 %v1967_v49, %v5490_v51  ;;  %v1969_v53 = vpop.f32.mrb[50].mxu1  ;;  %v2009_v37 = vpop.f32.mrb[66].mxu0 }
 0x96c   : > { %v3054_v38 = vmul.f32 -1.442695, %v2012_v47  ;;  %v1970_v54 = vpop.f32.mrb[51].mxu1  ;;  %v3461_v56 = vpop.f32.mrb[67].mxu0 }
 0x96d   : > { %v3055_v57 = vmul.f32 -1.442695, %v2019_v30 }
 0x96e   : > { %3841 = vpow2.f32 %v3054_v38 }
 0x96f   : > { %3843 = vpow2.f32 %v3055_v57 }
 0x978   : > { %v3842_v58 = vpop.eup %3841 }
 0x979   : > { %v2016_v59 = vadd.f32 1.0, %v3842_v58  ;;  %v3844_v61 = vpop.eup %3843  ;;  %v5494_v58 = vld [vmem:[#allocation8_spill] sm:$0xff] }
 0x97a   : > { %v2023_v62 = vadd.f32 1.0, %v3844_v61 }
 0x97b   : > { %3845 = vrcp.f32 %v2016_v59 }
 0x97c   : > { %3847 = vrcp.f32 %v2023_v62 }
 0x985   : > { %v3846_v18 = vpop.eup %3845 }
 0x986   : > { %v2027_v27 = vmul.f32 %v3846_v18, %v2026_v10  ;;  %v3848_v0 = vpop.eup %3847 }
 0x987   : > { %v2030_v1 = vsub.f32 1.0, %v3848_v0  ;;  %v2032_v6 = vmul.f32 %v3848_v0, %v4964_v60 }
 0x988   : > { %v2028_v31 = vadd.f32 %v2027_v27, %v5491_v55 }
 0x98a   : > { %3849 = vtanh.f32 %v2028_v31 }
 0x994   : > { %v3850_v2 = vpop.eup %3849 }
 0x995   : > { %v2031_v36 = vmul.f32 %v3850_v2, %v2030_v1  ;;  %v5495_v2 = vld [vmem:[#allocation18_spill] sm:$0xff] }
 0x997   : > { %v5013_v4 = vadd.f32 %v2032_v6, %v2031_v36 }
 0x999   : > { %v2040_v8 = vpack.c.bf16 %v5013_v4, %v5013_v4 }
 0x99b   : > { %2074 = vmatmul.mubr.bf16.vlgmr.msra.gmra.mrb[52].mxu1 %v2040_v8  ;;  %3479 = vmatmul.mubr.bf16.vlgmr.msra.gmra.mrb[68].mxu0 %v2040_v8  ;;  %v5496_v8 = vld [vmem:[#allocation19_spill] sm:$0xff] }
 0x99c   : > { %2152 = vmatpush1.bf16.msra.mxu1 %v4724_v13  ;;  %3483 = vmatpush3.bf16.msra.mxu0 %v4730_v41 }
 0x99d   : > { %2153 = vmatprep.subr.bf16.mxu1 %v4736_v34  ;;  %3484 = vmatprep.subr.bf16.mxu0 %v5485_v15 }
 0x99e   : > { %2183 = vmatprep.mubr.bf16.mxu1 %v5486_v23  ;;  %3498 = vmatprep.mubr.msk.bf16.mxu0 %vm3996_vm0, %v5485_v15 }
 0x9a0   : > { %2154 = vmatpush1.bf16.msra.mxu1 %v4746_v42  ;;  %3485 = vmatpush3.bf16.msra.mxu0 %v4752_v11 }
 0x9a1   : > { %2155 = vmatprep.subr.bf16.mxu1 %v4758_v35  ;;  %3486 = vmatprep.subr.bf16.mxu0 %v5485_v15 }
 0x9a4   : > { %2156 = vmatpush1.bf16.msra.mxu1 %v4765_v46  ;;  %3487 = vmatpush3.bf16.msra.mxu0 %v4771_v48 }
 0x9a5   : > { %2157 = vmatprep.subr.bf16.mxu1 %v4777_v39  ;;  %3488 = vmatprep.subr.bf16.mxu0 %v5485_v15 }
 0x9a8   : > { %2158 = vmatpush1.bf16.msra.mxu1 %v4784_v63  ;;  %3489 = vmatpush3.bf16.msra.mxu0 %v4790_v26 }
 0x9a9   : > { %2159 = vmatprep.subr.bf16.mxu1 %v4796_v43  ;;  %3490 = vmatprep.subr.bf16.mxu0 %v5485_v15 }
 0x9ac   : > { %2160 = vmatpush1.bf16.msra.mxu1 %v4803_v32  ;;  %3491 = vmatpush3.bf16.msra.mxu0 %v4858_v3 }
 0x9ad   : > { %2161 = vmatprep.subr.bf16.mxu1 %v4810_v25  ;;  %3492 = vmatprep.subr.bf16.mxu0 %v5485_v15 }
 0x9b0   : > { %2162 = vmatpush1.bf16.msra.mxu1 %v4866_v29  ;;  %3493 = vmatpush3.bf16.msra.mxu0 %v4872_v52 }
 0x9b1   : > { %2163 = vmatprep.subr.bf16.mxu1 %v4878_v21  ;;  %3494 = vmatprep.subr.bf16.mxu0 %v5485_v15 }
 0x9b4   : > { %2164 = vmatpush1.bf16.msra.mxu1 %v4885_v40  ;;  %3495 = vmatpush3.bf16.msra.mxu0 %v4891_v12 }
 0x9b5   : > { %2165 = vmatprep.subr.bf16.mxu1 %v4897_v20  ;;  %3496 = vmatprep.subr.bf16.mxu0 %v5485_v15 }
 0x9b8   : > { %2166 = vmatpush1.bf16.msra.mxu1 %v4904_v19  ;;  %3497 = vmatpush3.bf16.msra.mxu0 %v4910_v28 }
 0x9b9   : > { %2261 = vmatprep.subr.bf16.mxu1 %v4708_v44  ;;  %3502 = vmatprep.subr.bf16.mxu0 %v5485_v15 }
 0xa6e   : > { %v2075_v33 = vpop.f32.mrb[52].mxu1  ;;  %v2116_v5 = vpop.f32.mrb[68].mxu0 }
 0xa6f   : > { %v2122_v22 = vadd.f32 %v2075_v33, %v5492_v17  ;;  %v2077_v45 = vpop.f32.mrb[53].mxu1  ;;  %v3480_v60 = vpop.f32.mrb[69].mxu0  ;;  %v2136_v54 = vadd.f32 %v5008_v24, %v2116_v5 }
 0xa70   : > { %v2129_v14 = vadd.f32 %v2077_v45, %v5493_v7  ;;  %v2079_v16 = vpop.f32.mrb[54].mxu1  ;;  %v2119_v9 = vpop.f32.mrb[70].mxu0 }
 0xa71   : > { %v3056_v47 = vmul.f32 -1.442695, %v2122_v22  ;;  %v2080_v49 = vpop.f32.mrb[55].mxu1  ;;  %v3481_v50 = vpop.f32.mrb[71].mxu0 }
 0xa72   : > { %v3057_v51 = vmul.f32 -1.442695, %v2129_v14 }
 0xa73   : > { %3851 = vpow2.f32 %v3056_v47 }
 0xa74   : > { %3853 = vpow2.f32 %v3057_v51 }
 0xa7d   : > { %v3852_v30 = vpop.eup %3851 }
 0xa7e   : > { %v2126_v53 = vadd.f32 1.0, %v3852_v30  ;;  %v3854_v37 = vpop.eup %3853  ;;  %v5497_v30 = vld [vmem:[#allocation5_spill] sm:$0xff] }
 0xa7f   : > { %v2133_v38 = vadd.f32 1.0, %v3854_v37 }
 0xa80   : > { %3855 = vrcp.f32 %v2126_v53 }
 0xa81   : > { %3857 = vrcp.f32 %v2133_v38 }
 0xa8a   : > { %v3856_v56 = vpop.eup %3855 }
 0xa8b   : > { %v2137_v57 = vmul.f32 %v3856_v56, %v2136_v54  ;;  %v3858_v61 = vpop.eup %3857 }
 0xa8c   : > { %v2140_v62 = vsub.f32 1.0, %v3858_v61  ;;  %v2142_v27 = vmul.f32 %v3858_v61, %v5013_v4 }
 0xa8d   : > { %v2138_v59 = vadd.f32 %v2137_v57, %v5494_v58 }
 0xa8f   : > { %3859 = vtanh.f32 %v2138_v59 }
 0xa99   : > { %v3860_v10 = vpop.eup %3859 }
 0xa9a   : > { %v2141_v18 = vmul.f32 %v3860_v10, %v2140_v62  ;;  %v5498_v10 = vld [vmem:[#allocation20_spill] sm:$0xff] }
 0xa9c   : > { %v5057_v55 = vadd.f32 %v2142_v27, %v2141_v18 }
 0xa9e   : > { %v2150_v31 = vpack.c.bf16 %v5057_v55, %v5057_v55 }
 0xaa0   : > { %2184 = vmatmul.mubr.bf16.vlgmr.msra.gmra.mrb[56].mxu1 %v2150_v31  ;;  %3499 = vmatmul.mubr.bf16.vlgmr.msra.gmra.mrb[72].mxu0 %v2150_v31  ;;  %v5499_v31 = vld [vmem:[#allocation21_spill] sm:$0xff] }
 0xaa1   : > { %2262 = vmatpush1.bf16.msra.mxu1 %v4724_v13  ;;  %3503 = vmatpush3.bf16.msra.mxu0 %v4730_v41 }
 0xaa2   : > { %2263 = vmatprep.subr.bf16.mxu1 %v4736_v34  ;;  %3504 = vmatprep.subr.bf16.mxu0 %v5485_v15 }
 0xaa3   : > { %2293 = vmatprep.mubr.bf16.mxu1 %v5486_v23  ;;  %3518 = vmatprep.mubr.msk.bf16.mxu0 %vm3996_vm0, %v5485_v15 }
 0xaa5   : > { %2264 = vmatpush1.bf16.msra.mxu1 %v4746_v42  ;;  %3505 = vmatpush3.bf16.msra.mxu0 %v4752_v11 }
 0xaa6   : > { %2265 = vmatprep.subr.bf16.mxu1 %v4758_v35  ;;  %3506 = vmatprep.subr.bf16.mxu0 %v5485_v15 }
 0xaa9   : > { %2266 = vmatpush1.bf16.msra.mxu1 %v4765_v46  ;;  %3507 = vmatpush3.bf16.msra.mxu0 %v4771_v48 }
 0xaaa   : > { %2267 = vmatprep.subr.bf16.mxu1 %v4777_v39  ;;  %3508 = vmatprep.subr.bf16.mxu0 %v5485_v15 }
 0xaad   : > { %2268 = vmatpush1.bf16.msra.mxu1 %v4784_v63  ;;  %3509 = vmatpush3.bf16.msra.mxu0 %v4790_v26 }
 0xaae   : > { %2269 = vmatprep.subr.bf16.mxu1 %v4796_v43  ;;  %3510 = vmatprep.subr.bf16.mxu0 %v5485_v15 }
 0xab1   : > { %2270 = vmatpush1.bf16.msra.mxu1 %v4803_v32  ;;  %3511 = vmatpush3.bf16.msra.mxu0 %v4858_v3 }
 0xab2   : > { %2271 = vmatprep.subr.bf16.mxu1 %v4810_v25  ;;  %3512 = vmatprep.subr.bf16.mxu0 %v5485_v15 }
 0xab5   : > { %2272 = vmatpush1.bf16.msra.mxu1 %v4866_v29  ;;  %3513 = vmatpush3.bf16.msra.mxu0 %v4872_v52 }
 0xab6   : > { %2273 = vmatprep.subr.bf16.mxu1 %v4878_v21  ;;  %3514 = vmatprep.subr.bf16.mxu0 %v5485_v15 }
 0xab9   : > { %2274 = vmatpush1.bf16.msra.mxu1 %v4885_v40  ;;  %3515 = vmatpush3.bf16.msra.mxu0 %v4891_v12 }
 0xaba   : > { %2275 = vmatprep.subr.bf16.mxu1 %v4897_v20  ;;  %3516 = vmatprep.subr.bf16.mxu0 %v5485_v15 }
 0xabd   : > { %2276 = vmatpush1.bf16.msra.mxu1 %v4904_v19  ;;  %3517 = vmatpush3.bf16.msra.mxu0 %v4910_v28 }
 0xabe   : > { %2371 = vmatprep.subr.bf16.mxu1 %v4708_v44  ;;  %3522 = vmatprep.subr.bf16.mxu0 %v5485_v15 }
 0xb73   : > { %v2185_v0 = vpop.f32.mrb[56].mxu1  ;;  %v2226_v1 = vpop.f32.mrb[72].mxu0 }
 0xb74   : > { %v2232_v36 = vadd.f32 %v2185_v0, %v5495_v2  ;;  %v2187_v6 = vpop.f32.mrb[57].mxu1  ;;  %v3500_v4 = vpop.f32.mrb[73].mxu0  ;;  %v2246_v49 = vadd.f32 %v5008_v24, %v2226_v1 }
 0xb75   : > { %v2239_v33 = vadd.f32 %v2187_v6, %v5496_v8  ;;  %v2189_v5 = vpop.f32.mrb[58].mxu1  ;;  %v2229_v17 = vpop.f32.mrb[74].mxu0 }
 0xb76   : > { %v3058_v22 = vmul.f32 -1.442695, %v2232_v36  ;;  %v2190_v45 = vpop.f32.mrb[59].mxu1  ;;  %v3501_v60 = vpop.f32.mrb[75].mxu0 }
 0xb77   : > { %v3059_v7 = vmul.f32 -1.442695, %v2239_v33 }
 0xb78   : > { %3861 = vpow2.f32 %v3058_v22 }
 0xb79   : > { %3863 = vpow2.f32 %v3059_v7  ;;  %v5500_v7 = vld [vmem:[#allocation7_spill] sm:$0xff] }
 0xb82   : > { %v3862_v14 = vpop.eup %3861 }
 0xb83   : > { %v2236_v16 = vadd.f32 1.0, %v3862_v14  ;;  %v3864_v9 = vpop.eup %3863 }
 0xb84   : > { %v2243_v47 = vadd.f32 1.0, %v3864_v9 }
 0xb85   : > { %3865 = vrcp.f32 %v2236_v16 }
 0xb86   : > { %3867 = vrcp.f32 %v2243_v47 }
 0xb8f   : > { %v3866_v50 = vpop.eup %3865 }
 0xb90   : > { %v2247_v51 = vmul.f32 %v3866_v50, %v2246_v49  ;;  %v3868_v37 = vpop.eup %3867 }
 0xb91   : > { %v2250_v38 = vsub.f32 1.0, %v3868_v37  ;;  %v2252_v57 = vmul.f32 %v3868_v37, %v5057_v55 }
 0xb92   : > { %v2248_v53 = vadd.f32 %v2247_v51, %v5497_v30 }
 0xb94   : > { %3869 = vtanh.f32 %v2248_v53 }
 0xb9e   : > { %v3870_v54 = vpop.eup %3869 }
 0xb9f   : > { %v2251_v56 = vmul.f32 %v3870_v54, %v2250_v38 }
 0xba1   : > { %v5101_v58 = vadd.f32 %v2252_v57, %v2251_v56 }
 0xba3   : > { %v2260_v59 = vpack.c.bf16 %v5101_v58, %v5101_v58 }
 0xba5   : > { %2294 = vmatmul.mubr.bf16.vlgmr.msra.gmra.mrb[60].mxu1 %v2260_v59  ;;  %3519 = vmatmul.mubr.bf16.vlgmr.msra.gmra.mrb[76].mxu0 %v2260_v59 }
 0xba6   : > { %2372 = vmatpush1.bf16.msra.mxu1 %v4724_v13  ;;  %3523 = vmatpush3.bf16.msra.mxu0 %v4730_v41 }
 0xba7   : > { %2373 = vmatprep.subr.bf16.mxu1 %v4736_v34  ;;  %3524 = vmatprep.subr.bf16.mxu0 %v5485_v15 }
 0xba8   : > { %2403 = vmatprep.mubr.bf16.mxu1 %v5486_v23  ;;  %3538 = vmatprep.mubr.msk.bf16.mxu0 %vm3996_vm0, %v5485_v15 }
 0xbaa   : > { %2374 = vmatpush1.bf16.msra.mxu1 %v4746_v42  ;;  %3525 = vmatpush3.bf16.msra.mxu0 %v4752_v11 }
 0xbab   : > { %2375 = vmatprep.subr.bf16.mxu1 %v4758_v35  ;;  %3526 = vmatprep.subr.bf16.mxu0 %v5485_v15 }
 0xbae   : > { %2376 = vmatpush1.bf16.msra.mxu1 %v4765_v46  ;;  %3527 = vmatpush3.bf16.msra.mxu0 %v4771_v48 }
 0xbaf   : > { %2377 = vmatprep.subr.bf16.mxu1 %v4777_v39  ;;  %3528 = vmatprep.subr.bf16.mxu0 %v5485_v15 }
 0xbb2   : > { %2378 = vmatpush1.bf16.msra.mxu1 %v4784_v63  ;;  %3529 = vmatpush3.bf16.msra.mxu0 %v4790_v26 }
 0xbb3   : > { %2379 = vmatprep.subr.bf16.mxu1 %v4796_v43  ;;  %3530 = vmatprep.subr.bf16.mxu0 %v5485_v15 }
 0xbb6   : > { %2380 = vmatpush1.bf16.msra.mxu1 %v4803_v32  ;;  %3531 = vmatpush3.bf16.msra.mxu0 %v4858_v3 }
 0xbb7   : > { %2381 = vmatprep.subr.bf16.mxu1 %v4810_v25  ;;  %3532 = vmatprep.subr.bf16.mxu0 %v5485_v15 }
 0xbba   : > { %2382 = vmatpush1.bf16.msra.mxu1 %v4866_v29  ;;  %3533 = vmatpush3.bf16.msra.mxu0 %v4872_v52 }
 0xbbb   : > { %2383 = vmatprep.subr.bf16.mxu1 %v4878_v21  ;;  %3534 = vmatprep.subr.bf16.mxu0 %v5485_v15 }
 0xbbe   : > { %2384 = vmatpush1.bf16.msra.mxu1 %v4885_v40  ;;  %3535 = vmatpush3.bf16.msra.mxu0 %v4891_v12 }
 0xbbf   : > { %2385 = vmatprep.subr.bf16.mxu1 %v4897_v20  ;;  %3536 = vmatprep.subr.bf16.mxu0 %v5485_v15 }
 0xbc2   : > { %2386 = vmatpush1.bf16.msra.mxu1 %v4904_v19  ;;  %3537 = vmatpush3.bf16.msra.mxu0 %v4910_v28 }
 0xbc3   : > { %2481 = vmatprep.subr.bf16.mxu1 %v4708_v44  ;;  %3542 = vmatprep.subr.bf16.mxu0 %v5485_v15 }
 0xc78   : > { %v2295_v61 = vpop.f32.mrb[60].mxu1  ;;  %v2336_v62 = vpop.f32.mrb[76].mxu0 }
 0xc79   : > { %v2342_v18 = vadd.f32 %v2295_v61, %v5498_v10  ;;  %v2297_v27 = vpop.f32.mrb[61].mxu1  ;;  %v3520_v55 = vpop.f32.mrb[77].mxu0  ;;  %v2356_v22 = vadd.f32 %v5008_v24, %v2336_v62  ;;  %v5503_v61 = vld [vmem:[#allocation10_spill] sm:$0xff] }
 0xc7a   : > { %v2349_v0 = vadd.f32 %v2297_v27, %v5499_v31  ;;  %v2299_v1 = vpop.f32.mrb[62].mxu1  ;;  %v2339_v2 = vpop.f32.mrb[78].mxu0 }
 0xc7b   : > { %v3060_v36 = vmul.f32 -1.442695, %v2342_v18  ;;  %v2300_v6 = vpop.f32.mrb[63].mxu1  ;;  %v3521_v4 = vpop.f32.mrb[79].mxu0  ;;  %v5201_v2 = vld [vmem:[%s5449_s2] ss:$12 sps:$4 sm:$0xff]  }
 0xc7c   : > { %v3061_v8 = vmul.f32 -1.442695, %v2349_v0  ;;  %v5213_v6 = vld [vmem:[%s5449_s2 + $0x1c] ss:$12 sps:$4 sm:$0xff]   ;;  %v5223_v4 = vld [vmem:[%s5449_s2 + $0x18] ss:$12 sps:$4 sm:$0xff]  }
 0xc7d   : > { %3871 = vpow2.f32 %v3060_v36  ;;  %v5207_v36 = vld [vmem:[%s5449_s2 + $0x8] ss:$12 sps:$4 sm:$0xff]  }
 0xc7e   : > { %3873 = vpow2.f32 %v3061_v8  ;;  %v5229_v8 = vld [vmem:[%s5449_s2 + $0x20] ss:$12 sps:$4 sm:$0xff]  }
 0xc87   : > { %v3872_v33 = vpop.eup %3871 }
 0xc88   : > { %v2346_v44 = vadd.f32 1.0, %v3872_v33  ;;  %v3874_v5 = vpop.eup %3873  ;;  %v5235_v33 = vld [vmem:[%s5449_s2 + $0x34] ss:$12 sps:$4 sm:$0xff]  }
 0xc89   : > { %v2353_v17 = vadd.f32 1.0, %v3874_v5  ;;  %v5248_v5 = vld [vmem:[%s5449_s2 + $0x38] ss:$12 sps:$4 sm:$0xff]  }
 0xc8a   : > { %3875 = vrcp.f32 %v2346_v44  ;;  %v5242_v44 = vld [vmem:[%s5449_s2 + $0x30] ss:$12 sps:$4 sm:$0xff]  }
 0xc8b   : > { %3877 = vrcp.f32 %v2353_v17  ;;  %v5254_v17 = vld [vmem:[%s5449_s2 + $0x4c] ss:$12 sps:$4 sm:$0xff]  }
 0xc94   : > { %v3876_v45 = vpop.eup %3875 }
 0xc95   : > { %v2357_v60 = vmul.f32 %v3876_v45, %v2356_v22  ;;  %v3878_v16 = vpop.eup %3877  ;;  %v5261_v22 = vld [vmem:[%s5449_s2 + $0x48] ss:$12 sps:$4 sm:$0xff]   ;;  %v5267_v45 = vld [vmem:[%s5449_s2 + $0x50] ss:$12 sps:$4 sm:$0xff]  }
 0xc96   : > { %v2360_v9 = vsub.f32 1.0, %v3878_v16  ;;  %v2362_v50 = vmul.f32 %v3878_v16, %v5101_v58 }
 0xc97   : > { %v2358_v14 = vadd.f32 %v2357_v60, %v5500_v7  ;;  %v5273_v60 = vld [vmem:[%s5449_s2 + $0x64] ss:$12 sps:$4 sm:$0xff]   ;;  %v5280_v7 = vld [vmem:[%s5449_s2 + $0x60] ss:$12 sps:$4 sm:$0xff]  }
 0xc99   : > { %3879 = vtanh.f32 %v2358_v14  ;;  %v5287_v14 = vld [vmem:[%s5449_s2 + $0x7c] ss:$12 sps:$4 sm:$0xff]  }
 0xca3   : > { %v3880_v47 = vpop.eup %3879 }
 0xca4   : > { %v2361_v49 = vmul.f32 %v3880_v47, %v2360_v9  ;;  %v5505_v9 = vld [vmem:[#allocation25_spill] sm:$0xff] }
 0xca6   : > { %v5145_v51 = vadd.f32 %v2362_v50, %v2361_v49 }
 0xca8   : > { %v2370_v30 = vpack.c.bf16 %v5145_v51, %v5145_v51 }
 0xcaa   : > { %2404 = vmatmul.mubr.bf16.vlgmr.msra.gmra.mrb[64].mxu1 %v2370_v30  ;;  %3539 = vmatmul.mubr.bf16.vlgmr.msra.gmra.mrb[80].mxu0 %v2370_v30 }
 0xcab   : > { %2482 = vmatpush1.bf16.msra.mxu1 %v4724_v13  ;;  %3543 = vmatpush3.bf16.msra.mxu0 %v4730_v41  ;;  %v5185_v13 = vld [vmem:[%s5449_s2 + $0x4] ss:$12 sps:$4 sm:$0xff]  }
 0xcac   : > { %2483 = vmatprep.subr.bf16.mxu1 %v4736_v34  ;;  %3544 = vmatprep.subr.bf16.mxu0 %v5485_v15 }
 0xcad   : > { %2513 = vmatprep.mubr.bf16.mxu1 %v5486_v23  ;;  %3558 = vmatprep.mubr.msk.bf16.mxu0 %vm3996_vm0, %v5485_v15 }
 0xcaf   : > { %2484 = vmatpush1.bf16.msra.mxu1 %v4746_v42  ;;  %3545 = vmatpush3.bf16.msra.mxu0 %v4752_v11  ;;  %v5501_v42 = vld [vmem:[#allocation22_spill] sm:$0xff] }
 0xcb0   : > { %2485 = vmatprep.subr.bf16.mxu1 %v4758_v35  ;;  %3546 = vmatprep.subr.bf16.mxu0 %v5485_v15 }
 0xcb3   : > { %2486 = vmatpush1.bf16.msra.mxu1 %v4765_v46  ;;  %3547 = vmatpush3.bf16.msra.mxu0 %v4771_v48  ;;  %v5502_v48 = vld [vmem:[#allocation23_spill] sm:$0xff] }
 0xcb4   : > { %2487 = vmatprep.subr.bf16.mxu1 %v4777_v39  ;;  %3548 = vmatprep.subr.bf16.mxu0 %v5485_v15 }
 0xcb7   : > { %2488 = vmatpush1.bf16.msra.mxu1 %v4784_v63  ;;  %3549 = vmatpush3.bf16.msra.mxu0 %v4790_v26 }
 0xcb8   : > { %2489 = vmatprep.subr.bf16.mxu1 %v4796_v43  ;;  %3550 = vmatprep.subr.bf16.mxu0 %v5485_v15 }
 0xcbb   : > { %2490 = vmatpush1.bf16.msra.mxu1 %v4803_v32  ;;  %3551 = vmatpush3.bf16.msra.mxu0 %v4858_v3 }
 0xcbc   : > { %2491 = vmatprep.subr.bf16.mxu1 %v4810_v25  ;;  %3552 = vmatprep.subr.bf16.mxu0 %v5485_v15 }
 0xcbf   : > { %2492 = vmatpush1.bf16.msra.mxu1 %v4866_v29  ;;  %3553 = vmatpush3.bf16.msra.mxu0 %v4872_v52 }
 0xcc0   : > { %2493 = vmatprep.subr.bf16.mxu1 %v4878_v21  ;;  %3554 = vmatprep.subr.bf16.mxu0 %v5485_v15 }
 0xcc3   : > { %2494 = vmatpush1.bf16.msra.mxu1 %v4885_v40  ;;  %3555 = vmatpush3.bf16.msra.mxu0 %v4891_v12 }
 0xcc4   : > { %2495 = vmatprep.subr.bf16.mxu1 %v4897_v20  ;;  %3556 = vmatprep.subr.bf16.mxu0 %v5485_v15 }
 0xcc7   : > { %2496 = vmatpush1.bf16.msra.mxu1 %v4904_v19  ;;  %3557 = vmatpush3.bf16.msra.mxu0 %v4910_v28 }
 0xcc8   : > { %2591 = vmatprep.subr.bf16.mxu1 %v5185_v13  ;;  %3562 = vmatprep.subr.bf16.mxu0 %v5485_v15 }
 0xd7d   : > { %v2405_v41 = vpop.f32.mrb[64].mxu1  ;;  %v2446_v34 = vpop.f32.mrb[80].mxu0 }
 0xd7e   : > { %v2452_v11 = vadd.f32 %v2405_v41, %v5501_v42  ;;  %v2407_v35 = vpop.f32.mrb[65].mxu1  ;;  %v3540_v46 = vpop.f32.mrb[81].mxu0  ;;  %v2466_v57 = vadd.f32 %v5008_v24, %v2446_v34 }
 0xd7f   : > { %v2459_v39 = vadd.f32 %v2407_v35, %v5502_v48  ;;  %v2409_v63 = vpop.f32.mrb[66].mxu1  ;;  %v2449_v26 = vpop.f32.mrb[82].mxu0  ;;  %v5506_v35 = vld [vmem:[#allocation13_spill] sm:$0xff] }
 0xd80   : > { %v3062_v43 = vmul.f32 -1.442695, %v2452_v11  ;;  %v2410_v32 = vpop.f32.mrb[67].mxu1  ;;  %v3541_v25 = vpop.f32.mrb[83].mxu0 }
 0xd81   : > { %v3063_v53 = vmul.f32 -1.442695, %v2459_v39 }
 0xd82   : > { %3881 = vpow2.f32 %v3062_v43 }
 0xd83   : > { %3883 = vpow2.f32 %v3063_v53  ;;  %v3962_v53 = vld [vmem:[%s5449_s2 + $0x78] ss:$12 sps:$4 sm:$0xff]  }
 0xd8c   : > { %v3882_v37 = vpop.eup %3881 }
 0xd8d   : > { %v2456_v38 = vadd.f32 1.0, %v3882_v37  ;;  %v3884_v54 = vpop.eup %3883  ;;  %v3963_v37 = vld [vmem:[%s5449_s2 + $0x80] ss:$12 sps:$4 sm:$0xff]  }
 0xd8e   : > { %v2463_v56 = vadd.f32 1.0, %v3884_v54  ;;  %v3965_v54 = vld [vmem:[%s5449_s2 + $0x90] ss:$12 sps:$4 sm:$0xff]  }
 0xd8f   : > { %3885 = vrcp.f32 %v2456_v38  ;;  %v3964_v38 = vld [vmem:[%s5449_s2 + $0x94] ss:$12 sps:$4 sm:$0xff]  }
 0xd90   : > { %3887 = vrcp.f32 %v2463_v56  ;;  %v3966_v56 = vld [vmem:[%s5449_s2 + $0x98] ss:$12 sps:$4 sm:$0xff]  }
 0xd99   : > { %v3886_v58 = vpop.eup %3885 }
 0xd9a   : > { %v2467_v59 = vmul.f32 %v3886_v58, %v2466_v57  ;;  %v3888_v10 = vpop.eup %3887  ;;  %v3967_v57 = vld [vmem:[%s5449_s2 + $0xac] ss:$12 sps:$4 sm:$0xff]   ;;  %v3968_v58 = vld [vmem:[%s5449_s2 + $0xa8] ss:$12 sps:$4 sm:$0xff]  }
 0xd9b   : > { %v2470_v18 = vsub.f32 1.0, %v3888_v10  ;;  %v2472_v31 = vmul.f32 %v3888_v10, %v5145_v51  ;;  %v5507_v10 = vld [vmem:[#allocation26_spill] sm:$0xff] }
 0xd9c   : > { %v2468_v62 = vadd.f32 %v2467_v59, %v5503_v61  ;;  %v3969_v59 = vld [vmem:[%s5449_s2 + $0xb0] ss:$12 sps:$4 sm:$0xff]  }
 0xd9e   : > { %3889 = vtanh.f32 %v2468_v62 }
 0xda8   : > { %v3890_v27 = vpop.eup %3889 }
 0xda9   : > { %v2471_v55 = vmul.f32 %v3890_v27, %v2470_v18 }
 0xdab   : > { %v5194_v0 = vadd.f32 %v2472_v31, %v2471_v55  ;;  %v5508_v31 = vld [vmem:[#allocation27_spill] sm:$0xff] }
 0xdad   : > { %v2480_v1 = vpack.c.bf16 %v5194_v0, %v5194_v0 }
 0xdaf   : > { %2514 = vmatmul.mubr.bf16.vlgmr.msra.gmra.mrb[68].mxu1 %v2480_v1  ;;  %3559 = vmatmul.mubr.bf16.vlgmr.msra.gmra.mrb[84].mxu0 %v2480_v1 }
 0xdb0   : > { %2592 = vmatpush1.bf16.msra.mxu1 %v5201_v2  ;;  %3563 = vmatpush3.bf16.msra.mxu0 %v5207_v36 }
 0xdb1   : > { %2593 = vmatprep.subr.bf16.mxu1 %v5213_v6  ;;  %3564 = vmatprep.subr.bf16.mxu0 %v5485_v15 }
 0xdb2   : > { %2623 = vmatprep.mubr.bf16.mxu1 %v5486_v23  ;;  %3578 = vmatprep.mubr.msk.bf16.mxu0 %vm3996_vm0, %v5485_v15 }
 0xdb4   : > { %2594 = vmatpush1.bf16.msra.mxu1 %v5223_v4  ;;  %3565 = vmatpush3.bf16.msra.mxu0 %v5229_v8 }
 0xdb5   : > { %2595 = vmatprep.subr.bf16.mxu1 %v5235_v33  ;;  %3566 = vmatprep.subr.bf16.mxu0 %v5485_v15 }
 0xdb8   : > { %2596 = vmatpush1.bf16.msra.mxu1 %v5242_v44  ;;  %3567 = vmatpush3.bf16.msra.mxu0 %v5248_v5 }
 0xdb9   : > { %2597 = vmatprep.subr.bf16.mxu1 %v5254_v17  ;;  %3568 = vmatprep.subr.bf16.mxu0 %v5485_v15 }
 0xdbc   : > { %2598 = vmatpush1.bf16.msra.mxu1 %v5261_v22  ;;  %3569 = vmatpush3.bf16.msra.mxu0 %v5267_v45 }
 0xdbd   : > { %2599 = vmatprep.subr.bf16.mxu1 %v5273_v60  ;;  %3570 = vmatprep.subr.bf16.mxu0 %v5485_v15 }
 0xdc0   : > { %2600 = vmatpush1.bf16.msra.mxu1 %v5280_v7  ;;  %3571 = vmatpush3.bf16.msra.mxu0 %v4858_v3 }
 0xdc1   : > { %2601 = vmatprep.subr.bf16.mxu1 %v5287_v14  ;;  %3572 = vmatprep.subr.bf16.mxu0 %v5485_v15 }
 0xdc4   : > { %2602 = vmatpush1.bf16.msra.mxu1 %v4866_v29  ;;  %3573 = vmatpush3.bf16.msra.mxu0 %v4872_v52  ;;  %v5504_v52 = vld [vmem:[#allocation24_spill] sm:$0xff] }
 0xdc5   : > { %2603 = vmatprep.subr.bf16.mxu1 %v4878_v21  ;;  %3574 = vmatprep.subr.bf16.mxu0 %v5485_v15 }
 0xdc8   : > { %2604 = vmatpush1.bf16.msra.mxu1 %v4885_v40  ;;  %3575 = vmatpush3.bf16.msra.mxu0 %v4891_v12 }
 0xdc9   : > { %2605 = vmatprep.subr.bf16.mxu1 %v4897_v20  ;;  %3576 = vmatprep.subr.bf16.mxu0 %v5485_v15 }
 0xdcc   : > { %2606 = vmatpush1.bf16.msra.mxu1 %v4904_v19  ;;  %3577 = vmatpush3.bf16.msra.mxu0 %v4910_v28 }
 0xdcd   : > { %2701 = vmatprep.subr.bf16.mxu1 %v5185_v13  ;;  %3582 = vmatprep.subr.bf16.mxu0 %v5485_v15 }
 0xe82   : > { %v2515_v3 = vpop.f32.mrb[68].mxu1  ;;  %v2556_v29 = vpop.f32.mrb[84].mxu0 }
 0xe83   : > { %v2562_v21 = vadd.f32 %v2515_v3, %v5504_v52  ;;  %v2517_v16 = vpop.f32.mrb[69].mxu1  ;;  %v3560_v40 = vpop.f32.mrb[85].mxu0  ;;  %v2576_v34 = vadd.f32 %v5008_v24, %v2556_v29 }
 0xe84   : > { %v2569_v12 = vadd.f32 %v2517_v16, %v5505_v9  ;;  %v2519_v47 = vpop.f32.mrb[70].mxu1  ;;  %v2559_v20 = vpop.f32.mrb[86].mxu0 }
 0xe85   : > { %v3064_v49 = vmul.f32 -1.442695, %v2562_v21  ;;  %v2520_v50 = vpop.f32.mrb[71].mxu1  ;;  %v3561_v51 = vpop.f32.mrb[87].mxu0  ;;  %v2805_v47 = vld [vmem:[%s5452_s5 + $0x8] sm:$0xff] }
 0xe86   : > { %v3065_v19 = vmul.f32 -1.442695, %v2569_v12  ;;  %v2804_v12 = vld [vmem:[%s5452_s5] sm:$0xff]  ;;  %v2806_v50 = vld [vmem:[%s5452_s5 + $0x10] sm:$0xff] }
 0xe87   : > { %3891 = vpow2.f32 %v3064_v49  ;;  %v3638_v20 = vpack.c.bf16 %v2805_v47, %v2804_v12  ;;  %v3997_v49 = vmov 0.0|0.0  }
 0xe88   : > { %3893 = vpow2.f32 %v3065_v19  ;;  %v2808_v19 = vld [vmem:[%s5452_s5 + $0x20] sm:$0xff] }
 0xe91   : > { %v3892_v28 = vpop.eup %3891 }
 0xe92   : > { %v2566_v30 = vadd.f32 1.0, %v3892_v28  ;;  %v3894_v13 = vpop.eup %3893  ;;  %v2809_v28 = vld [vmem:[%s5452_s5 + $0x28] sm:$0xff] }
 0xe93   : > { %v2573_v41 = vadd.f32 1.0, %v3894_v13  ;;  %v2810_v13 = vld [vmem:[%s5452_s5 + $0x30] sm:$0xff] }
 0xe94   : > { %3895 = vrcp.f32 %v2566_v30  ;;  %v3644_v30 = vpack.c.bf16 %v2809_v28, %v2808_v19 }
 0xe95   : > { %3897 = vrcp.f32 %v2573_v41  ;;  %v2811_v41 = vld [vmem:[%s5452_s5 + $0x38] sm:$0xff] }
 0xe9e   : > { %v3896_v42 = vpop.eup %3895 }
 0xe9f   : > { %v2577_v11 = vmul.f32 %v3896_v42, %v2576_v34  ;;  %v3898_v48 = vpop.eup %3897  ;;  %v3647_v34 = vpack.c.bf16 %v2811_v41, %v2810_v13  ;;  %v2812_v42 = vld [vmem:[%s5452_s5 + $0x40] sm:$0xff] }
 0xea0   : > { %v2580_v39 = vsub.f32 1.0, %v3898_v48  ;;  %v2582_v43 = vmul.f32 %v3898_v48, %v5194_v0  ;;  %v2815_v48 = vld [vmem:[%s5452_s5 + $0x58] sm:$0xff] }
 0xea1   : > { %v2578_v46 = vadd.f32 %v2577_v11, %v5506_v35  ;;  %v2813_v11 = vld [vmem:[%s5452_s5 + $0x48] sm:$0xff] }
 0xea2   : > { %v3650_v35 = vpack.c.bf16 %v2813_v11, %v2812_v42 }
 0xea3   : > { %3899 = vtanh.f32 %v2578_v46  ;;  %v2814_v46 = vld [vmem:[%s5452_s5 + $0x50] sm:$0xff] }
 0xead   : > { %v3900_v63 = vpop.eup %3899 }
 0xeae   : > { %v2581_v26 = vmul.f32 %v3900_v63, %v2580_v39  ;;  %v3653_v39 = vpack.c.bf16 %v2815_v48, %v2814_v46  ;;  %v2816_v63 = vld [vmem:[%s5452_s5 + $0x60] sm:$0xff] }
 0xeb0   : > { %v5308_v32 = vadd.f32 %v2582_v43, %v2581_v26  ;;  %v2817_v26 = vld [vmem:[%s5452_s5 + $0x68] sm:$0xff] }
 0xeb1   : > { %v3656_v43 = vpack.c.bf16 %v2817_v26, %v2816_v63 }
 0xeb2   : > { %v2590_v25 = vpack.c.bf16 %v5308_v32, %v5308_v32 }
 0xeb4   : > { %2624 = vmatmul.mubr.bf16.vlgmr.msra.gmra.mrb[72].mxu1 %v2590_v25  ;;  %3579 = vmatmul.mubr.bf16.vlgmr.msra.gmra.mrb[88].mxu0 %v2590_v25  ;;  %v2819_v25 = vld [vmem:[%s5452_s5 + $0x78] sm:$0xff] }
 0xeb5   : > { %2702 = vmatpush1.bf16.msra.mxu1 %v5201_v2  ;;  %3583 = vmatpush3.bf16.msra.mxu0 %v5207_v36 }
 0xeb6   : > { %2703 = vmatprep.subr.bf16.mxu1 %v5213_v6  ;;  %3584 = vmatprep.subr.bf16.mxu0 %v5485_v15 }
 0xeb7   : > { %2733 = vmatprep.mubr.bf16.mxu1 %v5486_v23  ;;  %3598 = vmatprep.mubr.msk.bf16.mxu0 %vm3996_vm0, %v5485_v15  ;;  %v3961_v23 = vld [vmem:[%s5449_s2 + $0x68] ss:$12 sps:$4 sm:$0xff]  }
 0xeb9   : > { %2704 = vmatpush1.bf16.msra.mxu1 %v5223_v4  ;;  %3585 = vmatpush3.bf16.msra.mxu0 %v5229_v8 }
 0xeba   : > { %2705 = vmatprep.subr.bf16.mxu1 %v5235_v33  ;;  %3586 = vmatprep.subr.bf16.mxu0 %v5485_v15 }
 0xebd   : > { %2706 = vmatpush1.bf16.msra.mxu1 %v5242_v44  ;;  %3587 = vmatpush3.bf16.msra.mxu0 %v5248_v5 }
 0xebe   : > { %2707 = vmatprep.subr.bf16.mxu1 %v5254_v17  ;;  %3588 = vmatprep.subr.bf16.mxu0 %v5485_v15 }
 0xec1   : > { %2708 = vmatpush1.bf16.msra.mxu1 %v5261_v22  ;;  %3589 = vmatpush3.bf16.msra.mxu0 %v5267_v45 }
 0xec2   : > { %2709 = vmatprep.subr.bf16.mxu1 %v5273_v60  ;;  %3590 = vmatprep.subr.bf16.mxu0 %v5485_v15 }
 0xec5   : > { %2710 = vmatpush1.bf16.msra.mxu1 %v5280_v7  ;;  %3591 = vmatpush3.bf16.msra.mxu0 %v3961_v23  ;;  %v5509_v7 = vld [vmem:[#allocation9_spill] sm:$0xff] }
 0xec6   : > { %2711 = vmatprep.subr.bf16.mxu1 %v5287_v14  ;;  %3592 = vmatprep.subr.bf16.mxu0 %v5485_v15 }
 0xec9   : > { %2712 = vmatpush1.bf16.msra.mxu1 %v3962_v53  ;;  %3593 = vmatpush3.bf16.msra.mxu0 %v3963_v37 }
 0xeca   : > { %2713 = vmatprep.subr.bf16.mxu1 %v3964_v38  ;;  %3594 = vmatprep.subr.bf16.mxu0 %v5485_v15  ;;  %v5510_v38 = vld [vmem:[#allocation28_spill] sm:$0xff] }
 0xecd   : > { %2714 = vmatpush1.bf16.msra.mxu1 %v3965_v54  ;;  %3595 = vmatpush3.bf16.msra.mxu0 %v3966_v56 }
 0xece   : > { %2715 = vmatprep.subr.bf16.mxu1 %v3967_v57  ;;  %3596 = vmatprep.subr.bf16.mxu0 %v5485_v15 }
 0xed1   : > { %2716 = vmatpush1.bf16.msra.mxu1 %v3968_v58  ;;  %3597 = vmatpush3.bf16.msra.mxu0 %v3969_v59  ;;  %v5511_v58 = vld [vmem:[#allocation29_spill] sm:$0xff] }
 0xed2   : > { %3637 = vmatprep.subr.bf16.mxu1 %v3997_v49 }
 0xf87   : > { %v2625_v61 = vpop.f32.mrb[72].mxu1  ;;  %v2666_v62 = vpop.f32.mrb[88].mxu0 }
 0xf88   : > { %v2672_v18 = vadd.f32 %v2625_v61, %v5507_v10  ;;  %v2627_v27 = vpop.f32.mrb[73].mxu1  ;;  %v3580_v55 = vpop.f32.mrb[89].mxu0  ;;  %v2686_v22 = vadd.f32 %v5008_v24, %v2666_v62 }
 0xf89   : > { %v2679_v0 = vadd.f32 %v2627_v27, %v5508_v31  ;;  %v2629_v1 = vpop.f32.mrb[74].mxu1  ;;  %v2669_v2 = vpop.f32.mrb[90].mxu0 }
 0xf8a   : > { %v3066_v36 = vmul.f32 -1.442695, %v2672_v18  ;;  %v2630_v6 = vpop.f32.mrb[75].mxu1  ;;  %v3581_v4 = vpop.f32.mrb[91].mxu0 }
 0xf8b   : > { %v3067_v8 = vmul.f32 -1.442695, %v2679_v0 }
 0xf8c   : > { %3901 = vpow2.f32 %v3066_v36 }
 0xf8d   : > { %3903 = vpow2.f32 %v3067_v8  ;;  %v5512_v8 = vld [vmem:[#allocation11_spill] sm:$0xff] }
 0xf96   : > { %v3902_v33 = vpop.eup %3901 }
 0xf97   : > { %v2676_v44 = vadd.f32 1.0, %v3902_v33  ;;  %v3904_v5 = vpop.eup %3903 }
 0xf98   : > { %v2683_v17 = vadd.f32 1.0, %v3904_v5 }
 0xf99   : > { %3905 = vrcp.f32 %v2676_v44 }
 0xf9a   : > { %3907 = vrcp.f32 %v2683_v17 }
 0xfa3   : > { %v3906_v45 = vpop.eup %3905 }
 0xfa4   : > { %v2687_v60 = vmul.f32 %v3906_v45, %v2686_v22  ;;  %v3908_v3 = vpop.eup %3907 }
 0xfa5   : > { %v2690_v29 = vsub.f32 1.0, %v3908_v3  ;;  %v2692_v16 = vmul.f32 %v3908_v3, %v5308_v32  ;;  %v2818_v32 = vld [vmem:[%s5452_s5 + $0x70] sm:$0xff] }
 0xfa6   : > { %v2688_v14 = vadd.f32 %v2687_v60, %v5509_v7  ;;  %v3659_v23 = vpack.c.bf16 %v2819_v25, %v2818_v32 }
 0xfa8   : > { %3909 = vtanh.f32 %v2688_v14 }
 0xfb2   : > { %v3910_v52 = vpop.eup %3909 }
 0xfb3   : > { %v2691_v21 = vmul.f32 %v3910_v52, %v2690_v29 }
 0xfb5   : > { %v5368_v40 = vadd.f32 %v2692_v16, %v2691_v21 }
 0xfb7   : > { %v2700_v9 = vpack.c.bf16 %v5368_v40, %v5368_v40 }
 0xfb9   : > { %2734 = vmatmul.mubr.bf16.vlgmr.msra.gmra.mrb[76].mxu1 %v2700_v9  ;;  %3599 = vmatmul.mubr.bf16.vlgmr.msra.gmra.mrb[92].mxu0 %v2700_v9 }
 0xfba   : > { %3634 = vmatprep.mubr.msk.f32.mxu1 %vm3996_vm0, %v5485_v15  ;;  %3639 = vmatpush3.bf16.msra.mxu1 %v3638_v20  ;;  %v2807_v15 = vld [vmem:[%s5452_s5 + $0x18] sm:$0xff] }
 0xfbb   : > { %3640 = vmatprep.subr.bf16.mxu1 %v3997_v49  ;;  %v3641_v51 = vpack.c.bf16 %v2807_v15, %v2806_v50 }
 0xfbe   : > { %3642 = vmatpush3.bf16.msra.mxu1 %v3641_v51 }
 0xfbf   : > { %3643 = vmatprep.subr.bf16.mxu1 %v3997_v49 }
 0xfc2   : > { %3645 = vmatpush3.bf16.msra.mxu1 %v3644_v30 }
 0xfc3   : > { %3646 = vmatprep.subr.bf16.mxu1 %v3997_v49 }
 0xfc6   : > { %3648 = vmatpush3.bf16.msra.mxu1 %v3647_v34 }
 0xfc7   : > { %3649 = vmatprep.subr.bf16.mxu1 %v3997_v49 }
 0xfca   : > { %3651 = vmatpush3.bf16.msra.mxu1 %v3650_v35 }
 0xfcb   : > { %3652 = vmatprep.subr.bf16.mxu1 %v3997_v49 }
 0xfce   : > { %3654 = vmatpush3.bf16.msra.mxu1 %v3653_v39 }
 0xfcf   : > { %3655 = vmatprep.subr.bf16.mxu1 %v3997_v49 }
 0xfd2   : > { %3657 = vmatpush3.bf16.msra.mxu1 %v3656_v43 }
 0xfd3   : > { %3658 = vmatprep.subr.bf16.mxu1 %v3997_v49 }
 0xfd6   : > { %3660 = vmatpush3.bf16.msra.mxu1 %v3659_v23 }
0x108c   : > { %v2735_v53 = vpop.f32.mrb[76].mxu1  ;;  %v2776_v37 = vpop.f32.mrb[92].mxu0 }
0x108d   : > { %v2782_v54 = vadd.f32 %v2735_v53, %v5510_v38  ;;  %v2737_v56 = vpop.f32.mrb[77].mxu1  ;;  %v3600_v57 = vpop.f32.mrb[93].mxu0  ;;  %v2796_v36 = vadd.f32 %v5008_v24, %v2776_v37  ;;  %v3070_v24 = vld [vmem:[%s5453_s6] ss:$0 sm:$0xff] }
0x108e   : > { %v2789_v59 = vadd.f32 %v2737_v56, %v5511_v58  ;;  %v2739_v61 = vpop.f32.mrb[78].mxu1  ;;  %v2779_v62 = vpop.f32.mrb[94].mxu0 }
0x108f   : > { %v3068_v10 = vmul.f32 -1.442695, %v2782_v54  ;;  %v2740_v18 = vpop.f32.mrb[79].mxu1  ;;  %v3601_v27 = vpop.f32.mrb[95].mxu0 }
0x1090   : > { %v3069_v55 = vmul.f32 -1.442695, %v2789_v59 }
0x1091   : > { %3911 = vpow2.f32 %v3068_v10 }
0x1092   : > { %3913 = vpow2.f32 %v3069_v55 }
0x109b   : > { %v3912_v31 = vpop.eup %3911 }
0x109c   : > { %v2786_v0 = vadd.f32 1.0, %v3912_v31  ;;  %v3914_v1 = vpop.eup %3913 }
0x109d   : > { %v2793_v2 = vadd.f32 1.0, %v3914_v1 }
0x109e   : > { %3915 = vrcp.f32 %v2786_v0 }
0x109f   : > { %3917 = vrcp.f32 %v2793_v2 }
0x10a8   : > { %v3916_v6 = vpop.eup %3915 }
0x10a9   : > { %v2797_v4 = vmul.f32 %v3916_v6, %v2796_v36  ;;  %v3918_v44 = vpop.eup %3917 }
0x10aa   : > { %v2800_v5 = vsub.f32 1.0, %v3918_v44  ;;  %v2802_v45 = vmul.f32 %v3918_v44, %v5368_v40 }
0x10ab   : > { %v2798_v33 = vadd.f32 %v2797_v4, %v5512_v8 }
0x10ad   : > { %3919 = vtanh.f32 %v2798_v33 }
0x10b7   : > { %v3920_v17 = vpop.eup %3919 }
0x10b8   : > { %v2801_v22 = vmul.f32 %v3920_v17, %v2800_v5 }
0x10ba   : > { %v2803_v60 = vadd.f32 %v2802_v45, %v2801_v22 }
0x10bc   : > { %3635 = vmatmul.mubr.f32.vlgmr.msra.gmra.mrb[80].mxu1 %v2803_v60 }
0x118f   : > { %v2893_v7 = vpop.f32.mrb[80].mxu1 }
0x1190   : > { %v2894_v14 = vadd.f32 %v3070_v24, %v2893_v7  ;;  %v3636_v3 = vpop.f32.mrb[81].mxu1 }
0x1192   : > { %2897 = vst [vmem:[%s377_s23] sm:$0xff] %v2894_v14 }
0x1193 PF: > { %p14_p9 = scmp.ge.s32.totalorder %s4055_s28, 4   ;;  %s5513_s24 = smov %s3988_s25 }
0x1194   : > { %s5514_s25 = smov %s4064_s8  ;;  %s5515_s26 = smov %s4055_s28 }
0x1195   :  { %16 = sbr.rel (!%p14_p9) target bundleno = 2 (0x2), region = 140 }

</bundles_post_ra>
